<compile_context>
chip_gen: v5e
topology: v5e:2x2
jax: 0.10.0
libtpu: 0.0.40
codegen_flags: <defaults>
</compile_context>

<pallas_src>
import functools

import jax
import jax.numpy as jnp
from jax.experimental import pallas as pl
from jax.experimental.pallas import tpu as pltpu


_VMEM = pl.BlockSpec(memory_space=pltpu.MemorySpace.VMEM)


# ----------------------------------------------------------------------------
# Fused forward kernel
# ----------------------------------------------------------------------------
def _fused_forward_kernel(*refs, S, B, H, L):
    """Entire LSTMAutoencoder.forward in one kernel.

    refs layout:
      [0]                 x_flat       (S*B, D)  bf16, time-major rows (t*B + b)
      [1 : 1+3L]          encoder layers: (w_ih_t bf16, w_hh_t bf16, bias f32) * L
      [1+3L : 1+6L]       decoder layers: (w_ih_t bf16, w_hh_t bf16, bias f32) * L
      [1+6L : 1+6L+6]     fc_enc_w, fc_enc_b, fc_dec_w, fc_dec_b, out_w, out_b
      [1+6L+6]            out_ref      (S*B, D)  f32
      [1+6L+7]            ys_ref       (S*B, H)  f32 VMEM scratch (decoder outputs)
    """
    f32 = jnp.float32
    bf16 = jnp.bfloat16

    x_ref = refs[0]
    enc_refs = [(refs[1 + 3 * l], refs[1 + 3 * l + 1], refs[1 + 3 * l + 2])
                for l in range(L)]
    base = 1 + 3 * L
    dec_refs = [(refs[base + 3 * l], refs[base + 3 * l + 1], refs[base + 3 * l + 2])
                for l in range(L)]
    base = 1 + 6 * L
    (fc_enc_w_ref, fc_enc_b_ref, fc_dec_w_ref, fc_dec_b_ref,
     out_w_ref, out_b_ref) = refs[base:base + 6]
    out_ref = refs[base + 6]
    ys_ref = refs[base + 7]

    # Load every weight/bias exactly once (all tiny, VMEM-resident).
    enc = [(w[...], u[...], b[...]) for (w, u, b) in enc_refs]
    dec = [(w[...], u[...], b[...]) for (w, u, b) in dec_refs]
    fc_enc_w, fc_enc_b = fc_enc_w_ref[...], fc_enc_b_ref[...]
    fc_dec_w, fc_dec_b = fc_dec_w_ref[...], fc_dec_b_ref[...]
    out_w, out_b = out_w_ref[...], out_b_ref[...]

    zeros_bh = jnp.zeros((B, H), f32)

    def cell(gates, c, *, skip_c):
        """LSTM cell update from f32 pre-activations `gates` (B, 4H)."""
        # Two full-width nonlinearities on the (B, 4H) tile, slice afterwards
        # (tile is a fraction of one vreg at these sizes).
        sig = jax.nn.sigmoid(gates)
        tnh = jnp.tanh(gates)
        i_g = sig[:, 0 * H:1 * H]
        f_g = sig[:, 1 * H:2 * H]
        g_g = tnh[:, 2 * H:3 * H]
        o_g = sig[:, 3 * H:4 * H]
        c_new = i_g * g_g if skip_c else f_g * c + i_g * g_g
        h_new = o_g * jnp.tanh(c_new)
        return h_new, c_new

    # ----------------------- encoder LSTM stack (wavefront) -----------------
    # Layer 0 x-side projection hoisted: ONE batched matmul for all timesteps.
    gx0 = jnp.dot(x_ref[...], enc[0][0],
                  preferred_element_type=f32) + enc[0][2]            # (S*B, 4H)

    h_enc = [zeros_bh] * L
    c_enc = [zeros_bh] * L
    for t in range(S):
        for l in range(L):
            if l == 0:
                gx = gx0[t * B:(t + 1) * B, :]                       # tile-aligned
            else:
                # Wavefront: consume the layer-(l-1) output of THIS timestep
                # immediately (no full-sequence barrier / concat).
                gx = jnp.dot(h_enc[l - 1].astype(bf16), enc[l][0],
                             preferred_element_type=f32) + enc[l][2]
            if t == 0:
                gates = gx                                           # h0 == 0
            else:
                gates = gx + jnp.dot(h_enc[l].astype(bf16), enc[l][1],
                                     preferred_element_type=f32)
            h_enc[l], c_enc[l] = cell(gates, c_enc[l], skip_c=(t == 0))
        # inter-layer dropout(p=0.2): training-only -> identity at inference.

    h_last = h_enc[L - 1]                                            # (B, H)

    # ----------------------- bottleneck (fc_enc / fc_dec) -------------------
    latent = jnp.dot(h_last.astype(bf16), fc_enc_w,
                     preferred_element_type=f32) + fc_enc_b          # (B, LAT)
    dec_h0 = jnp.dot(latent.astype(bf16), fc_dec_w,
                     preferred_element_type=f32) + fc_dec_b          # (B, H)

    # ----------------------- decoder LSTM stack (wavefront) -----------------
    # PyTorch reference: decoder input is zeros, h0 = fc_dec(latent) repeated
    # for every layer, c0 = 0.
    dec_bias0 = jnp.broadcast_to(dec[0][2], (B, 4 * H))  # zero input -> gates_x == bias
    h_dec = [dec_h0] * L
    c_dec = [zeros_bh] * L
    for t in range(S):
        for l in range(L):
            if l == 0:
                gx = dec_bias0
            else:
                gx = jnp.dot(h_dec[l - 1].astype(bf16), dec[l][0],
                             preferred_element_type=f32) + dec[l][2]
            gates = gx + jnp.dot(h_dec[l].astype(bf16), dec[l][1],
                                 preferred_element_type=f32)
            h_dec[l], c_dec[l] = cell(gates, c_dec[l], skip_c=(t == 0))
        # Tile-aligned in-place row store into the persistent VMEM slab
        # (replaces jnp.concatenate of per-step pieces).
        ys_ref[t * B:(t + 1) * B, :] = h_dec[L - 1]

    # ----------------------- output projection ------------------------------
    out_ref[...] = (jnp.dot(ys_ref[...].astype(bf16), out_w,
                            preferred_element_type=f32) + out_b)


# ----------------------------------------------------------------------------
# Parameter construction (PyTorch-style uniform init; weights pre-transposed
# and cast to bf16 once at init, biases kept f32)
# ----------------------------------------------------------------------------
def _uniform(key, shape, bound):
    return jax.random.uniform(key, shape, jnp.float32, -bound, bound)


def init_params(key, input_dim, hidden_dim, latent_dim, num_layers):
    H = hidden_dim
    params = {}
    k_lstm = 1.0 / (H ** 0.5)

    def lstm_stack(key, first_in_dim):
        layers = []
        for l in range(num_layers):
            d_in = first_in_dim if l == 0 else H
            key, k1, k2, k3, k4 = jax.random.split(key, 5)
            w_ih = _uniform(k1, (4 * H, d_in), k_lstm)      # PyTorch layout
            w_hh = _uniform(k2, (4 * H, H), k_lstm)
            b_ih = _uniform(k3, (4 * H,), k_lstm)
            b_hh = _uniform(k4, (4 * H,), k_lstm)
            layers.append((w_ih.T.astype(jnp.bfloat16),     # (Din, 4H) bf16
                           w_hh.T.astype(jnp.bfloat16),     # (H, 4H)   bf16
                           (b_ih + b_hh).reshape(1, -1)))   # (1, 4H)   f32
        return key, layers

    key, params["enc"] = lstm_stack(key, input_dim)
    key, params["dec"] = lstm_stack(key, hidden_dim)

    def lin(key, d_out, d_in):
        key, k1, k2 = jax.random.split(key, 3)
        bound = 1.0 / (d_in ** 0.5)
        w = _uniform(k1, (d_out, d_in), bound)               # PyTorch layout
        b = _uniform(k2, (d_out,), bound)
        return key, (w.T.astype(jnp.bfloat16), b.reshape(1, -1))  # (Din,Dout) bf16, (1,Dout) f32

    key, params["fc_enc"] = lin(key, latent_dim, hidden_dim)
    key, params["fc_dec"] = lin(key, hidden_dim, latent_dim)
    key, params["output_layer"] = lin(key, input_dim, hidden_dim)
    return params


# ----------------------------------------------------------------------------
# Forward pass wrapper (single fused pallas_call)
# ----------------------------------------------------------------------------
def lstm_autoencoder_forward(x, params, *, seq_len, input_dim, hidden_dim,
                             latent_dim, num_layers):
    B, S, D = x.shape
    H = hidden_dim
    B_pad = ((B + 7) // 8) * 8        # pad batch to a full sublane group

    # Time-major, batch-padded, bf16 input slab: row index = t*B_pad + b.
    x_tm = jnp.transpose(x, (1, 0, 2)).astype(jnp.float32)            # (S, B, D)
    x_tm = jnp.pad(x_tm, ((0, 0), (0, B_pad - B), (0, 0)))
    x_flat = x_tm.reshape(S * B_pad, D).astype(jnp.bfloat16)

    inputs = [x_flat]
    for (w_ih_t, w_hh_t, b) in params["enc"]:
        inputs += [w_ih_t, w_hh_t, b]
    for (w_ih_t, w_hh_t, b) in params["dec"]:
        inputs += [w_ih_t, w_hh_t, b]
    inputs += [params["fc_enc"][0], params["fc_enc"][1],
               params["fc_dec"][0], params["fc_dec"][1],
               params["output_layer"][0], params["output_layer"][1]]

    kernel = functools.partial(_fused_forward_kernel, S=S, B=B_pad, H=H,
                               L=num_layers)

    # Everything (weights + activations) is < ~100 KB -> single VMEM-resident
    # invocation; no grid / BlockSpec pipelining needed at these sizes.
    out_flat = pl.pallas_call(
        kernel,
        out_shape=jax.ShapeDtypeStruct((S * B_pad, D), jnp.float32),
        in_specs=[_VMEM] * len(inputs),
        out_specs=_VMEM,
        scratch_shapes=[pltpu.VMEM((S * B_pad, H), jnp.float32)],
    )(*inputs)

    out = out_flat.reshape(S, B_pad, D)[:, :B, :]                      # drop pad rows
    return jnp.transpose(out, (1, 0, 2))                               # (B, S, D)


# ----------------------------------------------------------------------------
# Pure-JAX f32 reference (mirrors the PyTorch forward) for a tolerance check
# ----------------------------------------------------------------------------
def reference_forward(x, params, *, hidden_dim, num_layers):
    f32 = jnp.float32
    B, S, _ = x.shape
    H = hidden_dim

    def lstm_stack(inp, layers, h0, c0):
        out = inp
        h_fin = None
        for l, (w_ih_t, w_hh_t, b) in enumerate(layers):
            w_ih = w_ih_t.astype(f32)
            w_hh = w_hh_t.astype(f32)
            bias = b.astype(f32)
            h, c = h0[l], c0[l]
            ys = []
            for t in range(S):
                g = out[:, t, :] @ w_ih + h @ w_hh + bias
                i_g = jax.nn.sigmoid(g[:, :H])
                f_g = jax.nn.sigmoid(g[:, H:2 * H])
                g_g = jnp.tanh(g[:, 2 * H:3 * H])
                o_g = jax.nn.sigmoid(g[:, 3 * H:])
                c = f_g * c + i_g * g_g
                h = o_g * jnp.tanh(c)
                ys.append(h)
            out = jnp.stack(ys, axis=1)
            h_fin = h
        return out, h_fin

    z = jnp.zeros((num_layers, B, H), f32)
    _, h_last = lstm_stack(x.astype(f32), params["enc"], z, z)
    latent = h_last @ params["fc_enc"][0].astype(f32) + params["fc_enc"][1]
    dec_h0 = latent @ params["fc_dec"][0].astype(f32) + params["fc_dec"][1]
    dec_h0_all = jnp.broadcast_to(dec_h0[None], (num_layers, B, H))
    dec_in = jnp.zeros((B, S, H), f32)
    dec_out, _ = lstm_stack(dec_in, params["dec"], dec_h0_all, z)
    return dec_out @ params["output_layer"][0].astype(f32) + params["output_layer"][1]


# ----------------------------------------------------------------------------
if __name__ == "__main__":
    seq_len, input_dim, hidden_dim, latent_dim, num_layers = 8, 6, 16, 8, 2
    batch = 2

    key = jax.random.PRNGKey(0)
    key, kx = jax.random.split(key)
    x = jax.random.normal(kx, (batch, seq_len, input_dim), jnp.float32)

    params = init_params(key, input_dim, hidden_dim, latent_dim, num_layers)

    fwd = jax.jit(functools.partial(
        lstm_autoencoder_forward, seq_len=seq_len, input_dim=input_dim,
        hidden_dim=hidden_dim, latent_dim=latent_dim, num_layers=num_layers))

    out = jax.block_until_ready(fwd(x, params))

    assert out.shape == (batch, seq_len, input_dim), out.shape
    assert bool(jnp.all(jnp.isfinite(out)))

    # Tolerance check vs. a pure-JAX f32 reference (same bf16-stored weights;
    # remaining diff is only the in-kernel bf16 activation casts).
    ref = reference_forward(x, params, hidden_dim=hidden_dim,
                            num_layers=num_layers)
    max_err = float(jnp.max(jnp.abs(out - ref)))
    assert max_err < 5e-2, f"max abs error vs reference: {max_err}"

    print("KERNEL_OK")
</pallas_src>

<mosaic_0001>
module attributes {stable_mosaic.version = 11 : i64} {
  func.func @_fused_forward_kernel(%arg0: memref<64x6xbf16, #tpu.memory_space<vmem>>, %arg1: memref<6x64xbf16, #tpu.memory_space<vmem>>, %arg2: memref<16x64xbf16, #tpu.memory_space<vmem>>, %arg3: memref<1x64xf32, #tpu.memory_space<vmem>>, %arg4: memref<16x64xbf16, #tpu.memory_space<vmem>>, %arg5: memref<16x64xbf16, #tpu.memory_space<vmem>>, %arg6: memref<1x64xf32, #tpu.memory_space<vmem>>, %arg7: memref<16x64xbf16, #tpu.memory_space<vmem>>, %arg8: memref<16x64xbf16, #tpu.memory_space<vmem>>, %arg9: memref<1x64xf32, #tpu.memory_space<vmem>>, %arg10: memref<16x64xbf16, #tpu.memory_space<vmem>>, %arg11: memref<16x64xbf16, #tpu.memory_space<vmem>>, %arg12: memref<1x64xf32, #tpu.memory_space<vmem>>, %arg13: memref<16x8xbf16, #tpu.memory_space<vmem>>, %arg14: memref<1x8xf32, #tpu.memory_space<vmem>>, %arg15: memref<8x16xbf16, #tpu.memory_space<vmem>>, %arg16: memref<1x16xf32, #tpu.memory_space<vmem>>, %arg17: memref<16x6xbf16, #tpu.memory_space<vmem>>, %arg18: memref<1x6xf32, #tpu.memory_space<vmem>>, %arg19: memref<64x6xf32, #tpu.memory_space<vmem>>, %arg20: memref<64x16xf32, #tpu.memory_space<vmem>>) attributes {dimension_semantics = [], scalar_prefetch = 0 : i64, scratch_operands = 1 : i64, tpu.core_type = #tpu.core_type<tc>} {
    %c0 = arith.constant 0 : index
    %c0_0 = arith.constant 0 : index
    %0 = vector.load %arg1[%c0, %c0_0] : memref<6x64xbf16, #tpu.memory_space<vmem>>, vector<6x64xbf16>
    %c0_1 = arith.constant 0 : index
    %c0_2 = arith.constant 0 : index
    %1 = vector.load %arg2[%c0_1, %c0_2] : memref<16x64xbf16, #tpu.memory_space<vmem>>, vector<16x64xbf16>
    %c0_3 = arith.constant 0 : index
    %c0_4 = arith.constant 0 : index
    %2 = vector.load %arg3[%c0_3, %c0_4] : memref<1x64xf32, #tpu.memory_space<vmem>>, vector<1x64xf32>
    %c0_5 = arith.constant 0 : index
    %c0_6 = arith.constant 0 : index
    %3 = vector.load %arg4[%c0_5, %c0_6] : memref<16x64xbf16, #tpu.memory_space<vmem>>, vector<16x64xbf16>
    %c0_7 = arith.constant 0 : index
    %c0_8 = arith.constant 0 : index
    %4 = vector.load %arg5[%c0_7, %c0_8] : memref<16x64xbf16, #tpu.memory_space<vmem>>, vector<16x64xbf16>
    %c0_9 = arith.constant 0 : index
    %c0_10 = arith.constant 0 : index
    %5 = vector.load %arg6[%c0_9, %c0_10] : memref<1x64xf32, #tpu.memory_space<vmem>>, vector<1x64xf32>
    %c0_11 = arith.constant 0 : index
    %c0_12 = arith.constant 0 : index
    %6 = vector.load %arg8[%c0_11, %c0_12] : memref<16x64xbf16, #tpu.memory_space<vmem>>, vector<16x64xbf16>
    %c0_13 = arith.constant 0 : index
    %c0_14 = arith.constant 0 : index
    %7 = vector.load %arg9[%c0_13, %c0_14] : memref<1x64xf32, #tpu.memory_space<vmem>>, vector<1x64xf32>
    %c0_15 = arith.constant 0 : index
    %c0_16 = arith.constant 0 : index
    %8 = vector.load %arg10[%c0_15, %c0_16] : memref<16x64xbf16, #tpu.memory_space<vmem>>, vector<16x64xbf16>
    %c0_17 = arith.constant 0 : index
    %c0_18 = arith.constant 0 : index
    %9 = vector.load %arg11[%c0_17, %c0_18] : memref<16x64xbf16, #tpu.memory_space<vmem>>, vector<16x64xbf16>
    %c0_19 = arith.constant 0 : index
    %c0_20 = arith.constant 0 : index
    %10 = vector.load %arg12[%c0_19, %c0_20] : memref<1x64xf32, #tpu.memory_space<vmem>>, vector<1x64xf32>
    %c0_21 = arith.constant 0 : index
    %c0_22 = arith.constant 0 : index
    %11 = vector.load %arg13[%c0_21, %c0_22] : memref<16x8xbf16, #tpu.memory_space<vmem>>, vector<16x8xbf16>
    %c0_23 = arith.constant 0 : index
    %c0_24 = arith.constant 0 : index
    %12 = vector.load %arg14[%c0_23, %c0_24] : memref<1x8xf32, #tpu.memory_space<vmem>>, vector<1x8xf32>
    %c0_25 = arith.constant 0 : index
    %c0_26 = arith.constant 0 : index
    %13 = vector.load %arg15[%c0_25, %c0_26] : memref<8x16xbf16, #tpu.memory_space<vmem>>, vector<8x16xbf16>
    %c0_27 = arith.constant 0 : index
    %c0_28 = arith.constant 0 : index
    %14 = vector.load %arg16[%c0_27, %c0_28] : memref<1x16xf32, #tpu.memory_space<vmem>>, vector<1x16xf32>
    %c0_29 = arith.constant 0 : index
    %c0_30 = arith.constant 0 : index
    %15 = vector.load %arg17[%c0_29, %c0_30] : memref<16x6xbf16, #tpu.memory_space<vmem>>, vector<16x6xbf16>
    %c0_31 = arith.constant 0 : index
    %c0_32 = arith.constant 0 : index
    %16 = vector.load %arg18[%c0_31, %c0_32] : memref<1x6xf32, #tpu.memory_space<vmem>>, vector<1x6xf32>
    %c0_33 = arith.constant 0 : index
    %c0_34 = arith.constant 0 : index
    %17 = vector.load %arg0[%c0_33, %c0_34] : memref<64x6xbf16, #tpu.memory_space<vmem>>, vector<64x6xbf16>
    %cst = arith.constant dense<0.000000e+00> : vector<64x64xf32>
    %18 = tpu.matmul %17, %0, %cst {dimension_numbers = #tpu.dot_dimension_numbers<[1], [0], [0], [1], [0, 0, 1, 1], [], []>} : vector<64x6xbf16>, vector<6x64xbf16>, vector<64x64xf32> -> vector<64x64xf32>
    %19 = vector.broadcast %2 : vector<1x64xf32> to vector<64x64xf32>
    %20 = arith.addf %18, %19 : vector<64x64xf32>
    %21 = vector.extract_strided_slice %20 {offsets = [0, 0], sizes = [8, 64], strides = [1, 1]} : vector<64x64xf32> to vector<8x64xf32>
    %22 = arith.negf %21 : vector<8x64xf32>
    %23 = math.exp %22 : vector<8x64xf32>
    %cst_35 = arith.constant 1.000000e+00 : f32
    %24 = vector.broadcast %cst_35 : f32 to vector<8x64xf32>
    %25 = arith.addf %24, %23 : vector<8x64xf32>
    %26 = arith.divf %24, %25 : vector<8x64xf32>
    %27 = math.tanh %21 : vector<8x64xf32>
    %28 = vector.extract_strided_slice %26 {offsets = [0, 0], sizes = [8, 16], strides = [1, 1]} : vector<8x64xf32> to vector<8x16xf32>
    %29 = vector.extract_strided_slice %27 {offsets = [0, 32], sizes = [8, 16], strides = [1, 1]} : vector<8x64xf32> to vector<8x16xf32>
    %30 = vector.extract_strided_slice %26 {offsets = [0, 48], sizes = [8, 16], strides = [1, 1]} : vector<8x64xf32> to vector<8x16xf32>
    %31 = arith.mulf %28, %29 : vector<8x16xf32>
    %32 = math.tanh %31 : vector<8x16xf32>
    %33 = arith.mulf %30, %32 : vector<8x16xf32>
    %34 = arith.truncf %33 : vector<8x16xf32> to vector<8x16xbf16>
    %cst_36 = arith.constant dense<0.000000e+00> : vector<8x64xf32>
    %35 = tpu.matmul %34, %3, %cst_36 {dimension_numbers = #tpu.dot_dimension_numbers<[1], [0], [0], [1], [0, 0, 1, 1], [], []>} : vector<8x16xbf16>, vector<16x64xbf16>, vector<8x64xf32> -> vector<8x64xf32>
    %36 = vector.broadcast %5 : vector<1x64xf32> to vector<8x64xf32>
    %37 = arith.addf %35, %36 : vector<8x64xf32>
    %38 = arith.negf %37 : vector<8x64xf32>
    %39 = math.exp %38 : vector<8x64xf32>
    %cst_37 = arith.constant 1.000000e+00 : f32
    %40 = vector.broadcast %cst_37 : f32 to vector<8x64xf32>
    %41 = arith.addf %40, %39 : vector<8x64xf32>
    %42 = arith.divf %40, %41 : vector<8x64xf32>
    %43 = math.tanh %37 : vector<8x64xf32>
    %44 = vector.extract_strided_slice %42 {offsets = [0, 0], sizes = [8, 16], strides = [1, 1]} : vector<8x64xf32> to vector<8x16xf32>
    %45 = vector.extract_strided_slice %43 {offsets = [0, 32], sizes = [8, 16], strides = [1, 1]} : vector<8x64xf32> to vector<8x16xf32>
    %46 = vector.extract_strided_slice %42 {offsets = [0, 48], sizes = [8, 16], strides = [1, 1]} : vector<8x64xf32> to vector<8x16xf32>
    %47 = arith.mulf %44, %45 : vector<8x16xf32>
    %48 = math.tanh %47 : vector<8x16xf32>
    %49 = arith.mulf %46, %48 : vector<8x16xf32>
    %50 = vector.extract_strided_slice %20 {offsets = [8, 0], sizes = [8, 64], strides = [1, 1]} : vector<64x64xf32> to vector<8x64xf32>
    %51 = arith.truncf %33 : vector<8x16xf32> to vector<8x16xbf16>
    %cst_38 = arith.constant dense<0.000000e+00> : vector<8x64xf32>
    %52 = tpu.matmul %51, %1, %cst_38 {dimension_numbers = #tpu.dot_dimension_numbers<[1], [0], [0], [1], [0, 0, 1, 1], [], []>} : vector<8x16xbf16>, vector<16x64xbf16>, vector<8x64xf32> -> vector<8x64xf32>
    %53 = arith.addf %50, %52 : vector<8x64xf32>
    %54 = arith.negf %53 : vector<8x64xf32>
    %55 = math.exp %54 : vector<8x64xf32>
    %cst_39 = arith.constant 1.000000e+00 : f32
    %56 = vector.broadcast %cst_39 : f32 to vector<8x64xf32>
    %57 = arith.addf %56, %55 : vector<8x64xf32>
    %58 = arith.divf %56, %57 : vector<8x64xf32>
    %59 = math.tanh %53 : vector<8x64xf32>
    %60 = vector.extract_strided_slice %58 {offsets = [0, 0], sizes = [8, 16], strides = [1, 1]} : vector<8x64xf32> to vector<8x16xf32>
    %61 = vector.extract_strided_slice %58 {offsets = [0, 16], sizes = [8, 16], strides = [1, 1]} : vector<8x64xf32> to vector<8x16xf32>
    %62 = vector.extract_strided_slice %59 {offsets = [0, 32], sizes = [8, 16], strides = [1, 1]} : vector<8x64xf32> to vector<8x16xf32>
    %63 = vector.extract_strided_slice %58 {offsets = [0, 48], sizes = [8, 16], strides = [1, 1]} : vector<8x64xf32> to vector<8x16xf32>
    %64 = arith.mulf %61, %31 : vector<8x16xf32>
    %65 = arith.mulf %60, %62 : vector<8x16xf32>
    %66 = arith.addf %64, %65 : vector<8x16xf32>
    %67 = math.tanh %66 : vector<8x16xf32>
    %68 = arith.mulf %63, %67 : vector<8x16xf32>
    %69 = arith.truncf %68 : vector<8x16xf32> to vector<8x16xbf16>
    %cst_40 = arith.constant dense<0.000000e+00> : vector<8x64xf32>
    %70 = tpu.matmul %69, %3, %cst_40 {dimension_numbers = #tpu.dot_dimension_numbers<[1], [0], [0], [1], [0, 0, 1, 1], [], []>} : vector<8x16xbf16>, vector<16x64xbf16>, vector<8x64xf32> -> vector<8x64xf32>
    %71 = vector.broadcast %5 : vector<1x64xf32> to vector<8x64xf32>
    %72 = arith.addf %70, %71 : vector<8x64xf32>
    %73 = arith.truncf %49 : vector<8x16xf32> to vector<8x16xbf16>
    %cst_41 = arith.constant dense<0.000000e+00> : vector<8x64xf32>
    %74 = tpu.matmul %73, %4, %cst_41 {dimension_numbers = #tpu.dot_dimension_numbers<[1], [0], [0], [1], [0, 0, 1, 1], [], []>} : vector<8x16xbf16>, vector<16x64xbf16>, vector<8x64xf32> -> vector<8x64xf32>
    %75 = arith.addf %72, %74 : vector<8x64xf32>
    %76 = arith.negf %75 : vector<8x64xf32>
    %77 = math.exp %76 : vector<8x64xf32>
    %cst_42 = arith.constant 1.000000e+00 : f32
    %78 = vector.broadcast %cst_42 : f32 to vector<8x64xf32>
    %79 = arith.addf %78, %77 : vector<8x64xf32>
    %80 = arith.divf %78, %79 : vector<8x64xf32>
    %81 = math.tanh %75 : vector<8x64xf32>
    %82 = vector.extract_strided_slice %80 {offsets = [0, 0], sizes = [8, 16], strides = [1, 1]} : vector<8x64xf32> to vector<8x16xf32>
    %83 = vector.extract_strided_slice %80 {offsets = [0, 16], sizes = [8, 16], strides = [1, 1]} : vector<8x64xf32> to vector<8x16xf32>
    %84 = vector.extract_strided_slice %81 {offsets = [0, 32], sizes = [8, 16], strides = [1, 1]} : vector<8x64xf32> to vector<8x16xf32>
    %85 = vector.extract_strided_slice %80 {offsets = [0, 48], sizes = [8, 16], strides = [1, 1]} : vector<8x64xf32> to vector<8x16xf32>
    %86 = arith.mulf %83, %47 : vector<8x16xf32>
    %87 = arith.mulf %82, %84 : vector<8x16xf32>
    %88 = arith.addf %86, %87 : vector<8x16xf32>
    %89 = math.tanh %88 : vector<8x16xf32>
    %90 = arith.mulf %85, %89 : vector<8x16xf32>
    %91 = vector.extract_strided_slice %20 {offsets = [16, 0], sizes = [8, 64], strides = [1, 1]} : vector<64x64xf32> to vector<8x64xf32>
    %92 = arith.truncf %68 : vector<8x16xf32> to vector<8x16xbf16>
    %cst_43 = arith.constant dense<0.000000e+00> : vector<8x64xf32>
    %93 = tpu.matmul %92, %1, %cst_43 {dimension_numbers = #tpu.dot_dimension_numbers<[1], [0], [0], [1], [0, 0, 1, 1], [], []>} : vector<8x16xbf16>, vector<16x64xbf16>, vector<8x64xf32> -> vector<8x64xf32>
    %94 = arith.addf %91, %93 : vector<8x64xf32>
    %95 = arith.negf %94 : vector<8x64xf32>
    %96 = math.exp %95 : vector<8x64xf32>
    %cst_44 = arith.constant 1.000000e+00 : f32
    %97 = vector.broadcast %cst_44 : f32 to vector<8x64xf32>
    %98 = arith.addf %97, %96 : vector<8x64xf32>
    %99 = arith.divf %97, %98 : vector<8x64xf32>
    %100 = math.tanh %94 : vector<8x64xf32>
    %101 = vector.extract_strided_slice %99 {offsets = [0, 0], sizes = [8, 16], strides = [1, 1]} : vector<8x64xf32> to vector<8x16xf32>
    %102 = vector.extract_strided_slice %99 {offsets = [0, 16], sizes = [8, 16], strides = [1, 1]} : vector<8x64xf32> to vector<8x16xf32>
    %103 = vector.extract_strided_slice %100 {offsets = [0, 32], sizes = [8, 16], strides = [1, 1]} : vector<8x64xf32> to vector<8x16xf32>
    %104 = vector.extract_strided_slice %99 {offsets = [0, 48], sizes = [8, 16], strides = [1, 1]} : vector<8x64xf32> to vector<8x16xf32>
    %105 = arith.mulf %102, %66 : vector<8x16xf32>
    %106 = arith.mulf %101, %103 : vector<8x16xf32>
    %107 = arith.addf %105, %106 : vector<8x16xf32>
    %108 = math.tanh %107 : vector<8x16xf32>
    %109 = arith.mulf %104, %108 : vector<8x16xf32>
    %110 = arith.truncf %109 : vector<8x16xf32> to vector<8x16xbf16>
    %cst_45 = arith.constant dense<0.000000e+00> : vector<8x64xf32>
    %111 = tpu.matmul %110, %3, %cst_45 {dimension_numbers = #tpu.dot_dimension_numbers<[1], [0], [0], [1], [0, 0, 1, 1], [], []>} : vector<8x16xbf16>, vector<16x64xbf16>, vector<8x64xf32> -> vector<8x64xf32>
    %112 = vector.broadcast %5 : vector<1x64xf32> to vector<8x64xf32>
    %113 = arith.addf %111, %112 : vector<8x64xf32>
    %114 = arith.truncf %90 : vector<8x16xf32> to vector<8x16xbf16>
    %cst_46 = arith.constant dense<0.000000e+00> : vector<8x64xf32>
    %115 = tpu.matmul %114, %4, %cst_46 {dimension_numbers = #tpu.dot_dimension_numbers<[1], [0], [0], [1], [0, 0, 1, 1], [], []>} : vector<8x16xbf16>, vector<16x64xbf16>, vector<8x64xf32> -> vector<8x64xf32>
    %116 = arith.addf %113, %115 : vector<8x64xf32>
    %117 = arith.negf %116 : vector<8x64xf32>
    %118 = math.exp %117 : vector<8x64xf32>
    %cst_47 = arith.constant 1.000000e+00 : f32
    %119 = vector.broadcast %cst_47 : f32 to vector<8x64xf32>
    %120 = arith.addf %119, %118 : vector<8x64xf32>
    %121 = arith.divf %119, %120 : vector<8x64xf32>
    %122 = math.tanh %116 : vector<8x64xf32>
    %123 = vector.extract_strided_slice %121 {offsets = [0, 0], sizes = [8, 16], strides = [1, 1]} : vector<8x64xf32> to vector<8x16xf32>
    %124 = vector.extract_strided_slice %121 {offsets = [0, 16], sizes = [8, 16], strides = [1, 1]} : vector<8x64xf32> to vector<8x16xf32>
    %125 = vector.extract_strided_slice %122 {offsets = [0, 32], sizes = [8, 16], strides = [1, 1]} : vector<8x64xf32> to vector<8x16xf32>
    %126 = vector.extract_strided_slice %121 {offsets = [0, 48], sizes = [8, 16], strides = [1, 1]} : vector<8x64xf32> to vector<8x16xf32>
    %127 = arith.mulf %124, %88 : vector<8x16xf32>
    %128 = arith.mulf %123, %125 : vector<8x16xf32>
    %129 = arith.addf %127, %128 : vector<8x16xf32>
    %130 = math.tanh %129 : vector<8x16xf32>
    %131 = arith.mulf %126, %130 : vector<8x16xf32>
    %132 = vector.extract_strided_slice %20 {offsets = [24, 0], sizes = [8, 64], strides = [1, 1]} : vector<64x64xf32> to vector<8x64xf32>
    %133 = arith.truncf %109 : vector<8x16xf32> to vector<8x16xbf16>
    %cst_48 = arith.constant dense<0.000000e+00> : vector<8x64xf32>
    %134 = tpu.matmul %133, %1, %cst_48 {dimension_numbers = #tpu.dot_dimension_numbers<[1], [0], [0], [1], [0, 0, 1, 1], [], []>} : vector<8x16xbf16>, vector<16x64xbf16>, vector<8x64xf32> -> vector<8x64xf32>
    %135 = arith.addf %132, %134 : vector<8x64xf32>
    %136 = arith.negf %135 : vector<8x64xf32>
    %137 = math.exp %136 : vector<8x64xf32>
    %cst_49 = arith.constant 1.000000e+00 : f32
    %138 = vector.broadcast %cst_49 : f32 to vector<8x64xf32>
    %139 = arith.addf %138, %137 : vector<8x64xf32>
    %140 = arith.divf %138, %139 : vector<8x64xf32>
    %141 = math.tanh %135 : vector<8x64xf32>
    %142 = vector.extract_strided_slice %140 {offsets = [0, 0], sizes = [8, 16], strides = [1, 1]} : vector<8x64xf32> to vector<8x16xf32>
    %143 = vector.extract_strided_slice %140 {offsets = [0, 16], sizes = [8, 16], strides = [1, 1]} : vector<8x64xf32> to vector<8x16xf32>
    %144 = vector.extract_strided_slice %141 {offsets = [0, 32], sizes = [8, 16], strides = [1, 1]} : vector<8x64xf32> to vector<8x16xf32>
    %145 = vector.extract_strided_slice %140 {offsets = [0, 48], sizes = [8, 16], strides = [1, 1]} : vector<8x64xf32> to vector<8x16xf32>
    %146 = arith.mulf %143, %107 : vector<8x16xf32>
    %147 = arith.mulf %142, %144 : vector<8x16xf32>
    %148 = arith.addf %146, %147 : vector<8x16xf32>
    %149 = math.tanh %148 : vector<8x16xf32>
    %150 = arith.mulf %145, %149 : vector<8x16xf32>
    %151 = arith.truncf %150 : vector<8x16xf32> to vector<8x16xbf16>
    %cst_50 = arith.constant dense<0.000000e+00> : vector<8x64xf32>
    %152 = tpu.matmul %151, %3, %cst_50 {dimension_numbers = #tpu.dot_dimension_numbers<[1], [0], [0], [1], [0, 0, 1, 1], [], []>} : vector<8x16xbf16>, vector<16x64xbf16>, vector<8x64xf32> -> vector<8x64xf32>
    %153 = vector.broadcast %5 : vector<1x64xf32> to vector<8x64xf32>
    %154 = arith.addf %152, %153 : vector<8x64xf32>
    %155 = arith.truncf %131 : vector<8x16xf32> to vector<8x16xbf16>
    %cst_51 = arith.constant dense<0.000000e+00> : vector<8x64xf32>
    %156 = tpu.matmul %155, %4, %cst_51 {dimension_numbers = #tpu.dot_dimension_numbers<[1], [0], [0], [1], [0, 0, 1, 1], [], []>} : vector<8x16xbf16>, vector<16x64xbf16>, vector<8x64xf32> -> vector<8x64xf32>
    %157 = arith.addf %154, %156 : vector<8x64xf32>
    %158 = arith.negf %157 : vector<8x64xf32>
    %159 = math.exp %158 : vector<8x64xf32>
    %cst_52 = arith.constant 1.000000e+00 : f32
    %160 = vector.broadcast %cst_52 : f32 to vector<8x64xf32>
    %161 = arith.addf %160, %159 : vector<8x64xf32>
    %162 = arith.divf %160, %161 : vector<8x64xf32>
    %163 = math.tanh %157 : vector<8x64xf32>
    %164 = vector.extract_strided_slice %162 {offsets = [0, 0], sizes = [8, 16], strides = [1, 1]} : vector<8x64xf32> to vector<8x16xf32>
    %165 = vector.extract_strided_slice %162 {offsets = [0, 16], sizes = [8, 16], strides = [1, 1]} : vector<8x64xf32> to vector<8x16xf32>
    %166 = vector.extract_strided_slice %163 {offsets = [0, 32], sizes = [8, 16], strides = [1, 1]} : vector<8x64xf32> to vector<8x16xf32>
    %167 = vector.extract_strided_slice %162 {offsets = [0, 48], sizes = [8, 16], strides = [1, 1]} : vector<8x64xf32> to vector<8x16xf32>
    %168 = arith.mulf %165, %129 : vector<8x16xf32>
    %169 = arith.mulf %164, %166 : vector<8x16xf32>
    %170 = arith.addf %168, %169 : vector<8x16xf32>
    %171 = math.tanh %170 : vector<8x16xf32>
    %172 = arith.mulf %167, %171 : vector<8x16xf32>
    %173 = vector.extract_strided_slice %20 {offsets = [32, 0], sizes = [8, 64], strides = [1, 1]} : vector<64x64xf32> to vector<8x64xf32>
    %174 = arith.truncf %150 : vector<8x16xf32> to vector<8x16xbf16>
    %cst_53 = arith.constant dense<0.000000e+00> : vector<8x64xf32>
    %175 = tpu.matmul %174, %1, %cst_53 {dimension_numbers = #tpu.dot_dimension_numbers<[1], [0], [0], [1], [0, 0, 1, 1], [], []>} : vector<8x16xbf16>, vector<16x64xbf16>, vector<8x64xf32> -> vector<8x64xf32>
    %176 = arith.addf %173, %175 : vector<8x64xf32>
    %177 = arith.negf %176 : vector<8x64xf32>
    %178 = math.exp %177 : vector<8x64xf32>
    %cst_54 = arith.constant 1.000000e+00 : f32
    %179 = vector.broadcast %cst_54 : f32 to vector<8x64xf32>
    %180 = arith.addf %179, %178 : vector<8x64xf32>
    %181 = arith.divf %179, %180 : vector<8x64xf32>
    %182 = math.tanh %176 : vector<8x64xf32>
    %183 = vector.extract_strided_slice %181 {offsets = [0, 0], sizes = [8, 16], strides = [1, 1]} : vector<8x64xf32> to vector<8x16xf32>
    %184 = vector.extract_strided_slice %181 {offsets = [0, 16], sizes = [8, 16], strides = [1, 1]} : vector<8x64xf32> to vector<8x16xf32>
    %185 = vector.extract_strided_slice %182 {offsets = [0, 32], sizes = [8, 16], strides = [1, 1]} : vector<8x64xf32> to vector<8x16xf32>
    %186 = vector.extract_strided_slice %181 {offsets = [0, 48], sizes = [8, 16], strides = [1, 1]} : vector<8x64xf32> to vector<8x16xf32>
    %187 = arith.mulf %184, %148 : vector<8x16xf32>
    %188 = arith.mulf %183, %185 : vector<8x16xf32>
    %189 = arith.addf %187, %188 : vector<8x16xf32>
    %190 = math.tanh %189 : vector<8x16xf32>
    %191 = arith.mulf %186, %190 : vector<8x16xf32>
    %192 = arith.truncf %191 : vector<8x16xf32> to vector<8x16xbf16>
    %cst_55 = arith.constant dense<0.000000e+00> : vector<8x64xf32>
    %193 = tpu.matmul %192, %3, %cst_55 {dimension_numbers = #tpu.dot_dimension_numbers<[1], [0], [0], [1], [0, 0, 1, 1], [], []>} : vector<8x16xbf16>, vector<16x64xbf16>, vector<8x64xf32> -> vector<8x64xf32>
    %194 = vector.broadcast %5 : vector<1x64xf32> to vector<8x64xf32>
    %195 = arith.addf %193, %194 : vector<8x64xf32>
    %196 = arith.truncf %172 : vector<8x16xf32> to vector<8x16xbf16>
    %cst_56 = arith.constant dense<0.000000e+00> : vector<8x64xf32>
    %197 = tpu.matmul %196, %4, %cst_56 {dimension_numbers = #tpu.dot_dimension_numbers<[1], [0], [0], [1], [0, 0, 1, 1], [], []>} : vector<8x16xbf16>, vector<16x64xbf16>, vector<8x64xf32> -> vector<8x64xf32>
    %198 = arith.addf %195, %197 : vector<8x64xf32>
    %199 = arith.negf %198 : vector<8x64xf32>
    %200 = math.exp %199 : vector<8x64xf32>
    %cst_57 = arith.constant 1.000000e+00 : f32
    %201 = vector.broadcast %cst_57 : f32 to vector<8x64xf32>
    %202 = arith.addf %201, %200 : vector<8x64xf32>
    %203 = arith.divf %201, %202 : vector<8x64xf32>
    %204 = math.tanh %198 : vector<8x64xf32>
    %205 = vector.extract_strided_slice %203 {offsets = [0, 0], sizes = [8, 16], strides = [1, 1]} : vector<8x64xf32> to vector<8x16xf32>
    %206 = vector.extract_strided_slice %203 {offsets = [0, 16], sizes = [8, 16], strides = [1, 1]} : vector<8x64xf32> to vector<8x16xf32>
    %207 = vector.extract_strided_slice %204 {offsets = [0, 32], sizes = [8, 16], strides = [1, 1]} : vector<8x64xf32> to vector<8x16xf32>
    %208 = vector.extract_strided_slice %203 {offsets = [0, 48], sizes = [8, 16], strides = [1, 1]} : vector<8x64xf32> to vector<8x16xf32>
    %209 = arith.mulf %206, %170 : vector<8x16xf32>
    %210 = arith.mulf %205, %207 : vector<8x16xf32>
    %211 = arith.addf %209, %210 : vector<8x16xf32>
    %212 = math.tanh %211 : vector<8x16xf32>
    %213 = arith.mulf %208, %212 : vector<8x16xf32>
    %214 = vector.extract_strided_slice %20 {offsets = [40, 0], sizes = [8, 64], strides = [1, 1]} : vector<64x64xf32> to vector<8x64xf32>
    %215 = arith.truncf %191 : vector<8x16xf32> to vector<8x16xbf16>
    %cst_58 = arith.constant dense<0.000000e+00> : vector<8x64xf32>
    %216 = tpu.matmul %215, %1, %cst_58 {dimension_numbers = #tpu.dot_dimension_numbers<[1], [0], [0], [1], [0, 0, 1, 1], [], []>} : vector<8x16xbf16>, vector<16x64xbf16>, vector<8x64xf32> -> vector<8x64xf32>
    %217 = arith.addf %214, %216 : vector<8x64xf32>
    %218 = arith.negf %217 : vector<8x64xf32>
    %219 = math.exp %218 : vector<8x64xf32>
    %cst_59 = arith.constant 1.000000e+00 : f32
    %220 = vector.broadcast %cst_59 : f32 to vector<8x64xf32>
    %221 = arith.addf %220, %219 : vector<8x64xf32>
    %222 = arith.divf %220, %221 : vector<8x64xf32>
    %223 = math.tanh %217 : vector<8x64xf32>
    %224 = vector.extract_strided_slice %222 {offsets = [0, 0], sizes = [8, 16], strides = [1, 1]} : vector<8x64xf32> to vector<8x16xf32>
    %225 = vector.extract_strided_slice %222 {offsets = [0, 16], sizes = [8, 16], strides = [1, 1]} : vector<8x64xf32> to vector<8x16xf32>
    %226 = vector.extract_strided_slice %223 {offsets = [0, 32], sizes = [8, 16], strides = [1, 1]} : vector<8x64xf32> to vector<8x16xf32>
    %227 = vector.extract_strided_slice %222 {offsets = [0, 48], sizes = [8, 16], strides = [1, 1]} : vector<8x64xf32> to vector<8x16xf32>
    %228 = arith.mulf %225, %189 : vector<8x16xf32>
    %229 = arith.mulf %224, %226 : vector<8x16xf32>
    %230 = arith.addf %228, %229 : vector<8x16xf32>
    %231 = math.tanh %230 : vector<8x16xf32>
    %232 = arith.mulf %227, %231 : vector<8x16xf32>
    %233 = arith.truncf %232 : vector<8x16xf32> to vector<8x16xbf16>
    %cst_60 = arith.constant dense<0.000000e+00> : vector<8x64xf32>
    %234 = tpu.matmul %233, %3, %cst_60 {dimension_numbers = #tpu.dot_dimension_numbers<[1], [0], [0], [1], [0, 0, 1, 1], [], []>} : vector<8x16xbf16>, vector<16x64xbf16>, vector<8x64xf32> -> vector<8x64xf32>
    %235 = vector.broadcast %5 : vector<1x64xf32> to vector<8x64xf32>
    %236 = arith.addf %234, %235 : vector<8x64xf32>
    %237 = arith.truncf %213 : vector<8x16xf32> to vector<8x16xbf16>
    %cst_61 = arith.constant dense<0.000000e+00> : vector<8x64xf32>
    %238 = tpu.matmul %237, %4, %cst_61 {dimension_numbers = #tpu.dot_dimension_numbers<[1], [0], [0], [1], [0, 0, 1, 1], [], []>} : vector<8x16xbf16>, vector<16x64xbf16>, vector<8x64xf32> -> vector<8x64xf32>
    %239 = arith.addf %236, %238 : vector<8x64xf32>
    %240 = arith.negf %239 : vector<8x64xf32>
    %241 = math.exp %240 : vector<8x64xf32>
    %cst_62 = arith.constant 1.000000e+00 : f32
    %242 = vector.broadcast %cst_62 : f32 to vector<8x64xf32>
    %243 = arith.addf %242, %241 : vector<8x64xf32>
    %244 = arith.divf %242, %243 : vector<8x64xf32>
    %245 = math.tanh %239 : vector<8x64xf32>
    %246 = vector.extract_strided_slice %244 {offsets = [0, 0], sizes = [8, 16], strides = [1, 1]} : vector<8x64xf32> to vector<8x16xf32>
    %247 = vector.extract_strided_slice %244 {offsets = [0, 16], sizes = [8, 16], strides = [1, 1]} : vector<8x64xf32> to vector<8x16xf32>
    %248 = vector.extract_strided_slice %245 {offsets = [0, 32], sizes = [8, 16], strides = [1, 1]} : vector<8x64xf32> to vector<8x16xf32>
    %249 = vector.extract_strided_slice %244 {offsets = [0, 48], sizes = [8, 16], strides = [1, 1]} : vector<8x64xf32> to vector<8x16xf32>
    %250 = arith.mulf %247, %211 : vector<8x16xf32>
    %251 = arith.mulf %246, %248 : vector<8x16xf32>
    %252 = arith.addf %250, %251 : vector<8x16xf32>
    %253 = math.tanh %252 : vector<8x16xf32>
    %254 = arith.mulf %249, %253 : vector<8x16xf32>
    %255 = vector.extract_strided_slice %20 {offsets = [48, 0], sizes = [8, 64], strides = [1, 1]} : vector<64x64xf32> to vector<8x64xf32>
    %256 = arith.truncf %232 : vector<8x16xf32> to vector<8x16xbf16>
    %cst_63 = arith.constant dense<0.000000e+00> : vector<8x64xf32>
    %257 = tpu.matmul %256, %1, %cst_63 {dimension_numbers = #tpu.dot_dimension_numbers<[1], [0], [0], [1], [0, 0, 1, 1], [], []>} : vector<8x16xbf16>, vector<16x64xbf16>, vector<8x64xf32> -> vector<8x64xf32>
    %258 = arith.addf %255, %257 : vector<8x64xf32>
    %259 = arith.negf %258 : vector<8x64xf32>
    %260 = math.exp %259 : vector<8x64xf32>
    %cst_64 = arith.constant 1.000000e+00 : f32
    %261 = vector.broadcast %cst_64 : f32 to vector<8x64xf32>
    %262 = arith.addf %261, %260 : vector<8x64xf32>
    %263 = arith.divf %261, %262 : vector<8x64xf32>
    %264 = math.tanh %258 : vector<8x64xf32>
    %265 = vector.extract_strided_slice %263 {offsets = [0, 0], sizes = [8, 16], strides = [1, 1]} : vector<8x64xf32> to vector<8x16xf32>
    %266 = vector.extract_strided_slice %263 {offsets = [0, 16], sizes = [8, 16], strides = [1, 1]} : vector<8x64xf32> to vector<8x16xf32>
    %267 = vector.extract_strided_slice %264 {offsets = [0, 32], sizes = [8, 16], strides = [1, 1]} : vector<8x64xf32> to vector<8x16xf32>
    %268 = vector.extract_strided_slice %263 {offsets = [0, 48], sizes = [8, 16], strides = [1, 1]} : vector<8x64xf32> to vector<8x16xf32>
    %269 = arith.mulf %266, %230 : vector<8x16xf32>
    %270 = arith.mulf %265, %267 : vector<8x16xf32>
    %271 = arith.addf %269, %270 : vector<8x16xf32>
    %272 = math.tanh %271 : vector<8x16xf32>
    %273 = arith.mulf %268, %272 : vector<8x16xf32>
    %274 = arith.truncf %273 : vector<8x16xf32> to vector<8x16xbf16>
    %cst_65 = arith.constant dense<0.000000e+00> : vector<8x64xf32>
    %275 = tpu.matmul %274, %3, %cst_65 {dimension_numbers = #tpu.dot_dimension_numbers<[1], [0], [0], [1], [0, 0, 1, 1], [], []>} : vector<8x16xbf16>, vector<16x64xbf16>, vector<8x64xf32> -> vector<8x64xf32>
    %276 = vector.broadcast %5 : vector<1x64xf32> to vector<8x64xf32>
    %277 = arith.addf %275, %276 : vector<8x64xf32>
    %278 = arith.truncf %254 : vector<8x16xf32> to vector<8x16xbf16>
    %cst_66 = arith.constant dense<0.000000e+00> : vector<8x64xf32>
    %279 = tpu.matmul %278, %4, %cst_66 {dimension_numbers = #tpu.dot_dimension_numbers<[1], [0], [0], [1], [0, 0, 1, 1], [], []>} : vector<8x16xbf16>, vector<16x64xbf16>, vector<8x64xf32> -> vector<8x64xf32>
    %280 = arith.addf %277, %279 : vector<8x64xf32>
    %281 = arith.negf %280 : vector<8x64xf32>
    %282 = math.exp %281 : vector<8x64xf32>
    %cst_67 = arith.constant 1.000000e+00 : f32
    %283 = vector.broadcast %cst_67 : f32 to vector<8x64xf32>
    %284 = arith.addf %283, %282 : vector<8x64xf32>
    %285 = arith.divf %283, %284 : vector<8x64xf32>
    %286 = math.tanh %280 : vector<8x64xf32>
    %287 = vector.extract_strided_slice %285 {offsets = [0, 0], sizes = [8, 16], strides = [1, 1]} : vector<8x64xf32> to vector<8x16xf32>
    %288 = vector.extract_strided_slice %285 {offsets = [0, 16], sizes = [8, 16], strides = [1, 1]} : vector<8x64xf32> to vector<8x16xf32>
    %289 = vector.extract_strided_slice %286 {offsets = [0, 32], sizes = [8, 16], strides = [1, 1]} : vector<8x64xf32> to vector<8x16xf32>
    %290 = vector.extract_strided_slice %285 {offsets = [0, 48], sizes = [8, 16], strides = [1, 1]} : vector<8x64xf32> to vector<8x16xf32>
    %291 = arith.mulf %288, %252 : vector<8x16xf32>
    %292 = arith.mulf %287, %289 : vector<8x16xf32>
    %293 = arith.addf %291, %292 : vector<8x16xf32>
    %294 = math.tanh %293 : vector<8x16xf32>
    %295 = arith.mulf %290, %294 : vector<8x16xf32>
    %296 = vector.extract_strided_slice %20 {offsets = [56, 0], sizes = [8, 64], strides = [1, 1]} : vector<64x64xf32> to vector<8x64xf32>
    %297 = arith.truncf %273 : vector<8x16xf32> to vector<8x16xbf16>
    %cst_68 = arith.constant dense<0.000000e+00> : vector<8x64xf32>
    %298 = tpu.matmul %297, %1, %cst_68 {dimension_numbers = #tpu.dot_dimension_numbers<[1], [0], [0], [1], [0, 0, 1, 1], [], []>} : vector<8x16xbf16>, vector<16x64xbf16>, vector<8x64xf32> -> vector<8x64xf32>
    %299 = arith.addf %296, %298 : vector<8x64xf32>
    %300 = arith.negf %299 : vector<8x64xf32>
    %301 = math.exp %300 : vector<8x64xf32>
    %cst_69 = arith.constant 1.000000e+00 : f32
    %302 = vector.broadcast %cst_69 : f32 to vector<8x64xf32>
    %303 = arith.addf %302, %301 : vector<8x64xf32>
    %304 = arith.divf %302, %303 : vector<8x64xf32>
    %305 = math.tanh %299 : vector<8x64xf32>
    %306 = vector.extract_strided_slice %304 {offsets = [0, 0], sizes = [8, 16], strides = [1, 1]} : vector<8x64xf32> to vector<8x16xf32>
    %307 = vector.extract_strided_slice %304 {offsets = [0, 16], sizes = [8, 16], strides = [1, 1]} : vector<8x64xf32> to vector<8x16xf32>
    %308 = vector.extract_strided_slice %305 {offsets = [0, 32], sizes = [8, 16], strides = [1, 1]} : vector<8x64xf32> to vector<8x16xf32>
    %309 = vector.extract_strided_slice %304 {offsets = [0, 48], sizes = [8, 16], strides = [1, 1]} : vector<8x64xf32> to vector<8x16xf32>
    %310 = arith.mulf %307, %271 : vector<8x16xf32>
    %311 = arith.mulf %306, %308 : vector<8x16xf32>
    %312 = arith.addf %310, %311 : vector<8x16xf32>
    %313 = math.tanh %312 : vector<8x16xf32>
    %314 = arith.mulf %309, %313 : vector<8x16xf32>
    %315 = arith.truncf %314 : vector<8x16xf32> to vector<8x16xbf16>
    %cst_70 = arith.constant dense<0.000000e+00> : vector<8x64xf32>
    %316 = tpu.matmul %315, %3, %cst_70 {dimension_numbers = #tpu.dot_dimension_numbers<[1], [0], [0], [1], [0, 0, 1, 1], [], []>} : vector<8x16xbf16>, vector<16x64xbf16>, vector<8x64xf32> -> vector<8x64xf32>
    %317 = vector.broadcast %5 : vector<1x64xf32> to vector<8x64xf32>
    %318 = arith.addf %316, %317 : vector<8x64xf32>
    %319 = arith.truncf %295 : vector<8x16xf32> to vector<8x16xbf16>
    %cst_71 = arith.constant dense<0.000000e+00> : vector<8x64xf32>
    %320 = tpu.matmul %319, %4, %cst_71 {dimension_numbers = #tpu.dot_dimension_numbers<[1], [0], [0], [1], [0, 0, 1, 1], [], []>} : vector<8x16xbf16>, vector<16x64xbf16>, vector<8x64xf32> -> vector<8x64xf32>
    %321 = arith.addf %318, %320 : vector<8x64xf32>
    %322 = arith.negf %321 : vector<8x64xf32>
    %323 = math.exp %322 : vector<8x64xf32>
    %cst_72 = arith.constant 1.000000e+00 : f32
    %324 = vector.broadcast %cst_72 : f32 to vector<8x64xf32>
    %325 = arith.addf %324, %323 : vector<8x64xf32>
    %326 = arith.divf %324, %325 : vector<8x64xf32>
    %327 = math.tanh %321 : vector<8x64xf32>
    %328 = vector.extract_strided_slice %326 {offsets = [0, 0], sizes = [8, 16], strides = [1, 1]} : vector<8x64xf32> to vector<8x16xf32>
    %329 = vector.extract_strided_slice %326 {offsets = [0, 16], sizes = [8, 16], strides = [1, 1]} : vector<8x64xf32> to vector<8x16xf32>
    %330 = vector.extract_strided_slice %327 {offsets = [0, 32], sizes = [8, 16], strides = [1, 1]} : vector<8x64xf32> to vector<8x16xf32>
    %331 = vector.extract_strided_slice %326 {offsets = [0, 48], sizes = [8, 16], strides = [1, 1]} : vector<8x64xf32> to vector<8x16xf32>
    %332 = arith.mulf %329, %293 : vector<8x16xf32>
    %333 = arith.mulf %328, %330 : vector<8x16xf32>
    %334 = arith.addf %332, %333 : vector<8x16xf32>
    %335 = math.tanh %334 : vector<8x16xf32>
    %336 = arith.mulf %331, %335 : vector<8x16xf32>
    %337 = arith.truncf %336 : vector<8x16xf32> to vector<8x16xbf16>
    %cst_73 = arith.constant dense<0.000000e+00> : vector<8x8xf32>
    %338 = tpu.matmul %337, %11, %cst_73 {dimension_numbers = #tpu.dot_dimension_numbers<[1], [0], [0], [1], [0, 0, 1, 1], [], []>} : vector<8x16xbf16>, vector<16x8xbf16>, vector<8x8xf32> -> vector<8x8xf32>
    %339 = vector.broadcast %12 : vector<1x8xf32> to vector<8x8xf32>
    %340 = arith.addf %338, %339 : vector<8x8xf32>
    %341 = arith.truncf %340 : vector<8x8xf32> to vector<8x8xbf16>
    %cst_74 = arith.constant dense<0.000000e+00> : vector<8x16xf32>
    %342 = tpu.matmul %341, %13, %cst_74 {dimension_numbers = #tpu.dot_dimension_numbers<[1], [0], [0], [1], [0, 0, 1, 1], [], []>} : vector<8x8xbf16>, vector<8x16xbf16>, vector<8x16xf32> -> vector<8x16xf32>
    %343 = vector.broadcast %14 : vector<1x16xf32> to vector<8x16xf32>
    %344 = arith.addf %342, %343 : vector<8x16xf32>
    %345 = vector.shape_cast %7 : vector<1x64xf32> to vector<1x64xf32>
    %346 = vector.broadcast %345 : vector<1x64xf32> to vector<8x64xf32>
    %347 = arith.truncf %344 : vector<8x16xf32> to vector<8x16xbf16>
    %cst_75 = arith.constant dense<0.000000e+00> : vector<8x64xf32>
    %348 = tpu.matmul %347, %6, %cst_75 {dimension_numbers = #tpu.dot_dimension_numbers<[1], [0], [0], [1], [0, 0, 1, 1], [], []>} : vector<8x16xbf16>, vector<16x64xbf16>, vector<8x64xf32> -> vector<8x64xf32>
    %349 = arith.addf %346, %348 : vector<8x64xf32>
    %350 = arith.negf %349 : vector<8x64xf32>
    %351 = math.exp %350 : vector<8x64xf32>
    %cst_76 = arith.constant 1.000000e+00 : f32
    %352 = vector.broadcast %cst_76 : f32 to vector<8x64xf32>
    %353 = arith.addf %352, %351 : vector<8x64xf32>
    %354 = arith.divf %352, %353 : vector<8x64xf32>
    %355 = math.tanh %349 : vector<8x64xf32>
    %356 = vector.extract_strided_slice %354 {offsets = [0, 0], sizes = [8, 16], strides = [1, 1]} : vector<8x64xf32> to vector<8x16xf32>
    %357 = vector.extract_strided_slice %355 {offsets = [0, 32], sizes = [8, 16], strides = [1, 1]} : vector<8x64xf32> to vector<8x16xf32>
    %358 = vector.extract_strided_slice %354 {offsets = [0, 48], sizes = [8, 16], strides = [1, 1]} : vector<8x64xf32> to vector<8x16xf32>
    %359 = arith.mulf %356, %357 : vector<8x16xf32>
    %360 = math.tanh %359 : vector<8x16xf32>
    %361 = arith.mulf %358, %360 : vector<8x16xf32>
    %362 = arith.truncf %361 : vector<8x16xf32> to vector<8x16xbf16>
    %cst_77 = arith.constant dense<0.000000e+00> : vector<8x64xf32>
    %363 = tpu.matmul %362, %8, %cst_77 {dimension_numbers = #tpu.dot_dimension_numbers<[1], [0], [0], [1], [0, 0, 1, 1], [], []>} : vector<8x16xbf16>, vector<16x64xbf16>, vector<8x64xf32> -> vector<8x64xf32>
    %364 = vector.broadcast %10 : vector<1x64xf32> to vector<8x64xf32>
    %365 = arith.addf %363, %364 : vector<8x64xf32>
    %366 = arith.truncf %344 : vector<8x16xf32> to vector<8x16xbf16>
    %cst_78 = arith.constant dense<0.000000e+00> : vector<8x64xf32>
    %367 = tpu.matmul %366, %9, %cst_78 {dimension_numbers = #tpu.dot_dimension_numbers<[1], [0], [0], [1], [0, 0, 1, 1], [], []>} : vector<8x16xbf16>, vector<16x64xbf16>, vector<8x64xf32> -> vector<8x64xf32>
    %368 = arith.addf %365, %367 : vector<8x64xf32>
    %369 = arith.negf %368 : vector<8x64xf32>
    %370 = math.exp %369 : vector<8x64xf32>
    %cst_79 = arith.constant 1.000000e+00 : f32
    %371 = vector.broadcast %cst_79 : f32 to vector<8x64xf32>
    %372 = arith.addf %371, %370 : vector<8x64xf32>
    %373 = arith.divf %371, %372 : vector<8x64xf32>
    %374 = math.tanh %368 : vector<8x64xf32>
    %375 = vector.extract_strided_slice %373 {offsets = [0, 0], sizes = [8, 16], strides = [1, 1]} : vector<8x64xf32> to vector<8x16xf32>
    %376 = vector.extract_strided_slice %374 {offsets = [0, 32], sizes = [8, 16], strides = [1, 1]} : vector<8x64xf32> to vector<8x16xf32>
    %377 = vector.extract_strided_slice %373 {offsets = [0, 48], sizes = [8, 16], strides = [1, 1]} : vector<8x64xf32> to vector<8x16xf32>
    %378 = arith.mulf %375, %376 : vector<8x16xf32>
    %379 = math.tanh %378 : vector<8x16xf32>
    %380 = arith.mulf %377, %379 : vector<8x16xf32>
    %c0_80 = arith.constant 0 : index
    %c0_81 = arith.constant 0 : index
    %381 = vector.load %arg20[%c0_80, %c0_81] : memref<64x16xf32, #tpu.memory_space<vmem>>, vector<8x16xf32>
    tpu.vector_store %arg20[%c0_80, %c0_81], %380 {strides = array<i32>} : memref<64x16xf32, #tpu.memory_space<vmem>>, vector<8x16xf32>,
    %382 = arith.truncf %361 : vector<8x16xf32> to vector<8x16xbf16>
    %cst_82 = arith.constant dense<0.000000e+00> : vector<8x64xf32>
    %383 = tpu.matmul %382, %6, %cst_82 {dimension_numbers = #tpu.dot_dimension_numbers<[1], [0], [0], [1], [0, 0, 1, 1], [], []>} : vector<8x16xbf16>, vector<16x64xbf16>, vector<8x64xf32> -> vector<8x64xf32>
    %384 = arith.addf %346, %383 : vector<8x64xf32>
    %385 = arith.negf %384 : vector<8x64xf32>
    %386 = math.exp %385 : vector<8x64xf32>
    %cst_83 = arith.constant 1.000000e+00 : f32
    %387 = vector.broadcast %cst_83 : f32 to vector<8x64xf32>
    %388 = arith.addf %387, %386 : vector<8x64xf32>
    %389 = arith.divf %387, %388 : vector<8x64xf32>
    %390 = math.tanh %384 : vector<8x64xf32>
    %391 = vector.extract_strided_slice %389 {offsets = [0, 0], sizes = [8, 16], strides = [1, 1]} : vector<8x64xf32> to vector<8x16xf32>
    %392 = vector.extract_strided_slice %389 {offsets = [0, 16], sizes = [8, 16], strides = [1, 1]} : vector<8x64xf32> to vector<8x16xf32>
    %393 = vector.extract_strided_slice %390 {offsets = [0, 32], sizes = [8, 16], strides = [1, 1]} : vector<8x64xf32> to vector<8x16xf32>
    %394 = vector.extract_strided_slice %389 {offsets = [0, 48], sizes = [8, 16], strides = [1, 1]} : vector<8x64xf32> to vector<8x16xf32>
    %395 = arith.mulf %392, %359 : vector<8x16xf32>
    %396 = arith.mulf %391, %393 : vector<8x16xf32>
    %397 = arith.addf %395, %396 : vector<8x16xf32>
    %398 = math.tanh %397 : vector<8x16xf32>
    %399 = arith.mulf %394, %398 : vector<8x16xf32>
    %400 = arith.truncf %399 : vector<8x16xf32> to vector<8x16xbf16>
    %cst_84 = arith.constant dense<0.000000e+00> : vector<8x64xf32>
    %401 = tpu.matmul %400, %8, %cst_84 {dimension_numbers = #tpu.dot_dimension_numbers<[1], [0], [0], [1], [0, 0, 1, 1], [], []>} : vector<8x16xbf16>, vector<16x64xbf16>, vector<8x64xf32> -> vector<8x64xf32>
    %402 = vector.broadcast %10 : vector<1x64xf32> to vector<8x64xf32>
    %403 = arith.addf %401, %402 : vector<8x64xf32>
    %404 = arith.truncf %380 : vector<8x16xf32> to vector<8x16xbf16>
    %cst_85 = arith.constant dense<0.000000e+00> : vector<8x64xf32>
    %405 = tpu.matmul %404, %9, %cst_85 {dimension_numbers = #tpu.dot_dimension_numbers<[1], [0], [0], [1], [0, 0, 1, 1], [], []>} : vector<8x16xbf16>, vector<16x64xbf16>, vector<8x64xf32> -> vector<8x64xf32>
    %406 = arith.addf %403, %405 : vector<8x64xf32>
    %407 = arith.negf %406 : vector<8x64xf32>
    %408 = math.exp %407 : vector<8x64xf32>
    %cst_86 = arith.constant 1.000000e+00 : f32
    %409 = vector.broadcast %cst_86 : f32 to vector<8x64xf32>
    %410 = arith.addf %409, %408 : vector<8x64xf32>
    %411 = arith.divf %409, %410 : vector<8x64xf32>
    %412 = math.tanh %406 : vector<8x64xf32>
    %413 = vector.extract_strided_slice %411 {offsets = [0, 0], sizes = [8, 16], strides = [1, 1]} : vector<8x64xf32> to vector<8x16xf32>
    %414 = vector.extract_strided_slice %411 {offsets = [0, 16], sizes = [8, 16], strides = [1, 1]} : vector<8x64xf32> to vector<8x16xf32>
    %415 = vector.extract_strided_slice %412 {offsets = [0, 32], sizes = [8, 16], strides = [1, 1]} : vector<8x64xf32> to vector<8x16xf32>
    %416 = vector.extract_strided_slice %411 {offsets = [0, 48], sizes = [8, 16], strides = [1, 1]} : vector<8x64xf32> to vector<8x16xf32>
    %417 = arith.mulf %414, %378 : vector<8x16xf32>
    %418 = arith.mulf %413, %415 : vector<8x16xf32>
    %419 = arith.addf %417, %418 : vector<8x16xf32>
    %420 = math.tanh %419 : vector<8x16xf32>
    %421 = arith.mulf %416, %420 : vector<8x16xf32>
    %c8 = arith.constant 8 : index
    %c0_87 = arith.constant 0 : index
    %422 = vector.load %arg20[%c8, %c0_87] : memref<64x16xf32, #tpu.memory_space<vmem>>, vector<8x16xf32>
    tpu.vector_store %arg20[%c8, %c0_87], %421 {strides = array<i32>} : memref<64x16xf32, #tpu.memory_space<vmem>>, vector<8x16xf32>,
    %423 = arith.truncf %399 : vector<8x16xf32> to vector<8x16xbf16>
    %cst_88 = arith.constant dense<0.000000e+00> : vector<8x64xf32>
    %424 = tpu.matmul %423, %6, %cst_88 {dimension_numbers = #tpu.dot_dimension_numbers<[1], [0], [0], [1], [0, 0, 1, 1], [], []>} : vector<8x16xbf16>, vector<16x64xbf16>, vector<8x64xf32> -> vector<8x64xf32>
    %425 = arith.addf %346, %424 : vector<8x64xf32>
    %426 = arith.negf %425 : vector<8x64xf32>
    %427 = math.exp %426 : vector<8x64xf32>
    %cst_89 = arith.constant 1.000000e+00 : f32
    %428 = vector.broadcast %cst_89 : f32 to vector<8x64xf32>
    %429 = arith.addf %428, %427 : vector<8x64xf32>
    %430 = arith.divf %428, %429 : vector<8x64xf32>
    %431 = math.tanh %425 : vector<8x64xf32>
    %432 = vector.extract_strided_slice %430 {offsets = [0, 0], sizes = [8, 16], strides = [1, 1]} : vector<8x64xf32> to vector<8x16xf32>
    %433 = vector.extract_strided_slice %430 {offsets = [0, 16], sizes = [8, 16], strides = [1, 1]} : vector<8x64xf32> to vector<8x16xf32>
    %434 = vector.extract_strided_slice %431 {offsets = [0, 32], sizes = [8, 16], strides = [1, 1]} : vector<8x64xf32> to vector<8x16xf32>
    %435 = vector.extract_strided_slice %430 {offsets = [0, 48], sizes = [8, 16], strides = [1, 1]} : vector<8x64xf32> to vector<8x16xf32>
    %436 = arith.mulf %433, %397 : vector<8x16xf32>
    %437 = arith.mulf %432, %434 : vector<8x16xf32>
    %438 = arith.addf %436, %437 : vector<8x16xf32>
    %439 = math.tanh %438 : vector<8x16xf32>
    %440 = arith.mulf %435, %439 : vector<8x16xf32>
    %441 = arith.truncf %440 : vector<8x16xf32> to vector<8x16xbf16>
    %cst_90 = arith.constant dense<0.000000e+00> : vector<8x64xf32>
    %442 = tpu.matmul %441, %8, %cst_90 {dimension_numbers = #tpu.dot_dimension_numbers<[1], [0], [0], [1], [0, 0, 1, 1], [], []>} : vector<8x16xbf16>, vector<16x64xbf16>, vector<8x64xf32> -> vector<8x64xf32>
    %443 = vector.broadcast %10 : vector<1x64xf32> to vector<8x64xf32>
    %444 = arith.addf %442, %443 : vector<8x64xf32>
    %445 = arith.truncf %421 : vector<8x16xf32> to vector<8x16xbf16>
    %cst_91 = arith.constant dense<0.000000e+00> : vector<8x64xf32>
    %446 = tpu.matmul %445, %9, %cst_91 {dimension_numbers = #tpu.dot_dimension_numbers<[1], [0], [0], [1], [0, 0, 1, 1], [], []>} : vector<8x16xbf16>, vector<16x64xbf16>, vector<8x64xf32> -> vector<8x64xf32>
    %447 = arith.addf %444, %446 : vector<8x64xf32>
    %448 = arith.negf %447 : vector<8x64xf32>
    %449 = math.exp %448 : vector<8x64xf32>
    %cst_92 = arith.constant 1.000000e+00 : f32
    %450 = vector.broadcast %cst_92 : f32 to vector<8x64xf32>
    %451 = arith.addf %450, %449 : vector<8x64xf32>
    %452 = arith.divf %450, %451 : vector<8x64xf32>
    %453 = math.tanh %447 : vector<8x64xf32>
    %454 = vector.extract_strided_slice %452 {offsets = [0, 0], sizes = [8, 16], strides = [1, 1]} : vector<8x64xf32> to vector<8x16xf32>
    %455 = vector.extract_strided_slice %452 {offsets = [0, 16], sizes = [8, 16], strides = [1, 1]} : vector<8x64xf32> to vector<8x16xf32>
    %456 = vector.extract_strided_slice %453 {offsets = [0, 32], sizes = [8, 16], strides = [1, 1]} : vector<8x64xf32> to vector<8x16xf32>
    %457 = vector.extract_strided_slice %452 {offsets = [0, 48], sizes = [8, 16], strides = [1, 1]} : vector<8x64xf32> to vector<8x16xf32>
    %458 = arith.mulf %455, %419 : vector<8x16xf32>
    %459 = arith.mulf %454, %456 : vector<8x16xf32>
    %460 = arith.addf %458, %459 : vector<8x16xf32>
    %461 = math.tanh %460 : vector<8x16xf32>
    %462 = arith.mulf %457, %461 : vector<8x16xf32>
    %c16 = arith.constant 16 : index
    %c0_93 = arith.constant 0 : index
    %463 = vector.load %arg20[%c16, %c0_93] : memref<64x16xf32, #tpu.memory_space<vmem>>, vector<8x16xf32>
    tpu.vector_store %arg20[%c16, %c0_93], %462 {strides = array<i32>} : memref<64x16xf32, #tpu.memory_space<vmem>>, vector<8x16xf32>,
    %464 = arith.truncf %440 : vector<8x16xf32> to vector<8x16xbf16>
    %cst_94 = arith.constant dense<0.000000e+00> : vector<8x64xf32>
    %465 = tpu.matmul %464, %6, %cst_94 {dimension_numbers = #tpu.dot_dimension_numbers<[1], [0], [0], [1], [0, 0, 1, 1], [], []>} : vector<8x16xbf16>, vector<16x64xbf16>, vector<8x64xf32> -> vector<8x64xf32>
    %466 = arith.addf %346, %465 : vector<8x64xf32>
    %467 = arith.negf %466 : vector<8x64xf32>
    %468 = math.exp %467 : vector<8x64xf32>
    %cst_95 = arith.constant 1.000000e+00 : f32
    %469 = vector.broadcast %cst_95 : f32 to vector<8x64xf32>
    %470 = arith.addf %469, %468 : vector<8x64xf32>
    %471 = arith.divf %469, %470 : vector<8x64xf32>
    %472 = math.tanh %466 : vector<8x64xf32>
    %473 = vector.extract_strided_slice %471 {offsets = [0, 0], sizes = [8, 16], strides = [1, 1]} : vector<8x64xf32> to vector<8x16xf32>
    %474 = vector.extract_strided_slice %471 {offsets = [0, 16], sizes = [8, 16], strides = [1, 1]} : vector<8x64xf32> to vector<8x16xf32>
    %475 = vector.extract_strided_slice %472 {offsets = [0, 32], sizes = [8, 16], strides = [1, 1]} : vector<8x64xf32> to vector<8x16xf32>
    %476 = vector.extract_strided_slice %471 {offsets = [0, 48], sizes = [8, 16], strides = [1, 1]} : vector<8x64xf32> to vector<8x16xf32>
    %477 = arith.mulf %474, %438 : vector<8x16xf32>
    %478 = arith.mulf %473, %475 : vector<8x16xf32>
    %479 = arith.addf %477, %478 : vector<8x16xf32>
    %480 = math.tanh %479 : vector<8x16xf32>
    %481 = arith.mulf %476, %480 : vector<8x16xf32>
    %482 = arith.truncf %481 : vector<8x16xf32> to vector<8x16xbf16>
    %cst_96 = arith.constant dense<0.000000e+00> : vector<8x64xf32>
    %483 = tpu.matmul %482, %8, %cst_96 {dimension_numbers = #tpu.dot_dimension_numbers<[1], [0], [0], [1], [0, 0, 1, 1], [], []>} : vector<8x16xbf16>, vector<16x64xbf16>, vector<8x64xf32> -> vector<8x64xf32>
    %484 = vector.broadcast %10 : vector<1x64xf32> to vector<8x64xf32>
    %485 = arith.addf %483, %484 : vector<8x64xf32>
    %486 = arith.truncf %462 : vector<8x16xf32> to vector<8x16xbf16>
    %cst_97 = arith.constant dense<0.000000e+00> : vector<8x64xf32>
    %487 = tpu.matmul %486, %9, %cst_97 {dimension_numbers = #tpu.dot_dimension_numbers<[1], [0], [0], [1], [0, 0, 1, 1], [], []>} : vector<8x16xbf16>, vector<16x64xbf16>, vector<8x64xf32> -> vector<8x64xf32>
    %488 = arith.addf %485, %487 : vector<8x64xf32>
    %489 = arith.negf %488 : vector<8x64xf32>
    %490 = math.exp %489 : vector<8x64xf32>
    %cst_98 = arith.constant 1.000000e+00 : f32
    %491 = vector.broadcast %cst_98 : f32 to vector<8x64xf32>
    %492 = arith.addf %491, %490 : vector<8x64xf32>
    %493 = arith.divf %491, %492 : vector<8x64xf32>
    %494 = math.tanh %488 : vector<8x64xf32>
    %495 = vector.extract_strided_slice %493 {offsets = [0, 0], sizes = [8, 16], strides = [1, 1]} : vector<8x64xf32> to vector<8x16xf32>
    %496 = vector.extract_strided_slice %493 {offsets = [0, 16], sizes = [8, 16], strides = [1, 1]} : vector<8x64xf32> to vector<8x16xf32>
    %497 = vector.extract_strided_slice %494 {offsets = [0, 32], sizes = [8, 16], strides = [1, 1]} : vector<8x64xf32> to vector<8x16xf32>
    %498 = vector.extract_strided_slice %493 {offsets = [0, 48], sizes = [8, 16], strides = [1, 1]} : vector<8x64xf32> to vector<8x16xf32>
    %499 = arith.mulf %496, %460 : vector<8x16xf32>
    %500 = arith.mulf %495, %497 : vector<8x16xf32>
    %501 = arith.addf %499, %500 : vector<8x16xf32>
    %502 = math.tanh %501 : vector<8x16xf32>
    %503 = arith.mulf %498, %502 : vector<8x16xf32>
    %c24 = arith.constant 24 : index
    %c0_99 = arith.constant 0 : index
    %504 = vector.load %arg20[%c24, %c0_99] : memref<64x16xf32, #tpu.memory_space<vmem>>, vector<8x16xf32>
    tpu.vector_store %arg20[%c24, %c0_99], %503 {strides = array<i32>} : memref<64x16xf32, #tpu.memory_space<vmem>>, vector<8x16xf32>,
    %505 = arith.truncf %481 : vector<8x16xf32> to vector<8x16xbf16>
    %cst_100 = arith.constant dense<0.000000e+00> : vector<8x64xf32>
    %506 = tpu.matmul %505, %6, %cst_100 {dimension_numbers = #tpu.dot_dimension_numbers<[1], [0], [0], [1], [0, 0, 1, 1], [], []>} : vector<8x16xbf16>, vector<16x64xbf16>, vector<8x64xf32> -> vector<8x64xf32>
    %507 = arith.addf %346, %506 : vector<8x64xf32>
    %508 = arith.negf %507 : vector<8x64xf32>
    %509 = math.exp %508 : vector<8x64xf32>
    %cst_101 = arith.constant 1.000000e+00 : f32
    %510 = vector.broadcast %cst_101 : f32 to vector<8x64xf32>
    %511 = arith.addf %510, %509 : vector<8x64xf32>
    %512 = arith.divf %510, %511 : vector<8x64xf32>
    %513 = math.tanh %507 : vector<8x64xf32>
    %514 = vector.extract_strided_slice %512 {offsets = [0, 0], sizes = [8, 16], strides = [1, 1]} : vector<8x64xf32> to vector<8x16xf32>
    %515 = vector.extract_strided_slice %512 {offsets = [0, 16], sizes = [8, 16], strides = [1, 1]} : vector<8x64xf32> to vector<8x16xf32>
    %516 = vector.extract_strided_slice %513 {offsets = [0, 32], sizes = [8, 16], strides = [1, 1]} : vector<8x64xf32> to vector<8x16xf32>
    %517 = vector.extract_strided_slice %512 {offsets = [0, 48], sizes = [8, 16], strides = [1, 1]} : vector<8x64xf32> to vector<8x16xf32>
    %518 = arith.mulf %515, %479 : vector<8x16xf32>
    %519 = arith.mulf %514, %516 : vector<8x16xf32>
    %520 = arith.addf %518, %519 : vector<8x16xf32>
    %521 = math.tanh %520 : vector<8x16xf32>
    %522 = arith.mulf %517, %521 : vector<8x16xf32>
    %523 = arith.truncf %522 : vector<8x16xf32> to vector<8x16xbf16>
    %cst_102 = arith.constant dense<0.000000e+00> : vector<8x64xf32>
    %524 = tpu.matmul %523, %8, %cst_102 {dimension_numbers = #tpu.dot_dimension_numbers<[1], [0], [0], [1], [0, 0, 1, 1], [], []>} : vector<8x16xbf16>, vector<16x64xbf16>, vector<8x64xf32> -> vector<8x64xf32>
    %525 = vector.broadcast %10 : vector<1x64xf32> to vector<8x64xf32>
    %526 = arith.addf %524, %525 : vector<8x64xf32>
    %527 = arith.truncf %503 : vector<8x16xf32> to vector<8x16xbf16>
    %cst_103 = arith.constant dense<0.000000e+00> : vector<8x64xf32>
    %528 = tpu.matmul %527, %9, %cst_103 {dimension_numbers = #tpu.dot_dimension_numbers<[1], [0], [0], [1], [0, 0, 1, 1], [], []>} : vector<8x16xbf16>, vector<16x64xbf16>, vector<8x64xf32> -> vector<8x64xf32>
    %529 = arith.addf %526, %528 : vector<8x64xf32>
    %530 = arith.negf %529 : vector<8x64xf32>
    %531 = math.exp %530 : vector<8x64xf32>
    %cst_104 = arith.constant 1.000000e+00 : f32
    %532 = vector.broadcast %cst_104 : f32 to vector<8x64xf32>
    %533 = arith.addf %532, %531 : vector<8x64xf32>
    %534 = arith.divf %532, %533 : vector<8x64xf32>
    %535 = math.tanh %529 : vector<8x64xf32>
    %536 = vector.extract_strided_slice %534 {offsets = [0, 0], sizes = [8, 16], strides = [1, 1]} : vector<8x64xf32> to vector<8x16xf32>
    %537 = vector.extract_strided_slice %534 {offsets = [0, 16], sizes = [8, 16], strides = [1, 1]} : vector<8x64xf32> to vector<8x16xf32>
    %538 = vector.extract_strided_slice %535 {offsets = [0, 32], sizes = [8, 16], strides = [1, 1]} : vector<8x64xf32> to vector<8x16xf32>
    %539 = vector.extract_strided_slice %534 {offsets = [0, 48], sizes = [8, 16], strides = [1, 1]} : vector<8x64xf32> to vector<8x16xf32>
    %540 = arith.mulf %537, %501 : vector<8x16xf32>
    %541 = arith.mulf %536, %538 : vector<8x16xf32>
    %542 = arith.addf %540, %541 : vector<8x16xf32>
    %543 = math.tanh %542 : vector<8x16xf32>
    %544 = arith.mulf %539, %543 : vector<8x16xf32>
    %c32 = arith.constant 32 : index
    %c0_105 = arith.constant 0 : index
    %545 = vector.load %arg20[%c32, %c0_105] : memref<64x16xf32, #tpu.memory_space<vmem>>, vector<8x16xf32>
    tpu.vector_store %arg20[%c32, %c0_105], %544 {strides = array<i32>} : memref<64x16xf32, #tpu.memory_space<vmem>>, vector<8x16xf32>,
    %546 = arith.truncf %522 : vector<8x16xf32> to vector<8x16xbf16>
    %cst_106 = arith.constant dense<0.000000e+00> : vector<8x64xf32>
    %547 = tpu.matmul %546, %6, %cst_106 {dimension_numbers = #tpu.dot_dimension_numbers<[1], [0], [0], [1], [0, 0, 1, 1], [], []>} : vector<8x16xbf16>, vector<16x64xbf16>, vector<8x64xf32> -> vector<8x64xf32>
    %548 = arith.addf %346, %547 : vector<8x64xf32>
    %549 = arith.negf %548 : vector<8x64xf32>
    %550 = math.exp %549 : vector<8x64xf32>
    %cst_107 = arith.constant 1.000000e+00 : f32
    %551 = vector.broadcast %cst_107 : f32 to vector<8x64xf32>
    %552 = arith.addf %551, %550 : vector<8x64xf32>
    %553 = arith.divf %551, %552 : vector<8x64xf32>
    %554 = math.tanh %548 : vector<8x64xf32>
    %555 = vector.extract_strided_slice %553 {offsets = [0, 0], sizes = [8, 16], strides = [1, 1]} : vector<8x64xf32> to vector<8x16xf32>
    %556 = vector.extract_strided_slice %553 {offsets = [0, 16], sizes = [8, 16], strides = [1, 1]} : vector<8x64xf32> to vector<8x16xf32>
    %557 = vector.extract_strided_slice %554 {offsets = [0, 32], sizes = [8, 16], strides = [1, 1]} : vector<8x64xf32> to vector<8x16xf32>
    %558 = vector.extract_strided_slice %553 {offsets = [0, 48], sizes = [8, 16], strides = [1, 1]} : vector<8x64xf32> to vector<8x16xf32>
    %559 = arith.mulf %556, %520 : vector<8x16xf32>
    %560 = arith.mulf %555, %557 : vector<8x16xf32>
    %561 = arith.addf %559, %560 : vector<8x16xf32>
    %562 = math.tanh %561 : vector<8x16xf32>
    %563 = arith.mulf %558, %562 : vector<8x16xf32>
    %564 = arith.truncf %563 : vector<8x16xf32> to vector<8x16xbf16>
    %cst_108 = arith.constant dense<0.000000e+00> : vector<8x64xf32>
    %565 = tpu.matmul %564, %8, %cst_108 {dimension_numbers = #tpu.dot_dimension_numbers<[1], [0], [0], [1], [0, 0, 1, 1], [], []>} : vector<8x16xbf16>, vector<16x64xbf16>, vector<8x64xf32> -> vector<8x64xf32>
    %566 = vector.broadcast %10 : vector<1x64xf32> to vector<8x64xf32>
    %567 = arith.addf %565, %566 : vector<8x64xf32>
    %568 = arith.truncf %544 : vector<8x16xf32> to vector<8x16xbf16>
    %cst_109 = arith.constant dense<0.000000e+00> : vector<8x64xf32>
    %569 = tpu.matmul %568, %9, %cst_109 {dimension_numbers = #tpu.dot_dimension_numbers<[1], [0], [0], [1], [0, 0, 1, 1], [], []>} : vector<8x16xbf16>, vector<16x64xbf16>, vector<8x64xf32> -> vector<8x64xf32>
    %570 = arith.addf %567, %569 : vector<8x64xf32>
    %571 = arith.negf %570 : vector<8x64xf32>
    %572 = math.exp %571 : vector<8x64xf32>
    %cst_110 = arith.constant 1.000000e+00 : f32
    %573 = vector.broadcast %cst_110 : f32 to vector<8x64xf32>
    %574 = arith.addf %573, %572 : vector<8x64xf32>
    %575 = arith.divf %573, %574 : vector<8x64xf32>
    %576 = math.tanh %570 : vector<8x64xf32>
    %577 = vector.extract_strided_slice %575 {offsets = [0, 0], sizes = [8, 16], strides = [1, 1]} : vector<8x64xf32> to vector<8x16xf32>
    %578 = vector.extract_strided_slice %575 {offsets = [0, 16], sizes = [8, 16], strides = [1, 1]} : vector<8x64xf32> to vector<8x16xf32>
    %579 = vector.extract_strided_slice %576 {offsets = [0, 32], sizes = [8, 16], strides = [1, 1]} : vector<8x64xf32> to vector<8x16xf32>
    %580 = vector.extract_strided_slice %575 {offsets = [0, 48], sizes = [8, 16], strides = [1, 1]} : vector<8x64xf32> to vector<8x16xf32>
    %581 = arith.mulf %578, %542 : vector<8x16xf32>
    %582 = arith.mulf %577, %579 : vector<8x16xf32>
    %583 = arith.addf %581, %582 : vector<8x16xf32>
    %584 = math.tanh %583 : vector<8x16xf32>
    %585 = arith.mulf %580, %584 : vector<8x16xf32>
    %c40 = arith.constant 40 : index
    %c0_111 = arith.constant 0 : index
    %586 = vector.load %arg20[%c40, %c0_111] : memref<64x16xf32, #tpu.memory_space<vmem>>, vector<8x16xf32>
    tpu.vector_store %arg20[%c40, %c0_111], %585 {strides = array<i32>} : memref<64x16xf32, #tpu.memory_space<vmem>>, vector<8x16xf32>,
    %587 = arith.truncf %563 : vector<8x16xf32> to vector<8x16xbf16>
    %cst_112 = arith.constant dense<0.000000e+00> : vector<8x64xf32>
    %588 = tpu.matmul %587, %6, %cst_112 {dimension_numbers = #tpu.dot_dimension_numbers<[1], [0], [0], [1], [0, 0, 1, 1], [], []>} : vector<8x16xbf16>, vector<16x64xbf16>, vector<8x64xf32> -> vector<8x64xf32>
    %589 = arith.addf %346, %588 : vector<8x64xf32>
    %590 = arith.negf %589 : vector<8x64xf32>
    %591 = math.exp %590 : vector<8x64xf32>
    %cst_113 = arith.constant 1.000000e+00 : f32
    %592 = vector.broadcast %cst_113 : f32 to vector<8x64xf32>
    %593 = arith.addf %592, %591 : vector<8x64xf32>
    %594 = arith.divf %592, %593 : vector<8x64xf32>
    %595 = math.tanh %589 : vector<8x64xf32>
    %596 = vector.extract_strided_slice %594 {offsets = [0, 0], sizes = [8, 16], strides = [1, 1]} : vector<8x64xf32> to vector<8x16xf32>
    %597 = vector.extract_strided_slice %594 {offsets = [0, 16], sizes = [8, 16], strides = [1, 1]} : vector<8x64xf32> to vector<8x16xf32>
    %598 = vector.extract_strided_slice %595 {offsets = [0, 32], sizes = [8, 16], strides = [1, 1]} : vector<8x64xf32> to vector<8x16xf32>
    %599 = vector.extract_strided_slice %594 {offsets = [0, 48], sizes = [8, 16], strides = [1, 1]} : vector<8x64xf32> to vector<8x16xf32>
    %600 = arith.mulf %597, %561 : vector<8x16xf32>
    %601 = arith.mulf %596, %598 : vector<8x16xf32>
    %602 = arith.addf %600, %601 : vector<8x16xf32>
    %603 = math.tanh %602 : vector<8x16xf32>
    %604 = arith.mulf %599, %603 : vector<8x16xf32>
    %605 = arith.truncf %604 : vector<8x16xf32> to vector<8x16xbf16>
    %cst_114 = arith.constant dense<0.000000e+00> : vector<8x64xf32>
    %606 = tpu.matmul %605, %8, %cst_114 {dimension_numbers = #tpu.dot_dimension_numbers<[1], [0], [0], [1], [0, 0, 1, 1], [], []>} : vector<8x16xbf16>, vector<16x64xbf16>, vector<8x64xf32> -> vector<8x64xf32>
    %607 = vector.broadcast %10 : vector<1x64xf32> to vector<8x64xf32>
    %608 = arith.addf %606, %607 : vector<8x64xf32>
    %609 = arith.truncf %585 : vector<8x16xf32> to vector<8x16xbf16>
    %cst_115 = arith.constant dense<0.000000e+00> : vector<8x64xf32>
    %610 = tpu.matmul %609, %9, %cst_115 {dimension_numbers = #tpu.dot_dimension_numbers<[1], [0], [0], [1], [0, 0, 1, 1], [], []>} : vector<8x16xbf16>, vector<16x64xbf16>, vector<8x64xf32> -> vector<8x64xf32>
    %611 = arith.addf %608, %610 : vector<8x64xf32>
    %612 = arith.negf %611 : vector<8x64xf32>
    %613 = math.exp %612 : vector<8x64xf32>
    %cst_116 = arith.constant 1.000000e+00 : f32
    %614 = vector.broadcast %cst_116 : f32 to vector<8x64xf32>
    %615 = arith.addf %614, %613 : vector<8x64xf32>
    %616 = arith.divf %614, %615 : vector<8x64xf32>
    %617 = math.tanh %611 : vector<8x64xf32>
    %618 = vector.extract_strided_slice %616 {offsets = [0, 0], sizes = [8, 16], strides = [1, 1]} : vector<8x64xf32> to vector<8x16xf32>
    %619 = vector.extract_strided_slice %616 {offsets = [0, 16], sizes = [8, 16], strides = [1, 1]} : vector<8x64xf32> to vector<8x16xf32>
    %620 = vector.extract_strided_slice %617 {offsets = [0, 32], sizes = [8, 16], strides = [1, 1]} : vector<8x64xf32> to vector<8x16xf32>
    %621 = vector.extract_strided_slice %616 {offsets = [0, 48], sizes = [8, 16], strides = [1, 1]} : vector<8x64xf32> to vector<8x16xf32>
    %622 = arith.mulf %619, %583 : vector<8x16xf32>
    %623 = arith.mulf %618, %620 : vector<8x16xf32>
    %624 = arith.addf %622, %623 : vector<8x16xf32>
    %625 = math.tanh %624 : vector<8x16xf32>
    %626 = arith.mulf %621, %625 : vector<8x16xf32>
    %c48 = arith.constant 48 : index
    %c0_117 = arith.constant 0 : index
    %627 = vector.load %arg20[%c48, %c0_117] : memref<64x16xf32, #tpu.memory_space<vmem>>, vector<8x16xf32>
    tpu.vector_store %arg20[%c48, %c0_117], %626 {strides = array<i32>} : memref<64x16xf32, #tpu.memory_space<vmem>>, vector<8x16xf32>,
    %628 = arith.truncf %604 : vector<8x16xf32> to vector<8x16xbf16>
    %cst_118 = arith.constant dense<0.000000e+00> : vector<8x64xf32>
    %629 = tpu.matmul %628, %6, %cst_118 {dimension_numbers = #tpu.dot_dimension_numbers<[1], [0], [0], [1], [0, 0, 1, 1], [], []>} : vector<8x16xbf16>, vector<16x64xbf16>, vector<8x64xf32> -> vector<8x64xf32>
    %630 = arith.addf %346, %629 : vector<8x64xf32>
    %631 = arith.negf %630 : vector<8x64xf32>
    %632 = math.exp %631 : vector<8x64xf32>
    %cst_119 = arith.constant 1.000000e+00 : f32
    %633 = vector.broadcast %cst_119 : f32 to vector<8x64xf32>
    %634 = arith.addf %633, %632 : vector<8x64xf32>
    %635 = arith.divf %633, %634 : vector<8x64xf32>
    %636 = math.tanh %630 : vector<8x64xf32>
    %637 = vector.extract_strided_slice %635 {offsets = [0, 0], sizes = [8, 16], strides = [1, 1]} : vector<8x64xf32> to vector<8x16xf32>
    %638 = vector.extract_strided_slice %635 {offsets = [0, 16], sizes = [8, 16], strides = [1, 1]} : vector<8x64xf32> to vector<8x16xf32>
    %639 = vector.extract_strided_slice %636 {offsets = [0, 32], sizes = [8, 16], strides = [1, 1]} : vector<8x64xf32> to vector<8x16xf32>
    %640 = vector.extract_strided_slice %635 {offsets = [0, 48], sizes = [8, 16], strides = [1, 1]} : vector<8x64xf32> to vector<8x16xf32>
    %641 = arith.mulf %638, %602 : vector<8x16xf32>
    %642 = arith.mulf %637, %639 : vector<8x16xf32>
    %643 = arith.addf %641, %642 : vector<8x16xf32>
    %644 = math.tanh %643 : vector<8x16xf32>
    %645 = arith.mulf %640, %644 : vector<8x16xf32>
    %646 = arith.truncf %645 : vector<8x16xf32> to vector<8x16xbf16>
    %cst_120 = arith.constant dense<0.000000e+00> : vector<8x64xf32>
    %647 = tpu.matmul %646, %8, %cst_120 {dimension_numbers = #tpu.dot_dimension_numbers<[1], [0], [0], [1], [0, 0, 1, 1], [], []>} : vector<8x16xbf16>, vector<16x64xbf16>, vector<8x64xf32> -> vector<8x64xf32>
    %648 = vector.broadcast %10 : vector<1x64xf32> to vector<8x64xf32>
    %649 = arith.addf %647, %648 : vector<8x64xf32>
    %650 = arith.truncf %626 : vector<8x16xf32> to vector<8x16xbf16>
    %cst_121 = arith.constant dense<0.000000e+00> : vector<8x64xf32>
    %651 = tpu.matmul %650, %9, %cst_121 {dimension_numbers = #tpu.dot_dimension_numbers<[1], [0], [0], [1], [0, 0, 1, 1], [], []>} : vector<8x16xbf16>, vector<16x64xbf16>, vector<8x64xf32> -> vector<8x64xf32>
    %652 = arith.addf %649, %651 : vector<8x64xf32>
    %653 = arith.negf %652 : vector<8x64xf32>
    %654 = math.exp %653 : vector<8x64xf32>
    %cst_122 = arith.constant 1.000000e+00 : f32
    %655 = vector.broadcast %cst_122 : f32 to vector<8x64xf32>
    %656 = arith.addf %655, %654 : vector<8x64xf32>
    %657 = arith.divf %655, %656 : vector<8x64xf32>
    %658 = math.tanh %652 : vector<8x64xf32>
    %659 = vector.extract_strided_slice %657 {offsets = [0, 0], sizes = [8, 16], strides = [1, 1]} : vector<8x64xf32> to vector<8x16xf32>
    %660 = vector.extract_strided_slice %657 {offsets = [0, 16], sizes = [8, 16], strides = [1, 1]} : vector<8x64xf32> to vector<8x16xf32>
    %661 = vector.extract_strided_slice %658 {offsets = [0, 32], sizes = [8, 16], strides = [1, 1]} : vector<8x64xf32> to vector<8x16xf32>
    %662 = vector.extract_strided_slice %657 {offsets = [0, 48], sizes = [8, 16], strides = [1, 1]} : vector<8x64xf32> to vector<8x16xf32>
    %663 = arith.mulf %660, %624 : vector<8x16xf32>
    %664 = arith.mulf %659, %661 : vector<8x16xf32>
    %665 = arith.addf %663, %664 : vector<8x16xf32>
    %666 = math.tanh %665 : vector<8x16xf32>
    %667 = arith.mulf %662, %666 : vector<8x16xf32>
    %c56 = arith.constant 56 : index
    %c0_123 = arith.constant 0 : index
    %668 = vector.load %arg20[%c56, %c0_123] : memref<64x16xf32, #tpu.memory_space<vmem>>, vector<8x16xf32>
    tpu.vector_store %arg20[%c56, %c0_123], %667 {strides = array<i32>} : memref<64x16xf32, #tpu.memory_space<vmem>>, vector<8x16xf32>,
    %c0_124 = arith.constant 0 : index
    %c0_125 = arith.constant 0 : index
    %669 = vector.load %arg20[%c0_124, %c0_125] : memref<64x16xf32, #tpu.memory_space<vmem>>, vector<64x16xf32>
    %670 = arith.truncf %669 : vector<64x16xf32> to vector<64x16xbf16>
    %cst_126 = arith.constant dense<0.000000e+00> : vector<64x6xf32>
    %671 = tpu.matmul %670, %15, %cst_126 {dimension_numbers = #tpu.dot_dimension_numbers<[1], [0], [0], [1], [0, 0, 1, 1], [], []>} : vector<64x16xbf16>, vector<16x6xbf16>, vector<64x6xf32> -> vector<64x6xf32>
    %672 = vector.broadcast %16 : vector<1x6xf32> to vector<64x6xf32>
    %673 = arith.addf %671, %672 : vector<64x6xf32>
    %c0_127 = arith.constant 0 : index
    %c0_128 = arith.constant 0 : index
    %674 = vector.load %arg19[%c0_127, %c0_128] : memref<64x6xf32, #tpu.memory_space<vmem>>, vector<64x6xf32>
    tpu.vector_store %arg19[%c0_127, %c0_128], %673 {strides = array<i32>} : memref<64x6xf32, #tpu.memory_space<vmem>>, vector<64x6xf32>,
    return
  }
}

</mosaic_0001>

<bundles_post_ra>
// kernel: lstm_autoencoder_forward.1
= control target key start
LH: loop header
LB: loop body
LE: loop exit
PB: predicated region body
PF: predicated region fallthrough
CT: control target
= control target key end

     0   :  { %vm132_vm0 = vcmask 1042432   ;;  %vm119_vm1 = vcmask 48128   ;;  %s2820_s25 = smov 96   ;;  %s2822_s26 = smov 48   ;;  %vm209_vm6 = vcmask 130048   ;;  %s3470_s1 = inlined_call_operand.vmem [shape: bf16[6,64], index: 1, kind: input, shape index: {}]   ;;  %s3471_s7 = inlined_call_operand.vmem [shape: bf16[16,64], index: 7, kind: input, shape index: {}]   ;;  %s3472_s0 = inlined_call_operand.vmem [shape: bf16[64,6], index: 0, kind: input, shape index: {}]   ;;  %s3473_s3 = inlined_call_operand.vmem [shape: f32[1,64], index: 3, kind: input, shape index: {}]   ;;  %s3474_s2 = inlined_call_operand.vmem [shape: bf16[16,64], index: 2, kind: input, shape index: {}]   ;;  %s3475_s4 = inlined_call_operand.vmem [shape: bf16[16,64], index: 4, kind: input, shape index: {}]   ;;  %s3476_s6 = inlined_call_operand.vmem [shape: f32[1,64], index: 6, kind: input, shape index: {}]   ;;  %s3477_s5 = inlined_call_operand.vmem [shape: bf16[16,64], index: 5, kind: input, shape index: {}]   ;;  %s3478_s13 = inlined_call_operand.vmem [shape: bf16[16,8], index: 13, kind: input, shape index: {}]   ;;  %s3479_s14 = inlined_call_operand.vmem [shape: f32[1,8], index: 14, kind: input, shape index: {}]   ;;  %s3480_s15 = inlined_call_operand.vmem [shape: bf16[8,16], index: 15, kind: input, shape index: {}]   ;;  %s3481_s16 = inlined_call_operand.vmem [shape: f32[1,16], index: 16, kind: input, shape index: {}]   ;;  %s3482_s8 = inlined_call_operand.vmem [shape: bf16[16,64], index: 8, kind: input, shape index: {}]   ;;  %s3483_s9 = inlined_call_operand.vmem [shape: f32[1,64], index: 9, kind: input, shape index: {}]   ;;  %s3484_s11 = inlined_call_operand.vmem [shape: bf16[16,64], index: 11, kind: input, shape index: {}]   ;;  %s3485_s10 = inlined_call_operand.vmem [shape: bf16[16,64], index: 10, kind: input, shape index: {}]   ;;  %s3486_s12 = inlined_call_operand.vmem [shape: f32[1,64], index: 12, kind: input, shape index: {}]   ;;  %s3487_s17 = inlined_call_operand.vmem [shape: bf16[16,6], index: 17, kind: input, shape index: {}]   ;;  %s3488_s18 = inlined_call_operand.vmem [shape: f32[1,6], index: 18, kind: input, shape index: {}]   ;;  %s3489_s19 = inlined_call_operand.vmem [shape: f32[64,6], index: 19, kind: output, shape index: {}]  }
   0x1   :  { %3492 = sst [smem:[#allocation3_spill]] %s3470_s1  ;;  %v2950_v25 = vld [vmem:[%s3474_s2] sm:$0xff]  ;;  %s2823_s2 = smov 80  }
   0x2   :  { %3493 = sst [smem:[#allocation4_spill]] %s3472_s0  ;;  %v2955_v26 = vld [vmem:[%s3475_s4] sm:$0xff]  ;;  %s2824_s23 = smov 32  }
   0x3   :  { %3494 = sst [smem:[#allocation5_spill]] %s3473_s3  ;;  %s2821_s3 = smov 16   ;;  %v2976_v34 = vld [vmem:[%s3476_s6] ss:$0 sm:$0xff] }
   0x4   :  { %s3495_s20 = sld [smem:[#allocation3_spill]] }
   0x5   :  { %s3496_s22 = sld [smem:[#allocation4_spill]] }
   0x6   :  { %s3497_s24 = sld [smem:[#allocation5_spill]] }
   0xa   :  { %v63_v0 = vld [vmem:[%s3495_s20] sm:$0x7] }
   0xb   :  { %v134_v1 = vsel %vm132_vm0, %v63_v0, 0  ;;  %v2541_v2 = vld [vmem:[%s3496_s22] sm:$0xff]  ;;  %v2543_v23 = vld [vmem:[%s3496_s22 + $0x10] sm:$0xff]  ;;  %v2542_v24 = vld [vmem:[%s3496_s22 + $0x8] sm:$0xff] }
   0xc   :  { %143 = vmatpush.bf16.msra.mxu0 %v134_v1  ;;  %2546 = vmatpush.bf16.msra.mxu2 %v134_v1  ;;  %v2935_v3 = vld [vmem:[%s3497_s24] ss:$0 sm:$0xff] }
   0xd   :  { %2545 = vmatpush.bf16.msra.mxu1 %v134_v1  ;;  %2547 = vmatpush.bf16.msra.mxu3 %v134_v1 }
   0xf   :  { %2413 = vmatmul.msk.bf16.vlgmr.msra.gmra.mxu0 %vm119_vm1, %v2541_v2  ;;  %2415 = vmatmul.msk.bf16.vlgmr.msra.gmra.mxu2 %vm119_vm1, %v2543_v23  ;;  %v2544_v23 = vld [vmem:[%s3496_s22 + $0x18] sm:$0xff] }
  0x10   :  { %2414 = vmatmul.msk.bf16.vlgmr.msra.gmra.mxu1 %vm119_vm1, %v2542_v24  ;;  %270 = vmatpush.bf16.msrb.mxu2 %v2950_v25 }
  0x11   :  { %220 = vmatpush.bf16.msrb.mxu1 %v2955_v26  ;;  %332 = vmatpush.bf16.msrb.mxu3 %v2955_v26 }
  0x12   :  { %2416 = vmatmul.msk.bf16.vlgmr.msra.gmra.mxu3 %vm119_vm1, %v2544_v23 }
  0x14   :  { %413 = vmatpush.bf16.msra.mxu2 %v2950_v25 }
  0x15   :  { %471 = vmatpush.bf16.msra.mxu3 %v2955_v26 }
  0x8c   :  { %v145_v4 = vpop.f32.mrf.mxu0 }
  0x8d   :  { %v146_v5 = vadd.f32 %v2935_v3, %v145_v4  ;;  %v2967_v31 = vpop.f32.mrf.mxu1 }
  0x8f   :  { %2560 = vtanh.f32 %v146_v5  ;;  %v2417_v7 = vmul.f32 -1.442695, %v146_v5 }
  0x91   :  { %2562 = vpow2.f32 %v2417_v7 }
  0x92   :  { %v2969_v32 = vpop.f32.mrf.mxu2 }
  0x94   :  { %v147_v38 = vpop.f32.mrf.mxu0 }
  0x95   :  { %v2561_v6 = vpop.eup %2560  ;;  %v2971_v33 = vpop.f32.mrf.mxu1  ;;  %v148_v39 = vadd.f32 %v2935_v3, %v147_v38 }
  0x96   :  { %186 = vrot.lane.b32.xlu0 %v2561_v6, %s2820_s25  ;;  %v3012_v38 = vpop.f32.mrf.mxu3 }
  0x97   :  { %v2563_v8 = vpop.eup %2562 }
  0x98   :  { %v168_v9 = vadd.f32 1.0, %v2563_v8 }
  0x9a   :  { %2564 = vrcp.f32 %v168_v9  ;;  %v180_v15 = vand.u32 2147483648, %v168_v9  ;;  %vm174_vm3 = vweird.f32 %v168_v9  ;;  %v178_v16 = vand.u32 2147483647, %v168_v9  ;;  %v2978_v35 = vpop.f32.mrf.mxu2 }
  0x9c   :  { %v181_v18 = vor.u32 1.1754944e-38, %v180_v15  ;;  %vm179_vm5 = vcmp.eq.f32.partialorder %v178_v16, 8.507059e+37 }
  0xa0   :  { %v2565_v10 = vpop.eup %2564 }
  0xa1   :  { %v170_v11 = vmul.f32 %v2565_v10, %v168_v9  ;;  %vm175_vm2 = vweird.f32 %v2565_v10 }
  0xa2   :  { %vm176_vm4 = vmor %vm174_vm3, %vm175_vm2 }
  0xa3   :  { %v171_v12 = vsub.f32 1.0, %v170_v11 }
  0xa5   :  { %v172_v13 = vmul.f32 %v2565_v10, %v171_v12 }
  0xa7   :  { %v173_v14 = vadd.f32 %v2565_v10, %v172_v13 }
  0xa9   :  { %v177_v17 = vsel %vm176_vm4, %v2565_v10, %v173_v14 }
  0xaa   :  { %v182_v20 = vsel %vm179_vm5, %v181_v18, %v177_v17 }
 0x108   :  { %v187_v19 = vpop.permute.xlu0 %186 }
 0x109   :  { %v189_v21 = vmul.f32 %v187_v19, %v182_v20 }
 0x10b   :  { %2566 = vtanh.f32 %v189_v21  ;;  %298 = vrot.lane.b32.xlu2 %v189_v21, %s2821_s3 }
 0x111   :  { %v2567_v22 = vpop.eup %2566 }
 0x112   :  { %192 = vrot.lane.b32.xlu0 %v2567_v22, %s2822_s26  ;;  %v2994_v22 = vld [vmem:[%s3477_s5] sm:$0xff] }
 0x113   :  { %358 = vmatpush.bf16.msra.mxu1 %v2994_v22  ;;  %749 = vmatpush.bf16.msrb.mxu0 %v2994_v22 }
 0x117   :  { %929 = vmatpush.bf16.msra.mxu0 %v2950_v25 }
 0x165   :  { %v299_v14 = vpop.permute.xlu2 %298 }
 0x184   :  { %v193_v27 = vpop.permute.xlu0 %192 }
 0x185   :  { %v195_v28 = vmul.f32 %v193_v27, %v182_v20 }
 0x187   :  { %v196_v29 = vpack.c.bf16 %v195_v28, %v195_v28 }
 0x189   :  { %201 = vrot.lane.b32.xlu1 %v196_v29, %s2823_s2 }
 0x1fb   :  { %v202_v30 = vpop.permute.xlu1 %201 }
 0x1fc   :  { %2422 = vmatmul.msk.bf16.vlgmr.msrb.gmra.mxu1 %vm209_vm6, %v202_v30  ;;  %2428 = vmatmul.msk.bf16.vlgmr.msrb.gmra.mxu2 %vm209_vm6, %v202_v30 }
 0x1fd   :  { %542 = vmatpush.bf16.msrb.mxu2 %v2950_v25  ;;  %491 = vmatpush.bf16.msrb.mxu1 %v2994_v22 }
 0x279   :  { %v222_v36 = vpop.f32.mrf.mxu1 }
 0x27a   :  { %v223_v37 = vadd.f32 %v2976_v34, %v222_v36 }
 0x27c   :  { %2568 = vtanh.f32 %v223_v37  ;;  %v2423_v46 = vmul.f32 -1.442695, %v223_v37 }
 0x27f   :  { %v272_v40 = vpop.f32.mrf.mxu2 }
 0x280   :  { %v276_v41 = vadd.f32 %v272_v40, %v148_v39  ;;  %v3014_v39 = vpop.f32.mrf.mxu3  ;;  %v151_v40 = vadd.f32 %v2935_v3, %v2967_v31 }
 0x281   :  { %v224_v42 = vpop.f32.mrf.mxu1 }
 0x282   :  { %v2569_v43 = vpop.eup %2568  ;;  %2570 = vtanh.f32 %v276_v41  ;;  %v2429_v47 = vmul.f32 -1.442695, %v276_v41 }
 0x283   :  { %247 = vrot.lane.b32.xlu0 %v2569_v43, %s2820_s25  ;;  %2572 = vpow2.f32 %v2423_v46 }
 0x284   :  { %2574 = vpow2.f32 %v2429_v47 }
 0x287   :  { %v274_v44 = vpop.f32.mrf.mxu2 }
 0x288   :  { %v2571_v45 = vpop.eup %2570 }
 0x289   :  { %303 = vrot.lane.b32.xlu1 %v2571_v45, %s2820_s25  ;;  %v2573_v48 = vpop.eup %2572 }
 0x28a   :  { %v2575_v49 = vpop.eup %2574  ;;  %v229_v50 = vadd.f32 1.0, %v2573_v48 }
 0x28b   :  { %v280_v51 = vadd.f32 1.0, %v2575_v49 }
 0x28c   :  { %2576 = vrcp.f32 %v229_v50  ;;  %v241_v61 = vand.u32 2147483648, %v229_v50  ;;  %vm235_vm9 = vweird.f32 %v229_v50  ;;  %v239_v63 = vand.u32 2147483647, %v229_v50 }
 0x28d   :  { %2578 = vrcp.f32 %v280_v51  ;;  %v292_v0 = vand.u32 2147483648, %v280_v51  ;;  %vm286_vm11 = vweird.f32 %v280_v51  ;;  %v290_v1 = vand.u32 2147483647, %v280_v51 }
 0x28e   :  { %v242_v5 = vor.u32 1.1754944e-38, %v241_v61  ;;  %vm240_vm13 = vcmp.eq.f32.partialorder %v239_v63, 8.507059e+37 }
 0x28f   :  { %v293_v7 = vor.u32 1.1754944e-38, %v292_v0  ;;  %vm291_vm14 = vcmp.eq.f32.partialorder %v290_v1, 8.507059e+37 }
 0x292   :  { %v2577_v52 = vpop.eup %2576 }
 0x293   :  { %v2579_v53 = vpop.eup %2578  ;;  %v231_v54 = vmul.f32 %v2577_v52, %v229_v50  ;;  %vm236_vm7 = vweird.f32 %v2577_v52 }
 0x294   :  { %v282_v55 = vmul.f32 %v2579_v53, %v280_v51  ;;  %vm287_vm8 = vweird.f32 %v2579_v53  ;;  %vm237_vm10 = vmor %vm235_vm9, %vm236_vm7 }
 0x295   :  { %v232_v56 = vsub.f32 1.0, %v231_v54  ;;  %vm288_vm12 = vmor %vm286_vm11, %vm287_vm8 }
 0x296   :  { %v283_v57 = vsub.f32 1.0, %v282_v55 }
 0x297   :  { %v233_v58 = vmul.f32 %v2577_v52, %v232_v56 }
 0x298   :  { %v284_v59 = vmul.f32 %v2579_v53, %v283_v57 }
 0x299   :  { %v234_v60 = vadd.f32 %v2577_v52, %v233_v58 }
 0x29a   :  { %v285_v62 = vadd.f32 %v2579_v53, %v284_v59 }
 0x29b   :  { %v238_v2 = vsel %vm237_vm10, %v2577_v52, %v234_v60 }
 0x29c   :  { %v289_v6 = vsel %vm288_vm12, %v2579_v53, %v285_v62  ;;  %v243_v8 = vsel %vm240_vm13, %v242_v5, %v238_v2 }
 0x29d   :  { %v294_v11 = vsel %vm291_vm14, %v293_v7, %v289_v6 }
 0x29e   :  { %v301_v15 = vmul.f32 %v299_v14, %v294_v11 }
 0x2f5   :  { %v248_v4 = vpop.permute.xlu0 %247 }
 0x2f6   :  { %v250_v9 = vmul.f32 %v248_v4, %v243_v8 }
 0x2f8   :  { %2580 = vtanh.f32 %v250_v9 }
 0x2fb   :  { %v304_v10 = vpop.permute.xlu1 %303 }
 0x2fc   :  { %v306_v12 = vmul.f32 %v304_v10, %v294_v11 }
 0x2fe   :  { %308 = vrot.lane.b32.xlu2 %v306_v12, %s2821_s3  ;;  %v2581_v13 = vpop.eup %2580 }
 0x306   :  { %253 = vrot.lane.b32.xlu2 %v2581_v13, %s2822_s26 }
 0x358   :  { %v309_v16 = vpop.permute.xlu2 %308 }
 0x359   :  { %v2986_v17 = vadd.f32 %v309_v16, %v301_v15 }
 0x35b   :  { %2582 = vtanh.f32 %v2986_v17 }
 0x360   :  { %v254_v19 = vpop.permute.xlu2 %253 }
 0x361   :  { %v2583_v18 = vpop.eup %2582  ;;  %v256_v20 = vmul.f32 %v254_v19, %v243_v8 }
 0x362   :  { %314 = vrot.lane.b32.xlu1 %v2583_v18, %s2824_s23 }
 0x363   :  { %v338_v21 = vpack.c.bf16 %v256_v20, %v256_v20 }
 0x36a   :  { %340 = vrot.lane.b32.xlu1 %v338_v21, %s2823_s2 }
 0x3d4   :  { %v315_v24 = vpop.permute.xlu1 %314 }
 0x3d5   :  { %v317_v27 = vmul.f32 %v315_v24, %v294_v11 }
 0x3d7   :  { %v318_v28 = vpack.c.bf16 %v317_v27, %v317_v27 }
 0x3d9   :  { %320 = vrot.lane.b32.xlu0 %v318_v28, %s2823_s2 }
 0x3dc   :  { %v341_v29 = vpop.permute.xlu1 %340 }
 0x3dd   :  { %2435 = vmatmul.msk.bf16.vlgmr.msra.gmra.mxu1 %vm209_vm6, %v341_v29 }
 0x3de   :  { %620 = vmatpush.bf16.msra.mxu1 %v2994_v22 }
 0x44b   :  { %v321_v30 = vpop.permute.xlu0 %320 }
 0x44c   :  { %2430 = vmatmul.msk.bf16.vlgmr.msrb.gmra.mxu3 %vm209_vm6, %v321_v30  ;;  %2437 = vmatmul.msk.bf16.vlgmr.msra.gmra.mxu2 %vm209_vm6, %v321_v30 }
 0x44d   :  { %671 = vmatpush.bf16.msra.mxu2 %v2950_v25  ;;  %600 = vmatpush.bf16.msrb.mxu3 %v2955_v26 }
 0x45a   :  { %v360_v36 = vpop.f32.mrf.mxu1 }
 0x462   :  { %v362_v37 = vpop.f32.mrf.mxu1 }
 0x4cf   :  { %v334_v41 = vpop.f32.mrf.mxu3  ;;  %v415_v42 = vpop.f32.mrf.mxu2 }
 0x4d0   :  { %v335_v43 = vadd.f32 %v2976_v34, %v334_v41  ;;  %v419_v44 = vadd.f32 %v415_v42, %v151_v40 }
 0x4d2   :  { %v364_v45 = vadd.f32 %v360_v36, %v335_v43  ;;  %2584 = vtanh.f32 %v419_v44  ;;  %v2438_v50 = vmul.f32 -1.442695, %v419_v44  ;;  %v153_v44 = vadd.f32 %v2935_v3, %v2971_v33 }
 0x4d4   :  { %2586 = vtanh.f32 %v364_v45  ;;  %v2436_v53 = vmul.f32 -1.442695, %v364_v45 }
 0x4d5   :  { %2588 = vpow2.f32 %v2438_v50 }
 0x4d7   :  { %v336_v46 = vpop.f32.mrf.mxu3  ;;  %v417_v47 = vpop.f32.mrf.mxu2 }
 0x4d8   :  { %v2585_v48 = vpop.eup %2584 }
 0x4d9   :  { %442 = vrot.lane.b32.xlu2 %v2585_v48, %s2820_s25 }
 0x4da   :  { %v2587_v49 = vpop.eup %2586 }
 0x4db   :  { %391 = vrot.lane.b32.xlu0 %v2587_v49, %s2820_s25  ;;  %v2589_v31 = vpop.eup %2588 }
 0x4dc   :  { %v423_v51 = vadd.f32 1.0, %v2589_v31 }
 0x4de   :  { %2590 = vrcp.f32 %v423_v51  ;;  %v435_v60 = vand.u32 2147483648, %v423_v51  ;;  %vm429_vm0 = vweird.f32 %v423_v51  ;;  %v433_v61 = vand.u32 2147483647, %v423_v51 }
 0x4df   :  { %2592 = vpow2.f32 %v2436_v53 }
 0x4e0   :  { %v436_v63 = vor.u32 1.1754944e-38, %v435_v60  ;;  %vm434_vm3 = vcmp.eq.f32.partialorder %v433_v61, 8.507059e+37 }
 0x4e1   :  { %386 = vrot.lane.b32.xlu2 %v250_v9, %s2821_s3 }
 0x4e4   :  { %v2591_v52 = vpop.eup %2590 }
 0x4e5   :  { %v425_v54 = vmul.f32 %v2591_v52, %v423_v51  ;;  %v2593_v57 = vpop.eup %2592  ;;  %vm430_vm15 = vweird.f32 %v2591_v52 }
 0x4e6   :  { %v368_v59 = vadd.f32 1.0, %v2593_v57  ;;  %vm431_vm2 = vmor %vm429_vm0, %vm430_vm15 }
 0x4e7   :  { %v426_v55 = vsub.f32 1.0, %v425_v54 }
 0x4e8   :  { %2594 = vrcp.f32 %v368_v59  ;;  %v380_v9 = vand.u32 2147483648, %v368_v59  ;;  %vm374_vm5 = vweird.f32 %v368_v59  ;;  %v378_v10 = vand.u32 2147483647, %v368_v59 }
 0x4e9   :  { %v427_v56 = vmul.f32 %v2591_v52, %v426_v55 }
 0x4ea   :  { %v381_v12 = vor.u32 1.1754944e-38, %v380_v9  ;;  %vm379_vm8 = vcmp.eq.f32.partialorder %v378_v10, 8.507059e+37 }
 0x4eb   :  { %v428_v58 = vadd.f32 %v2591_v52, %v427_v56 }
 0x4ed   :  { %v432_v62 = vsel %vm431_vm2, %v2591_v52, %v428_v58 }
 0x4ee   :  { %v437_v0 = vsel %vm434_vm3, %v436_v63, %v432_v62  ;;  %v2595_v4 = vpop.eup %2594 }
 0x4ef   :  { %v370_v5 = vmul.f32 %v2595_v4, %v368_v59  ;;  %vm375_vm4 = vweird.f32 %v2595_v4  ;;  %v440_v16 = vmul.f32 %v437_v0, %v2986_v17 }
 0x4f0   :  { %vm376_vm7 = vmor %vm374_vm5, %vm375_vm4 }
 0x4f1   :  { %v371_v6 = vsub.f32 1.0, %v370_v5 }
 0x4f3   :  { %v372_v7 = vmul.f32 %v2595_v4, %v371_v6 }
 0x4f5   :  { %v373_v8 = vadd.f32 %v2595_v4, %v372_v7 }
 0x4f7   :  { %v377_v11 = vsel %vm376_vm7, %v2595_v4, %v373_v8 }
 0x4f8   :  { %v382_v13 = vsel %vm379_vm8, %v381_v12, %v377_v11 }
 0x533   :  { %v443_v1 = vpop.permute.xlu2 %442 }
 0x534   :  { %v445_v2 = vmul.f32 %v443_v1, %v437_v0 }
 0x536   :  { %447 = vrot.lane.b32.xlu1 %v445_v2, %s2821_s3 }
 0x53b   :  { %v387_v21 = vpop.permute.xlu2 %386 }
 0x53c   :  { %v389_v23 = vmul.f32 %v387_v21, %v382_v13 }
 0x54d   :  { %v392_v14 = vpop.permute.xlu0 %391 }
 0x54e   :  { %v394_v15 = vmul.f32 %v392_v14, %v382_v13 }
 0x550   :  { %396 = vrot.lane.b32.xlu0 %v394_v15, %s2821_s3 }
 0x5a8   :  { %v448_v18 = vpop.permute.xlu1 %447 }
 0x5a9   :  { %v3025_v19 = vadd.f32 %v448_v18, %v440_v16 }
 0x5ab   :  { %2596 = vtanh.f32 %v3025_v19 }
 0x5b1   :  { %v2597_v20 = vpop.eup %2596 }
 0x5b2   :  { %453 = vrot.lane.b32.xlu1 %v2597_v20, %s2824_s23 }
 0x5c2   :  { %v397_v24 = vpop.permute.xlu0 %396 }
 0x5c3   :  { %v3029_v27 = vadd.f32 %v397_v24, %v389_v23 }
 0x5c5   :  { %2598 = vtanh.f32 %v3029_v27 }
 0x5cb   :  { %v2599_v28 = vpop.eup %2598 }
 0x5cc   :  { %402 = vrot.lane.b32.xlu2 %v2599_v28, %s2824_s23 }
 0x624   :  { %v454_v29 = vpop.permute.xlu1 %453 }
 0x625   :  { %v456_v17 = vmul.f32 %v454_v29, %v437_v0 }
 0x626   :  { %v403_v30 = vpop.permute.xlu2 %402 }
 0x627   :  { %v457_v36 = vpack.c.bf16 %v456_v17, %v456_v17  ;;  %v405_v37 = vmul.f32 %v403_v30, %v382_v13 }
 0x629   :  { %v477_v40 = vpack.c.bf16 %v405_v37, %v405_v37  ;;  %459 = vrot.lane.b32.xlu0 %v457_v36, %s2823_s2 }
 0x62b   :  { %479 = vrot.lane.b32.xlu1 %v477_v40, %s2823_s2 }
 0x69b   :  { %v460_v41 = vpop.permute.xlu0 %459 }
 0x69c   :  { %2439 = vmatmul.msk.bf16.vlgmr.msra.gmra.mxu3 %vm209_vm6, %v460_v41  ;;  %2442 = vmatmul.msk.bf16.vlgmr.msrb.gmra.mxu2 %vm209_vm6, %v460_v41 }
 0x69d   :  { %v480_v42 = vpop.permute.xlu1 %479  ;;  %729 = vmatpush.bf16.msra.mxu3 %v2955_v26  ;;  %858 = vmatpush.bf16.msrb.mxu2 %v2955_v26 }
 0x69e   :  { %2440 = vmatmul.msk.bf16.vlgmr.msrb.gmra.mxu1 %vm209_vm6, %v480_v42 }
 0x69f   :  { %800 = vmatpush.bf16.msrb.mxu1 %v2950_v25 }
 0x71b   :  { %v493_v43 = vpop.f32.mrf.mxu1 }
 0x71f   :  { %v473_v45 = vpop.f32.mrf.mxu3  ;;  %v544_v46 = vpop.f32.mrf.mxu2 }
 0x720   :  { %v474_v47 = vadd.f32 %v2976_v34, %v473_v45  ;;  %v548_v48 = vadd.f32 %v544_v46, %v153_v44  ;;  %v156_v46 = vadd.f32 %v2935_v3, %v2969_v32 }
 0x722   :  { %v497_v49 = vadd.f32 %v493_v43, %v474_v47  ;;  %2600 = vtanh.f32 %v548_v48  ;;  %v2443_v54 = vmul.f32 -1.442695, %v548_v48 }
 0x723   :  { %v495_v50 = vpop.f32.mrf.mxu1 }
 0x724   :  { %2602 = vtanh.f32 %v497_v49  ;;  %v2441_v57 = vmul.f32 -1.442695, %v497_v49 }
 0x725   :  { %2604 = vpow2.f32 %v2443_v54 }
 0x727   :  { %v475_v31 = vpop.f32.mrf.mxu3  ;;  %v546_v51 = vpop.f32.mrf.mxu2 }
 0x728   :  { %v2601_v52 = vpop.eup %2600 }
 0x729   :  { %571 = vrot.lane.b32.xlu2 %v2601_v52, %s2820_s25 }
 0x72a   :  { %v2603_v53 = vpop.eup %2602 }
 0x72b   :  { %520 = vrot.lane.b32.xlu0 %v2603_v53, %s2820_s25  ;;  %v2605_v33 = vpop.eup %2604 }
 0x72c   :  { %v552_v55 = vadd.f32 1.0, %v2605_v33 }
 0x72e   :  { %2606 = vrcp.f32 %v552_v55  ;;  %v564_v0 = vand.u32 2147483648, %v552_v55  ;;  %vm558_vm10 = vweird.f32 %v552_v55  ;;  %v562_v1 = vand.u32 2147483647, %v552_v55 }
 0x72f   :  { %2608 = vpow2.f32 %v2441_v57 }
 0x730   :  { %v565_v4 = vor.u32 1.1754944e-38, %v564_v0  ;;  %vm563_vm12 = vcmp.eq.f32.partialorder %v562_v1, 8.507059e+37 }
 0x734   :  { %v2607_v56 = vpop.eup %2606 }
 0x735   :  { %v554_v58 = vmul.f32 %v2607_v56, %v552_v55  ;;  %v2609_v61 = vpop.eup %2608  ;;  %vm559_vm9 = vweird.f32 %v2607_v56 }
 0x736   :  { %v501_v63 = vadd.f32 1.0, %v2609_v61  ;;  %vm560_vm11 = vmor %vm558_vm10, %vm559_vm9 }
 0x737   :  { %v555_v59 = vsub.f32 1.0, %v554_v58 }
 0x738   :  { %2610 = vrcp.f32 %v501_v63  ;;  %v513_v13 = vand.u32 2147483648, %v501_v63  ;;  %vm507_vm14 = vweird.f32 %v501_v63  ;;  %v511_v14 = vand.u32 2147483647, %v501_v63 }
 0x739   :  { %v556_v60 = vmul.f32 %v2607_v56, %v555_v59 }
 0x73a   :  { %v514_v16 = vor.u32 1.1754944e-38, %v513_v13  ;;  %vm512_vm0 = vcmp.eq.f32.partialorder %v511_v14, 8.507059e+37 }
 0x73b   :  { %v557_v62 = vadd.f32 %v2607_v56, %v556_v60 }
 0x73d   :  { %v561_v2 = vsel %vm560_vm11, %v2607_v56, %v557_v62 }
 0x73e   :  { %v566_v5 = vsel %vm563_vm12, %v565_v4, %v561_v2  ;;  %v2611_v8 = vpop.eup %2610 }
 0x73f   :  { %v503_v9 = vmul.f32 %v2611_v8, %v501_v63  ;;  %vm508_vm13 = vweird.f32 %v2611_v8  ;;  %v569_v23 = vmul.f32 %v566_v5, %v3025_v19 }
 0x740   :  { %vm509_vm15 = vmor %vm507_vm14, %vm508_vm13 }
 0x741   :  { %v504_v10 = vsub.f32 1.0, %v503_v9 }
 0x743   :  { %v505_v11 = vmul.f32 %v2611_v8, %v504_v10 }
 0x745   :  { %v506_v12 = vadd.f32 %v2611_v8, %v505_v11 }
 0x747   :  { %v510_v15 = vsel %vm509_vm15, %v2611_v8, %v506_v12 }
 0x748   :  { %v515_v20 = vsel %vm512_vm0, %v514_v16, %v510_v15 }
 0x749   :  { %v518_v29 = vmul.f32 %v515_v20, %v3029_v27 }
 0x783   :  { %v572_v6 = vpop.permute.xlu2 %571 }
 0x784   :  { %v574_v7 = vmul.f32 %v572_v6, %v566_v5 }
 0x786   :  { %576 = vrot.lane.b32.xlu1 %v574_v7, %s2821_s3 }
 0x79d   :  { %v521_v18 = vpop.permute.xlu0 %520 }
 0x79e   :  { %v523_v21 = vmul.f32 %v521_v18, %v515_v20 }
 0x7a0   :  { %525 = vrot.lane.b32.xlu2 %v523_v21, %s2821_s3 }
 0x7f8   :  { %v577_v24 = vpop.permute.xlu1 %576 }
 0x7f9   :  { %v3049_v28 = vadd.f32 %v577_v24, %v569_v23 }
 0x7fa   :  { %v526_v17 = vpop.permute.xlu2 %525 }
 0x7fb   :  { %2612 = vtanh.f32 %v3049_v28  ;;  %v3053_v30 = vadd.f32 %v526_v17, %v518_v29 }
 0x7fd   :  { %2614 = vtanh.f32 %v3053_v30 }
 0x801   :  { %v2613_v36 = vpop.eup %2612 }
 0x802   :  { %582 = vrot.lane.b32.xlu0 %v2613_v36, %s2824_s23 }
 0x803   :  { %v2615_v37 = vpop.eup %2614 }
 0x804   :  { %531 = vrot.lane.b32.xlu1 %v2615_v37, %s2824_s23 }
 0x874   :  { %v583_v40 = vpop.permute.xlu0 %582 }
 0x875   :  { %v585_v19 = vmul.f32 %v583_v40, %v566_v5 }
 0x876   :  { %v532_v41 = vpop.permute.xlu1 %531 }
 0x877   :  { %v586_v42 = vpack.c.bf16 %v585_v19, %v585_v19  ;;  %v534_v43 = vmul.f32 %v532_v41, %v515_v20 }
 0x879   :  { %v606_v44 = vpack.c.bf16 %v534_v43, %v534_v43  ;;  %588 = vrot.lane.b32.xlu2 %v586_v42, %s2823_s2 }
 0x87b   :  { %608 = vrot.lane.b32.xlu0 %v606_v44, %s2823_s2 }
 0x8d3   :  { %v589_v27 = vpop.permute.xlu2 %588 }
 0x8d4   :  { %2444 = vmatmul.msk.bf16.vlgmr.msrb.gmra.mxu3 %vm209_vm6, %v589_v27  ;;  %2447 = vmatmul.msk.bf16.vlgmr.msra.gmra.mxu2 %vm209_vm6, %v589_v27 }
 0x8d5   :  { %878 = vmatpush.bf16.msrb.mxu3 %v2994_v22  ;;  %1007 = vmatpush.bf16.msra.mxu2 %v2994_v22 }
 0x8ed   :  { %v609_v45 = vpop.permute.xlu0 %608 }
 0x8ee   :  { %2445 = vmatmul.msk.bf16.vlgmr.msra.gmra.mxu1 %vm209_vm6, %v609_v45 }
 0x8ef   :  { %987 = vmatpush.bf16.msra.mxu1 %v2955_v26 }
 0x957   :  { %v602_v47 = vpop.f32.mrf.mxu3  ;;  %v673_v48 = vpop.f32.mrf.mxu2 }
 0x958   :  { %v677_v49 = vadd.f32 %v673_v48, %v156_v46  ;;  %v603_v52 = vadd.f32 %v2976_v34, %v602_v47 }
 0x95a   :  { %2616 = vtanh.f32 %v677_v49  ;;  %v2448_v32 = vmul.f32 -1.442695, %v677_v49  ;;  %v158_v49 = vadd.f32 %v2935_v3, %v2978_v35 }
 0x95f   :  { %v604_v50 = vpop.f32.mrf.mxu3  ;;  %v675_v31 = vpop.f32.mrf.mxu2 }
 0x960   :  { %v2617_v51 = vpop.eup %2616 }
 0x961   :  { %700 = vrot.lane.b32.xlu1 %v2617_v51, %s2820_s25 }
 0x96b   :  { %v622_v53 = vpop.f32.mrf.mxu1 }
 0x96c   :  { %v626_v54 = vadd.f32 %v622_v53, %v603_v52 }
 0x96e   :  { %2618 = vtanh.f32 %v626_v54  ;;  %v2446_v56 = vmul.f32 -1.442695, %v626_v54 }
 0x970   :  { %2620 = vpow2.f32 %v2446_v56 }
 0x971   :  { %2622 = vpow2.f32 %v2448_v32 }
 0x973   :  { %v624_v33 = vpop.f32.mrf.mxu1 }
 0x974   :  { %v2619_v55 = vpop.eup %2618 }
 0x975   :  { %649 = vrot.lane.b32.xlu2 %v2619_v55, %s2820_s25 }
 0x976   :  { %v2621_v57 = vpop.eup %2620 }
 0x977   :  { %v630_v58 = vadd.f32 1.0, %v2621_v57  ;;  %v2623_v59 = vpop.eup %2622 }
 0x978   :  { %v681_v60 = vadd.f32 1.0, %v2623_v59 }
 0x979   :  { %2624 = vrcp.f32 %v630_v58  ;;  %v642_v7 = vand.u32 2147483648, %v630_v58  ;;  %vm636_vm3 = vweird.f32 %v630_v58  ;;  %v640_v8 = vand.u32 2147483647, %v630_v58 }
 0x97a   :  { %2626 = vrcp.f32 %v681_v60  ;;  %v693_v12 = vand.u32 2147483648, %v681_v60  ;;  %vm687_vm8 = vweird.f32 %v681_v60  ;;  %v691_v13 = vand.u32 2147483647, %v681_v60 }
 0x97b   :  { %v643_v11 = vor.u32 1.1754944e-38, %v642_v7  ;;  %vm641_vm7 = vcmp.eq.f32.partialorder %v640_v8, 8.507059e+37 }
 0x97c   :  { %v694_v20 = vor.u32 1.1754944e-38, %v693_v12  ;;  %vm692_vm10 = vcmp.eq.f32.partialorder %v691_v13, 8.507059e+37 }
 0x97f   :  { %v2625_v61 = vpop.eup %2624 }
 0x980   :  { %v632_v62 = vmul.f32 %v2625_v61, %v630_v58  ;;  %v2627_v63 = vpop.eup %2626  ;;  %vm637_vm2 = vweird.f32 %v2625_v61 }
 0x981   :  { %v683_v1 = vmul.f32 %v2627_v63, %v681_v60  ;;  %vm638_vm4 = vmor %vm636_vm3, %vm637_vm2  ;;  %vm688_vm5 = vweird.f32 %v2627_v63 }
 0x982   :  { %v633_v0 = vsub.f32 1.0, %v632_v62  ;;  %vm689_vm9 = vmor %vm687_vm8, %vm688_vm5 }
 0x983   :  { %v684_v4 = vsub.f32 1.0, %v683_v1 }
 0x984   :  { %v634_v2 = vmul.f32 %v2625_v61, %v633_v0 }
 0x985   :  { %v685_v6 = vmul.f32 %v2627_v63, %v684_v4 }
 0x986   :  { %v635_v5 = vadd.f32 %v2625_v61, %v634_v2 }
 0x987   :  { %v686_v10 = vadd.f32 %v2627_v63, %v685_v6 }
 0x988   :  { %v639_v9 = vsel %vm638_vm4, %v2625_v61, %v635_v5 }
 0x989   :  { %v644_v15 = vsel %vm641_vm7, %v643_v11, %v639_v9  ;;  %v690_v18 = vsel %vm689_vm9, %v2627_v63, %v686_v10 }
 0x98a   :  { %v695_v23 = vsel %vm692_vm10, %v694_v20, %v690_v18  ;;  %v647_v29 = vmul.f32 %v644_v15, %v3053_v30 }
 0x98b   :  { %v698_v37 = vmul.f32 %v695_v23, %v3049_v28 }
 0x9cf   :  { %v650_v14 = vpop.permute.xlu2 %649 }
 0x9d0   :  { %v652_v16 = vmul.f32 %v650_v14, %v644_v15 }
 0x9d2   :  { %654 = vrot.lane.b32.xlu1 %v652_v16, %s2821_s3 }
 0x9d3   :  { %v701_v21 = vpop.permute.xlu1 %700 }
 0x9d4   :  { %v703_v24 = vmul.f32 %v701_v21, %v695_v23 }
 0x9d6   :  { %705 = vrot.lane.b32.xlu0 %v703_v24, %s2821_s3 }
 0xa44   :  { %v655_v17 = vpop.permute.xlu1 %654 }
 0xa45   :  { %v3074_v36 = vadd.f32 %v655_v17, %v647_v29 }
 0xa47   :  { %2628 = vtanh.f32 %v3074_v36 }
 0xa48   :  { %v706_v40 = vpop.permute.xlu0 %705 }
 0xa49   :  { %v3078_v19 = vadd.f32 %v706_v40, %v698_v37 }
 0xa4b   :  { %2630 = vtanh.f32 %v3078_v19 }
 0xa4d   :  { %v2629_v41 = vpop.eup %2628 }
 0xa4e   :  { %660 = vrot.lane.b32.xlu0 %v2629_v41, %s2824_s23 }
 0xa51   :  { %v2631_v42 = vpop.eup %2630 }
 0xa52   :  { %711 = vrot.lane.b32.xlu2 %v2631_v42, %s2824_s23 }
 0xaac   :  { %v712_v43 = vpop.permute.xlu2 %711 }
 0xaad   :  { %v714_v30 = vmul.f32 %v712_v43, %v695_v23 }
 0xaaf   :  { %v715_v44 = vpack.c.bf16 %v714_v30, %v714_v30 }
 0xab1   :  { %717 = vrot.lane.b32.xlu1 %v715_v44, %s2823_s2 }
 0xac0   :  { %v661_v27 = vpop.permute.xlu0 %660 }
 0xac1   :  { %v663_v45 = vmul.f32 %v661_v27, %v644_v15 }
 0xac3   :  { %v735_v46 = vpack.c.bf16 %v663_v45, %v663_v45 }
 0xac5   :  { %737 = vrot.lane.b32.xlu2 %v735_v46, %s2823_s2 }
 0xb1f   :  { %v738_v28 = vpop.permute.xlu2 %737 }
 0xb20   :  { %2450 = vmatmul.msk.bf16.vlgmr.msrb.gmra.mxu0 %vm209_vm6, %v738_v28  ;;  %v161_v28 = vadd.f32 %v2935_v3, %v3012_v38 }
 0xb21   :  { %1116 = vmatpush.bf16.msrb.mxu0 %v2955_v26 }
 0xb23   :  { %v718_v47 = vpop.permute.xlu1 %717 }
 0xb24   :  { %2449 = vmatmul.msk.bf16.vlgmr.msra.gmra.mxu3 %vm209_vm6, %v718_v47  ;;  %2452 = vmatmul.msk.bf16.vlgmr.msrb.gmra.mxu1 %vm209_vm6, %v718_v47 }
 0xb25   :  { %1058 = vmatpush.bf16.msra.mxu3 %v2950_v25  ;;  %1136 = vmatpush.bf16.msrb.mxu1 %v2994_v22 }
 0xb9d   :  { %v751_v48 = vpop.f32.mrf.mxu0 }
 0xba1   :  { %v802_v50 = vpop.f32.mrf.mxu1 }
 0xba2   :  { %v806_v31 = vadd.f32 %v802_v50, %v158_v49 }
 0xba4   :  { %2632 = vtanh.f32 %v806_v31  ;;  %v2453_v22 = vmul.f32 -1.442695, %v806_v31 }
 0xba5   :  { %v753_v51 = vpop.f32.mrf.mxu0 }
 0xba7   :  { %v731_v52 = vpop.f32.mrf.mxu3 }
 0xba8   :  { %v732_v26 = vadd.f32 %v2976_v34, %v731_v52 }
 0xba9   :  { %v804_v53 = vpop.f32.mrf.mxu1 }
 0xbaa   :  { %v2633_v54 = vpop.eup %2632  ;;  %v755_v33 = vadd.f32 %v751_v48, %v732_v26 }
 0xbab   :  { %829 = vrot.lane.b32.xlu0 %v2633_v54, %s2820_s25 }
 0xbac   :  { %2634 = vtanh.f32 %v755_v33  ;;  %v2451_v35 = vmul.f32 -1.442695, %v755_v33 }
 0xbad   :  { %2636 = vpow2.f32 %v2453_v22 }
 0xbae   :  { %2638 = vpow2.f32 %v2451_v35 }
 0xbaf   :  { %v733_v25 = vpop.f32.mrf.mxu3 }
 0xbb2   :  { %v2635_v55 = vpop.eup %2634 }
 0xbb3   :  { %778 = vrot.lane.b32.xlu1 %v2635_v55, %s2820_s25  ;;  %v2637_v56 = vpop.eup %2636 }
 0xbb4   :  { %v810_v32 = vadd.f32 1.0, %v2637_v56  ;;  %v2639_v57 = vpop.eup %2638 }
 0xbb5   :  { %v759_v58 = vadd.f32 1.0, %v2639_v57 }
 0xbb6   :  { %2640 = vrcp.f32 %v810_v32  ;;  %v822_v4 = vand.u32 2147483648, %v810_v32  ;;  %vm816_vm12 = vweird.f32 %v810_v32  ;;  %v820_v5 = vand.u32 2147483647, %v810_v32 }
 0xbb7   :  { %2642 = vrcp.f32 %v759_v58  ;;  %v771_v13 = vand.u32 2147483648, %v759_v58  ;;  %vm765_vm0 = vweird.f32 %v759_v58  ;;  %v769_v14 = vand.u32 2147483647, %v759_v58 }
 0xbb8   :  { %v823_v8 = vor.u32 1.1754944e-38, %v822_v4  ;;  %vm821_vm14 = vcmp.eq.f32.partialorder %v820_v5, 8.507059e+37 }
 0xbb9   :  { %v772_v16 = vor.u32 1.1754944e-38, %v771_v13  ;;  %vm770_vm3 = vcmp.eq.f32.partialorder %v769_v14, 8.507059e+37 }
 0xbbc   :  { %v2641_v59 = vpop.eup %2640 }
 0xbbd   :  { %v812_v60 = vmul.f32 %v2641_v59, %v810_v32  ;;  %v2643_v62 = vpop.eup %2642  ;;  %vm817_vm11 = vweird.f32 %v2641_v59 }
 0xbbe   :  { %v761_v0 = vmul.f32 %v2643_v62, %v759_v58  ;;  %vm818_vm13 = vmor %vm816_vm12, %vm817_vm11  ;;  %vm766_vm15 = vweird.f32 %v2643_v62 }
 0xbbf   :  { %v813_v61 = vsub.f32 1.0, %v812_v60  ;;  %vm767_vm2 = vmor %vm765_vm0, %vm766_vm15 }
 0xbc0   :  { %v762_v2 = vsub.f32 1.0, %v761_v0 }
 0xbc1   :  { %v814_v63 = vmul.f32 %v2641_v59, %v813_v61 }
 0xbc2   :  { %v763_v7 = vmul.f32 %v2643_v62, %v762_v2 }
 0xbc3   :  { %v815_v1 = vadd.f32 %v2641_v59, %v814_v63 }
 0xbc4   :  { %v764_v12 = vadd.f32 %v2643_v62, %v763_v7 }
 0xbc5   :  { %v819_v6 = vsel %vm818_vm13, %v2641_v59, %v815_v1 }
 0xbc6   :  { %v824_v9 = vsel %vm821_vm14, %v823_v8, %v819_v6  ;;  %v768_v15 = vsel %vm767_vm2, %v2643_v62, %v764_v12 }
 0xbc7   :  { %v773_v20 = vsel %vm770_vm3, %v772_v16, %v768_v15  ;;  %v827_v23 = vmul.f32 %v824_v9, %v3078_v19 }
 0xbc8   :  { %v776_v37 = vmul.f32 %v773_v20, %v3074_v36 }
 0xc1d   :  { %v830_v10 = vpop.permute.xlu0 %829 }
 0xc1e   :  { %v832_v11 = vmul.f32 %v830_v10, %v824_v9 }
 0xc20   :  { %834 = vrot.lane.b32.xlu2 %v832_v11, %s2821_s3 }
 0xc25   :  { %v779_v18 = vpop.permute.xlu1 %778 }
 0xc26   :  { %v781_v21 = vmul.f32 %v779_v18, %v773_v20 }
 0xc28   :  { %783 = vrot.lane.b32.xlu0 %v781_v21, %s2821_s3 }
 0xc7a   :  { %v835_v24 = vpop.permute.xlu2 %834 }
 0xc7b   :  { %v3099_v29 = vadd.f32 %v835_v24, %v827_v23 }
 0xc7d   :  { %2644 = vtanh.f32 %v3099_v29 }
 0xc83   :  { %v2645_v17 = vpop.eup %2644 }
 0xc84   :  { %840 = vrot.lane.b32.xlu1 %v2645_v17, %s2824_s23 }
 0xc9a   :  { %v784_v40 = vpop.permute.xlu0 %783 }
 0xc9b   :  { %v3104_v41 = vadd.f32 %v784_v40, %v776_v37 }
 0xc9d   :  { %2646 = vtanh.f32 %v3104_v41 }
 0xca3   :  { %v2647_v42 = vpop.eup %2646 }
 0xca4   :  { %789 = vrot.lane.b32.xlu2 %v2647_v42, %s2824_s23 }
 0xcf6   :  { %v841_v43 = vpop.permute.xlu1 %840 }
 0xcf7   :  { %v843_v19 = vmul.f32 %v841_v43, %v824_v9 }
 0xcf9   :  { %v844_v30 = vpack.c.bf16 %v843_v19, %v843_v19 }
 0xcfb   :  { %846 = vrot.lane.b32.xlu0 %v844_v30, %s2823_s2 }
 0xcfe   :  { %v790_v44 = vpop.permute.xlu2 %789 }
 0xcff   :  { %v792_v27 = vmul.f32 %v790_v44, %v773_v20 }
 0xd01   :  { %v864_v45 = vpack.c.bf16 %v792_v27, %v792_v27  ;;  %v2816_v27 = vld [vmem:[%s3497_s24] ss:$0 sm:$0xff] }
 0xd03   :  { %866 = vrot.lane.b32.xlu1 %v864_v45, %s2823_s2  ;;  %v163_v45 = vadd.f32 %v2816_v27, %v3014_v39 }
 0xd6d   :  { %v847_v46 = vpop.permute.xlu0 %846 }
 0xd6e   :  { %2454 = vmatmul.msk.bf16.vlgmr.msrb.gmra.mxu2 %vm209_vm6, %v847_v46  ;;  %2457 = vmatmul.msk.bf16.vlgmr.msra.gmra.mxu0 %vm209_vm6, %v847_v46 }
 0xd75   :  { %v867_v36 = vpop.permute.xlu1 %866 }
 0xd76   :  { %2455 = vmatmul.msk.bf16.vlgmr.msrb.gmra.mxu3 %vm209_vm6, %v867_v36 }
 0xdeb   :  { %v931_v47 = vpop.f32.mrf.mxu0 }
 0xdec   :  { %v935_v48 = vadd.f32 %v931_v47, %v161_v28 }
 0xdee   :  { %2648 = vtanh.f32 %v935_v48  ;;  %v2458_v25 = vmul.f32 -1.442695, %v935_v48 }
 0xdf1   :  { %v860_v49 = vpop.f32.mrf.mxu2 }
 0xdf2   :  { %v861_v51 = vadd.f32 %v2976_v34, %v860_v49  ;;  %v3143_v49 = vld [vmem:[%s3476_s6] ss:$0 sm:$0xff] }
 0xdf3   :  { %v933_v50 = vpop.f32.mrf.mxu0 }
 0xdf4   :  { %v2649_v31 = vpop.eup %2648 }
 0xdf5   :  { %958 = vrot.lane.b32.xlu2 %v2649_v31, %s2820_s25 }
 0xdf9   :  { %v862_v52 = vpop.f32.mrf.mxu2  ;;  %v880_v26 = vpop.f32.mrf.mxu3 }
 0xdfa   :  { %v884_v53 = vadd.f32 %v880_v26, %v861_v51 }
 0xdfc   :  { %2650 = vtanh.f32 %v884_v53  ;;  %v2456_v32 = vmul.f32 -1.442695, %v884_v53 }
 0xdfd   :  { %2652 = vpow2.f32 %v2458_v25 }
 0xe01   :  { %v882_v54 = vpop.f32.mrf.mxu3 }
 0xe02   :  { %v2651_v33 = vpop.eup %2650 }
 0xe03   :  { %907 = vrot.lane.b32.xlu0 %v2651_v33, %s2820_s25  ;;  %v2653_v3 = vpop.eup %2652 }
 0xe04   :  { %v939_v38 = vadd.f32 1.0, %v2653_v3 }
 0xe06   :  { %2654 = vrcp.f32 %v939_v38  ;;  %v951_v34 = vand.u32 2147483648, %v939_v38  ;;  %vm945_vm5 = vweird.f32 %v939_v38  ;;  %v949_v58 = vand.u32 2147483647, %v939_v38 }
 0xe07   :  { %2656 = vpow2.f32 %v2456_v32 }
 0xe08   :  { %v952_v60 = vor.u32 1.1754944e-38, %v951_v34  ;;  %vm950_vm8 = vcmp.eq.f32.partialorder %v949_v58, 8.507059e+37 }
 0xe0c   :  { %v2655_v55 = vpop.eup %2654 }
 0xe0d   :  { %v941_v22 = vmul.f32 %v2655_v55, %v939_v38  ;;  %vm946_vm4 = vweird.f32 %v2655_v55  ;;  %v2657_v0 = vpop.eup %2656 }
 0xe0e   :  { %vm947_vm7 = vmor %vm945_vm5, %vm946_vm4  ;;  %v888_v1 = vadd.f32 1.0, %v2657_v0 }
 0xe0f   :  { %v942_v35 = vsub.f32 1.0, %v941_v22 }
 0xe10   :  { %2658 = vrcp.f32 %v888_v1  ;;  %v900_v8 = vand.u32 2147483648, %v888_v1  ;;  %vm894_vm10 = vweird.f32 %v888_v1  ;;  %v898_v9 = vand.u32 2147483647, %v888_v1 }
 0xe11   :  { %v943_v56 = vmul.f32 %v2655_v55, %v942_v35 }
 0xe12   :  { %v901_v11 = vor.u32 1.1754944e-38, %v900_v8  ;;  %vm899_vm12 = vcmp.eq.f32.partialorder %v898_v9, 8.507059e+37 }
 0xe13   :  { %v944_v57 = vadd.f32 %v2655_v55, %v943_v56 }
 0xe15   :  { %v948_v59 = vsel %vm947_vm7, %v2655_v55, %v944_v57 }
 0xe16   :  { %v953_v62 = vsel %vm950_vm8, %v952_v60, %v948_v59  ;;  %v2659_v2 = vpop.eup %2658 }
 0xe17   :  { %v890_v4 = vmul.f32 %v2659_v2, %v888_v1  ;;  %vm895_vm9 = vweird.f32 %v2659_v2  ;;  %v956_v15 = vmul.f32 %v953_v62, %v3099_v29 }
 0xe18   :  { %vm896_vm11 = vmor %vm894_vm10, %vm895_vm9 }
 0xe19   :  { %v891_v5 = vsub.f32 1.0, %v890_v4 }
 0xe1b   :  { %v892_v6 = vmul.f32 %v2659_v2, %v891_v5 }
 0xe1d   :  { %v893_v7 = vadd.f32 %v2659_v2, %v892_v6 }
 0xe1f   :  { %v897_v10 = vsel %vm896_vm11, %v2659_v2, %v893_v7  ;;  %vm1217_vm11 = vcmask 1043456  }
 0xe20   :  { %v902_v13 = vsel %vm899_vm12, %v901_v11, %v897_v10  ;;  %vm1213_vm12 = vcmask 64512  }
 0xe21   :  { %v905_v21 = vmul.f32 %v902_v13, %v3104_v41 }
 0xe4f   :  { %v959_v61 = vpop.permute.xlu2 %958 }
 0xe50   :  { %v961_v63 = vmul.f32 %v959_v61, %v953_v62 }
 0xe52   :  { %963 = vrot.lane.b32.xlu1 %v961_v63, %s2821_s3 }
 0xe75   :  { %v908_v12 = vpop.permute.xlu0 %907 }
 0xe76   :  { %v910_v14 = vmul.f32 %v908_v12, %v902_v13 }
 0xe78   :  { %912 = vrot.lane.b32.xlu2 %v910_v14, %s2821_s3 }
 0xec4   :  { %v964_v16 = vpop.permute.xlu1 %963 }
 0xec5   :  { %v3121_v18 = vadd.f32 %v964_v16, %v956_v15 }
 0xec7   :  { %2660 = vtanh.f32 %v3121_v18 }
 0xecd   :  { %v2661_v20 = vpop.eup %2660 }
 0xece   :  { %969 = vrot.lane.b32.xlu0 %v2661_v20, %s2824_s23 }
 0xed2   :  { %v913_v23 = vpop.permute.xlu2 %912 }
 0xed3   :  { %v3126_v24 = vadd.f32 %v913_v23, %v905_v21 }
 0xed5   :  { %2662 = vtanh.f32 %v3126_v24 }
 0xedb   :  { %v2663_v17 = vpop.eup %2662 }
 0xedc   :  { %918 = vrot.lane.b32.xlu1 %v2663_v17, %s2824_s23 }
 0xf40   :  { %v970_v37 = vpop.permute.xlu0 %969 }
 0xf41   :  { %v972_v29 = vmul.f32 %v970_v37, %v953_v62 }
 0xf43   :  { %v973_v40 = vpack.c.bf16 %v972_v29, %v972_v29 }
 0xf45   :  { %975 = vrot.lane.b32.xlu2 %v973_v40, %s2823_s2 }
 0xf4e   :  { %v919_v42 = vpop.permute.xlu1 %918 }
 0xf4f   :  { %v921_v43 = vmul.f32 %v919_v42, %v902_v13 }
 0xf51   :  { %v993_v19 = vpack.c.bf16 %v921_v43, %v921_v43 }
 0xf53   :  { %995 = vrot.lane.b32.xlu0 %v993_v19, %s2823_s2 }
 0xf9f   :  { %v976_v30 = vpop.permute.xlu2 %975 }
 0xfa0   :  { %2459 = vmatmul.msk.bf16.vlgmr.msra.gmra.mxu1 %vm209_vm6, %v976_v30  ;;  %2462 = vmatmul.msk.bf16.vlgmr.msra.gmra.mxu3 %vm209_vm6, %v976_v30 }
 0xfc5   :  { %v996_v41 = vpop.permute.xlu0 %995 }
 0xfc6   :  { %2460 = vmatmul.msk.bf16.vlgmr.msra.gmra.mxu2 %vm209_vm6, %v996_v41 }
0x101d   :  { %v989_v44 = vpop.f32.mrf.mxu1 }
0x101e   :  { %v990_v50 = vadd.f32 %v3143_v49, %v989_v44 }
0x1023   :  { %v1060_v46 = vpop.f32.mrf.mxu3 }
0x1024   :  { %v1064_v36 = vadd.f32 %v1060_v46, %v163_v45 }
0x1025   :  { %v991_v28 = vpop.f32.mrf.mxu1 }
0x1026   :  { %2664 = vtanh.f32 %v1064_v36  ;;  %v2463_v26 = vmul.f32 -1.442695, %v1064_v36 }
0x102b   :  { %v1062_v47 = vpop.f32.mrf.mxu3 }
0x102c   :  { %v2665_v48 = vpop.eup %2664 }
0x102d   :  { %1087 = vrot.lane.b32.xlu1 %v2665_v48, %s2820_s25 }
0x1049   :  { %v1009_v31 = vpop.f32.mrf.mxu2 }
0x104a   :  { %v1013_v51 = vadd.f32 %v1009_v31, %v990_v50 }
0x104c   :  { %2666 = vtanh.f32 %v1013_v51  ;;  %v2461_v33 = vmul.f32 -1.442695, %v1013_v51 }
0x104d   :  { %2668 = vpow2.f32 %v2463_v26 }
0x1051   :  { %v1011_v52 = vpop.f32.mrf.mxu2 }
0x1052   :  { %v2667_v39 = vpop.eup %2666 }
0x1053   :  { %1036 = vrot.lane.b32.xlu2 %v2667_v39, %s2820_s25  ;;  %v2669_v53 = vpop.eup %2668 }
0x1054   :  { %v1068_v54 = vadd.f32 1.0, %v2669_v53 }
0x1056   :  { %2670 = vrcp.f32 %v1068_v54  ;;  %v1080_v57 = vand.u32 2147483648, %v1068_v54  ;;  %vm1074_vm14 = vweird.f32 %v1068_v54  ;;  %v1078_v34 = vand.u32 2147483647, %v1068_v54 }
0x1057   :  { %2672 = vpow2.f32 %v2461_v33 }
0x1058   :  { %v1081_v60 = vor.u32 1.1754944e-38, %v1080_v57  ;;  %vm1079_vm0 = vcmp.eq.f32.partialorder %v1078_v34, 8.507059e+37  ;;  %v83_v57 = vld [vmem:[%s3480_s15] sm:$0xf] }
0x1059   :  { %v1219_v34 = vsel %vm1217_vm11, %v83_v57, 0 }
0x105a   :  { %1228 = vmatpush.bf16.msrb.mxu3 %v1219_v34 }
0x105c   :  { %v2671_v25 = vpop.eup %2670 }
0x105d   :  { %v2673_v3 = vpop.eup %2672  ;;  %v1070_v38 = vmul.f32 %v2671_v25, %v1068_v54  ;;  %vm1075_vm13 = vweird.f32 %v2671_v25 }
0x105e   :  { %v1017_v55 = vadd.f32 1.0, %v2673_v3  ;;  %vm1076_vm15 = vmor %vm1074_vm14, %vm1075_vm13 }
0x105f   :  { %v1071_v22 = vsub.f32 1.0, %v1070_v38 }
0x1060   :  { %2674 = vrcp.f32 %v1017_v55  ;;  %v1029_v4 = vand.u32 2147483648, %v1017_v55  ;;  %vm1023_vm3 = vweird.f32 %v1017_v55  ;;  %v1027_v5 = vand.u32 2147483647, %v1017_v55 }
0x1061   :  { %v1072_v35 = vmul.f32 %v2671_v25, %v1071_v22  ;;  %v2539_v22 = vld [vmem:[%s3478_s13] sm:$0xff] }
0x1062   :  { %v1030_v7 = vor.u32 1.1754944e-38, %v1029_v4  ;;  %vm1028_vm5 = vcmp.eq.f32.partialorder %v1027_v5, 8.507059e+37  ;;  %1203 = vmatpush.bf16.msrb.mxu2 %v2539_v22 }
0x1063   :  { %v1073_v32 = vadd.f32 %v2671_v25, %v1072_v35 }
0x1065   :  { %v1077_v59 = vsel %vm1076_vm15, %v2671_v25, %v1073_v32 }
0x1066   :  { %v2675_v56 = vpop.eup %2674  ;;  %v1082_v62 = vsel %vm1079_vm0, %v1081_v60, %v1077_v59  ;;  %v3172_v59 = vld [vmem:[%s3482_s8] sm:$0xff] }
0x1067   :  { %v1019_v58 = vmul.f32 %v2675_v56, %v1017_v55  ;;  %vm1024_vm2 = vweird.f32 %v2675_v56  ;;  %v1085_v11 = vmul.f32 %v1082_v62, %v3121_v18  ;;  %1254 = vmatpush.bf16.msra.mxu0 %v3172_v59  ;;  %1384 = vmatpush.bf16.msra.mxu3 %v3172_v59  ;;  %v2555_v60 = vld [vmem:[%s3479_s14] ss:$0 sm:$0xff] }
0x1068   :  { %vm1025_vm4 = vmor %vm1023_vm3, %vm1024_vm2 }
0x1069   :  { %v1020_v61 = vsub.f32 1.0, %v1019_v58 }
0x106b   :  { %v1021_v1 = vmul.f32 %v2675_v56, %v1020_v61 }
0x106d   :  { %v1022_v2 = vadd.f32 %v2675_v56, %v1021_v1  ;;  %v3182_v1 = vld [vmem:[%s3484_s11] sm:$0xff] }
0x106e   :  { %1334 = vmatpush.bf16.msra.mxu2 %v3182_v1 }
0x106f   :  { %v1026_v6 = vsel %vm1025_vm4, %v2675_v56, %v1022_v2  ;;  %v2556_v2 = vld [vmem:[%s3481_s16] ss:$0 sm:$0xff] }
0x1070   :  { %v1031_v9 = vsel %vm1028_vm5, %v1030_v7, %v1026_v6 }
0x1071   :  { %v1034_v15 = vmul.f32 %v1031_v9, %v3126_v24 }
0x109f   :  { %v1088_v63 = vpop.permute.xlu1 %1087 }
0x10a0   :  { %v1090_v0 = vmul.f32 %v1088_v63, %v1082_v62 }
0x10a2   :  { %1092 = vrot.lane.b32.xlu0 %v1090_v0, %s2821_s3 }
0x10ad   :  { %v1037_v8 = vpop.permute.xlu2 %1036 }
0x10ae   :  { %v1039_v10 = vmul.f32 %v1037_v8, %v1031_v9  ;;  %v3194_v8 = vld [vmem:[%s3483_s9] ss:$0 sm:$0xff] }
0x10b0   :  { %1041 = vrot.lane.b32.xlu1 %v1039_v10, %s2821_s3 }
0x1114   :  { %v1093_v12 = vpop.permute.xlu0 %1092 }
0x1115   :  { %v1095_v13 = vadd.f32 %v1093_v12, %v1085_v11 }
0x1117   :  { %2676 = vtanh.f32 %v1095_v13 }
0x111d   :  { %v2677_v14 = vpop.eup %2676 }
0x111e   :  { %1098 = vrot.lane.b32.xlu2 %v2677_v14, %s2824_s23 }
0x1122   :  { %v1042_v16 = vpop.permute.xlu1 %1041 }
0x1123   :  { %v1044_v20 = vadd.f32 %v1042_v16, %v1034_v15 }
0x1125   :  { %2678 = vtanh.f32 %v1044_v20 }
0x112b   :  { %v2679_v21 = vpop.eup %2678 }
0x112c   :  { %1047 = vrot.lane.b32.xlu0 %v2679_v21, %s2824_s23 }
0x1178   :  { %v1099_v23 = vpop.permute.xlu2 %1098 }
0x1179   :  { %v1101_v17 = vmul.f32 %v1099_v23, %v1082_v62 }
0x117b   :  { %v1102_v37 = vpack.c.bf16 %v1101_v17, %v1101_v17 }
0x117d   :  { %1104 = vrot.lane.b32.xlu1 %v1102_v37, %s2823_s2 }
0x119e   :  { %v1048_v18 = vpop.permute.xlu0 %1047 }
0x119f   :  { %v1050_v29 = vmul.f32 %v1048_v18, %v1031_v9 }
0x11a1   :  { %v1122_v40 = vpack.c.bf16 %v1050_v29, %v1050_v29 }
0x11a3   :  { %1124 = vrot.lane.b32.xlu2 %v1122_v40, %s2823_s2 }
0x11ef   :  { %v1105_v42 = vpop.permute.xlu1 %1104 }
0x11f0   :  { %2464 = vmatmul.msk.bf16.vlgmr.msrb.gmra.mxu0 %vm209_vm6, %v1105_v42 }
0x11fd   :  { %v1125_v24 = vpop.permute.xlu2 %1124 }
0x11fe   :  { %2465 = vmatmul.msk.bf16.vlgmr.msrb.gmra.mxu1 %vm209_vm6, %v1125_v24 }
0x126d   :  { %v1118_v43 = vpop.f32.mrf.mxu0 }
0x126e   :  { %v1119_v30 = vadd.f32 %v3143_v49, %v1118_v43 }
0x1275   :  { %v1120_v19 = vpop.f32.mrf.mxu0 }
0x127b   :  { %v1138_v41 = vpop.f32.mrf.mxu1 }
0x127c   :  { %v1142_v44 = vadd.f32 %v1138_v41, %v1119_v30 }
0x127e   :  { %2680 = vtanh.f32 %v1142_v44  ;;  %v2466_v46 = vmul.f32 -1.442695, %v1142_v44  ;;  %v3203_v44 = vld [vmem:[%s3485_s10] sm:$0xff] }
0x127f   :  { %1315 = vmatpush.bf16.msra.mxu1 %v3203_v44  ;;  %1446 = vmatpush.bf16.msrb.mxu0 %v3203_v44 }
0x1280   :  { %2682 = vpow2.f32 %v2466_v46 }
0x1283   :  { %v1140_v27 = vpop.f32.mrf.mxu1  ;;  %1466 = vmatpush.bf16.msrb.mxu1 %v3182_v1 }
0x1284   :  { %v2681_v45 = vpop.eup %2680 }
0x1285   :  { %1165 = vrot.lane.b32.xlu0 %v2681_v45, %s2820_s25 }
0x1286   :  { %v2683_v36 = vpop.eup %2682 }
0x1287   :  { %v1146_v28 = vadd.f32 1.0, %v2683_v36 }
0x1289   :  { %2684 = vrcp.f32 %v1146_v28  ;;  %v1158_v52 = vand.u32 2147483648, %v1146_v28  ;;  %vm1152_vm8 = vweird.f32 %v1146_v28  ;;  %v1156_v49 = vand.u32 2147483647, %v1146_v28 }
0x128b   :  { %v1159_v26 = vor.u32 1.1754944e-38, %v1158_v52  ;;  %vm1157_vm10 = vcmp.eq.f32.partialorder %v1156_v49, 8.507059e+37 }
0x128f   :  { %v2685_v47 = vpop.eup %2684 }
0x1290   :  { %v1148_v48 = vmul.f32 %v2685_v47, %v1146_v28  ;;  %vm1153_vm7 = vweird.f32 %v2685_v47 }
0x1291   :  { %vm1154_vm9 = vmor %vm1152_vm8, %vm1153_vm7 }
0x1292   :  { %v1149_v50 = vsub.f32 1.0, %v1148_v48 }
0x1294   :  { %v1150_v31 = vmul.f32 %v2685_v47, %v1149_v50 }
0x1296   :  { %v1151_v51 = vadd.f32 %v2685_v47, %v1150_v31 }
0x1298   :  { %v1155_v39 = vsel %vm1154_vm9, %v2685_v47, %v1151_v51  ;;  %v3219_v47 = vld [vmem:[%s3486_s12] ss:$0 sm:$0xff] }
0x1299   :  { %v1160_v54 = vsel %vm1157_vm10, %v1159_v26, %v1155_v39 }
0x129a   :  { %v1163_v25 = vmul.f32 %v1160_v54, %v1044_v20 }
0x12f7   :  { %v1166_v53 = vpop.permute.xlu0 %1165 }
0x12f8   :  { %v1168_v33 = vmul.f32 %v1166_v53, %v1160_v54 }
0x12fa   :  { %1170 = vrot.lane.b32.xlu1 %v1168_v33, %s2821_s3 }
0x136c   :  { %v1171_v3 = vpop.permute.xlu1 %1170 }
0x136d   :  { %v1173_v38 = vadd.f32 %v1171_v3, %v1163_v25 }
0x136f   :  { %2686 = vtanh.f32 %v1173_v38 }
0x1375   :  { %v2687_v55 = vpop.eup %2686 }
0x1376   :  { %1176 = vrot.lane.b32.xlu2 %v2687_v55, %s2824_s23 }
0x13d0   :  { %v1177_v35 = vpop.permute.xlu2 %1176 }
0x13d1   :  { %v1179_v56 = vmul.f32 %v1177_v35, %v1160_v54 }
0x13d3   :  { %v1180_v32 = vpack.c.bf16 %v1179_v56, %v1179_v56 }
0x13d5   :  { %1185 = vrot.lane.b32.xlu0 %v1180_v32, %s2823_s2 }
0x1447   :  { %v1186_v58 = vpop.permute.xlu0 %1185 }
0x1448   :  { %2471 = vmatmul.msk.bf16.vlgmr.msrb.gmra.mxu2 %vm209_vm6, %v1186_v58 }
0x1449   :  { %1526 = vmatpush.bf16.msrb.mxu2 %v3172_v59 }
0x14cb   :  { %v1205_v61 = vpop.f32.mrf.mxu2 }
0x14cc   :  { %v1206_v62 = vadd.f32 %v2555_v60, %v1205_v61 }
0x14ce   :  { %v1209_v63 = vpack.c.bf16 %v1206_v62, %v1206_v62 }
0x14d0   :  { %2472 = vmatmul.msk.bf16.vlgmr.msrb.gmra.mxu3 %vm1213_vm12, %v1209_v63 }
0x14d1   :  { %1584 = vmatpush.bf16.msrb.mxu3 %v3203_v44 }
0x14d3   :  { %v1207_v0 = vpop.f32.mrf.mxu2 }
0x1553   :  { %v1230_v4 = vpop.f32.mrf.mxu3 }
0x1554   :  { %v1231_v5 = vadd.f32 %v2556_v2, %v1230_v4 }
0x1556   :  { %v1237_v6 = vpack.c.bf16 %v1231_v5, %v1231_v5 }
0x1558   :  { %2477 = vmatmul.msk.bf16.vlgmr.msra.gmra.mxu0 %vm209_vm6, %v1237_v6  ;;  %2488 = vmatmul.msk.bf16.vlgmr.msra.gmra.mxu2 %vm209_vm6, %v1237_v6 }
0x1559   :  { %1604 = vmatpush.bf16.msra.mxu0 %v3182_v1  ;;  %1718 = vmatpush.bf16.msra.mxu2 %v3203_v44 }
0x155b   :  { %v1232_v7 = vpop.f32.mrf.mxu3 }
0x15d5   :  { %v1256_v9 = vpop.f32.mrf.mxu0 }
0x15d6   :  { %v1260_v10 = vadd.f32 %v3194_v8, %v1256_v9 }
0x15d8   :  { %2688 = vtanh.f32 %v1260_v10  ;;  %v2478_v15 = vmul.f32 -1.442695, %v1260_v10 }
0x15da   :  { %2690 = vpow2.f32 %v2478_v15 }
0x15db   :  { %v1336_v11 = vpop.f32.mrf.mxu2 }
0x15dd   :  { %v1258_v12 = vpop.f32.mrf.mxu0 }
0x15de   :  { %v2689_v13 = vpop.eup %2688 }
0x15df   :  { %1282 = vrot.lane.b32.xlu1 %v2689_v13, %s2820_s25 }
0x15e0   :  { %v2691_v16 = vpop.eup %2690 }
0x15e1   :  { %v1264_v20 = vadd.f32 1.0, %v2691_v16 }
0x15e3   :  { %v1338_v14 = vpop.f32.mrf.mxu2  ;;  %2692 = vrcp.f32 %v1264_v20  ;;  %v1276_v29 = vand.u32 2147483648, %v1264_v20  ;;  %vm1270_vm14 = vweird.f32 %v1264_v20  ;;  %v1274_v40 = vand.u32 2147483647, %v1264_v20 }
0x15e5   :  { %v1277_v24 = vor.u32 1.1754944e-38, %v1276_v29  ;;  %vm1275_vm0 = vcmp.eq.f32.partialorder %v1274_v40, 8.507059e+37 }
0x15e9   :  { %v2693_v21 = vpop.eup %2692 }
0x15ea   :  { %v1266_v23 = vmul.f32 %v2693_v21, %v1264_v20  ;;  %vm1271_vm13 = vweird.f32 %v2693_v21 }
0x15eb   :  { %vm1272_vm15 = vmor %vm1270_vm14, %vm1271_vm13 }
0x15ec   :  { %v1267_v17 = vsub.f32 1.0, %v1266_v23 }
0x15ee   :  { %v1268_v37 = vmul.f32 %v2693_v21, %v1267_v17 }
0x15f0   :  { %v1269_v18 = vadd.f32 %v2693_v21, %v1268_v37 }
0x15f2   :  { %v1273_v42 = vsel %vm1272_vm15, %v2693_v21, %v1269_v18 }
0x15f3   :  { %v1278_v19 = vsel %vm1275_vm0, %v1277_v24, %v1273_v42 }
0x1651   :  { %v1283_v43 = vpop.permute.xlu1 %1282 }
0x1652   :  { %v1285_v30 = vmul.f32 %v1283_v43, %v1278_v19 }
0x1654   :  { %2694 = vtanh.f32 %v1285_v30 }
0x165a   :  { %v2695_v41 = vpop.eup %2694 }
0x165b   :  { %1288 = vrot.lane.b32.xlu2 %v2695_v41, %s2822_s26 }
0x1663   :  { %1412 = vrot.lane.b32.xlu2 %v1285_v30, %s2821_s3 }
0x16b5   :  { %v1289_v27 = vpop.permute.xlu2 %1288 }
0x16b6   :  { %v1291_v45 = vmul.f32 %v1289_v27, %v1278_v19 }
0x16b8   :  { %v1292_v46 = vpack.c.bf16 %v1291_v45, %v1291_v45 }
0x16ba   :  { %1297 = vrot.lane.b32.xlu0 %v1292_v46, %s2823_s2 }
0x16bd   :  { %v1413_v16 = vpop.permute.xlu2 %1412 }
0x172c   :  { %v1298_v36 = vpop.permute.xlu0 %1297 }
0x172d   :  { %2483 = vmatmul.msk.bf16.vlgmr.msra.gmra.mxu1 %vm209_vm6, %v1298_v36  ;;  %2490 = vmatmul.msk.bf16.vlgmr.msra.gmra.mxu3 %vm209_vm6, %v1298_v36 }
0x172e   :  { %1660 = vmatpush.bf16.msra.mxu1 %v3172_v59  ;;  %1738 = vmatpush.bf16.msra.mxu3 %v3182_v1 }
0x17aa   :  { %v1317_v28 = vpop.f32.mrf.mxu1 }
0x17ab   :  { %v1318_v51 = vadd.f32 %v3219_v47, %v1317_v28 }
0x17ad   :  { %v1340_v52 = vadd.f32 %v1336_v11, %v1318_v51 }
0x17af   :  { %v2489_v54 = vmul.f32 -1.442695, %v1340_v52 }
0x17b0   :  { %v1386_v48 = vpop.f32.mrf.mxu3 }
0x17b1   :  { %v1390_v50 = vadd.f32 %v3194_v8, %v1386_v48 }
0x17b2   :  { %v1319_v31 = vpop.f32.mrf.mxu1 }
0x17b3   :  { %2696 = vtanh.f32 %v1390_v50  ;;  %v2491_v53 = vmul.f32 -1.442695, %v1390_v50 }
0x17b4   :  { %2698 = vtanh.f32 %v1340_v52 }
0x17b5   :  { %2700 = vpow2.f32 %v2491_v53 }
0x17b6   :  { %2702 = vpow2.f32 %v2489_v54 }
0x17b8   :  { %v1388_v49 = vpop.f32.mrf.mxu3 }
0x17b9   :  { %v2697_v39 = vpop.eup %2696 }
0x17ba   :  { %1417 = vrot.lane.b32.xlu1 %v2697_v39, %s2820_s25  ;;  %v2699_v26 = vpop.eup %2698 }
0x17bb   :  { %v2701_v33 = vpop.eup %2700 }
0x17bc   :  { %v1394_v25 = vadd.f32 1.0, %v2701_v33  ;;  %v2703_v3 = vpop.eup %2702 }
0x17bd   :  { %v1344_v38 = vadd.f32 1.0, %v2703_v3 }
0x17be   :  { %2704 = vrcp.f32 %v1394_v25  ;;  %v1406_v60 = vand.u32 2147483648, %v1394_v25  ;;  %vm1400_vm3 = vweird.f32 %v1394_v25  ;;  %v1404_v61 = vand.u32 2147483647, %v1394_v25 }
0x17bf   :  { %2706 = vrcp.f32 %v1344_v38  ;;  %v1356_v7 = vand.u32 2147483648, %v1344_v38  ;;  %vm1350_vm8 = vweird.f32 %v1344_v38  ;;  %v1354_v9 = vand.u32 2147483647, %v1344_v38 }
0x17c0   :  { %v1407_v0 = vor.u32 1.1754944e-38, %v1406_v60  ;;  %vm1405_vm5 = vcmp.eq.f32.partialorder %v1404_v61, 8.507059e+37 }
0x17c1   :  { %v1357_v11 = vor.u32 1.1754944e-38, %v1356_v7  ;;  %vm1355_vm10 = vcmp.eq.f32.partialorder %v1354_v9, 8.507059e+37 }
0x17c2   :  { %1362 = vrot.lane.b32.xlu1 %v2699_v26, %s2820_s25 }
0x17c4   :  { %v2705_v55 = vpop.eup %2704 }
0x17c5   :  { %v1396_v22 = vmul.f32 %v2705_v55, %v1394_v25  ;;  %v2707_v56 = vpop.eup %2706  ;;  %vm1401_vm2 = vweird.f32 %v2705_v55 }
0x17c6   :  { %v1346_v57 = vmul.f32 %v2707_v56, %v1344_v38  ;;  %vm1402_vm4 = vmor %vm1400_vm3, %vm1401_vm2  ;;  %vm1351_vm7 = vweird.f32 %v2707_v56 }
0x17c7   :  { %v1397_v35 = vsub.f32 1.0, %v1396_v22  ;;  %vm1352_vm9 = vmor %vm1350_vm8, %vm1351_vm7 }
0x17c8   :  { %v1347_v58 = vsub.f32 1.0, %v1346_v57 }
0x17c9   :  { %v1398_v32 = vmul.f32 %v2705_v55, %v1397_v35 }
0x17ca   :  { %v1348_v63 = vmul.f32 %v2707_v56, %v1347_v58 }
0x17cb   :  { %v1399_v34 = vadd.f32 %v2705_v55, %v1398_v32 }
0x17cc   :  { %v1349_v6 = vadd.f32 %v2707_v56, %v1348_v63 }
0x17cd   :  { %v1403_v62 = vsel %vm1402_vm4, %v2705_v55, %v1399_v34 }
0x17ce   :  { %v1408_v4 = vsel %vm1405_vm5, %v1407_v0, %v1403_v62  ;;  %v1353_v10 = vsel %vm1352_vm9, %v2707_v56, %v1349_v6 }
0x17cf   :  { %v1358_v13 = vsel %vm1355_vm10, %v1357_v11, %v1353_v10  ;;  %v1415_v20 = vmul.f32 %v1413_v16, %v1408_v4 }
0x182c   :  { %v1418_v2 = vpop.permute.xlu1 %1417 }
0x182d   :  { %v1420_v5 = vmul.f32 %v1418_v2, %v1408_v4 }
0x182f   :  { %1422 = vrot.lane.b32.xlu0 %v1420_v5, %s2821_s3 }
0x1834   :  { %v1363_v12 = vpop.permute.xlu1 %1362 }
0x1835   :  { %v1365_v14 = vmul.f32 %v1363_v12, %v1358_v13 }
0x1837   :  { %2708 = vtanh.f32 %v1365_v14 }
0x183d   :  { %v2709_v15 = vpop.eup %2708 }
0x183e   :  { %1368 = vrot.lane.b32.xlu0 %v2709_v15, %s2822_s26 }
0x18a1   :  { %v1423_v21 = vpop.permute.xlu0 %1422 }
0x18a2   :  { %v3227_v23 = vadd.f32 %v1423_v21, %v1415_v20 }
0x18a4   :  { %2710 = vtanh.f32 %v3227_v23 }
0x18aa   :  { %v2711_v17 = vpop.eup %2710 }
0x18ab   :  { %1428 = vrot.lane.b32.xlu2 %v2711_v17, %s2824_s23 }
0x18b0   :  { %v1369_v37 = vpop.permute.xlu0 %1368 }
0x18b1   :  { %v3231_v18 = vmul.f32 %v1369_v37, %v1358_v13 }
0x18b3   :  { %v1452_v29 = vpack.c.bf16 %v3231_v18, %v3231_v18 }
0x18b5   :  { %1454 = vrot.lane.b32.xlu2 %v1452_v29, %s2823_s2 }
0x1905   :  { %v1429_v40 = vpop.permute.xlu2 %1428 }
0x1906   :  { %v1431_v42 = vmul.f32 %v1429_v40, %v1408_v4 }
0x1908   :  { %v1432_v24 = vpack.c.bf16 %v1431_v42, %v1431_v42 }
0x190a   :  { %1434 = vrot.lane.b32.xlu1 %v1432_v24, %s2823_s2 }
0x190f   :  { %v1455_v43 = vpop.permute.xlu2 %1454 }
0x1910   :  { %2493 = vmatmul.msk.bf16.vlgmr.msrb.gmra.mxu1 %vm209_vm6, %v1455_v43 }
0x1911   :  { %1852 = vmatpush.bf16.msrb.mxu1 %v3203_v44 }
0x197c   :  { %v1435_v19 = vpop.permute.xlu1 %1434 }
0x197d   :  { %2492 = vmatmul.msk.bf16.vlgmr.msrb.gmra.mxu0 %vm209_vm6, %v1435_v19  ;;  %2495 = vmatmul.msk.bf16.vlgmr.msrb.gmra.mxu2 %vm209_vm6, %v1435_v19 }
0x197e   :  { %1794 = vmatpush.bf16.msrb.mxu0 %v3172_v59  ;;  %1872 = vmatpush.bf16.msrb.mxu2 %v3182_v1 }
0x198d   :  { %v1468_v30 = vpop.f32.mrf.mxu1 }
0x1995   :  { %v1470_v41 = vpop.f32.mrf.mxu1 }
0x19fa   :  { %v1448_v27 = vpop.f32.mrf.mxu0 }
0x19fb   :  { %v1449_v45 = vadd.f32 %v3219_v47, %v1448_v27 }
0x19fd   :  { %v1472_v46 = vadd.f32 %v1468_v30, %v1449_v45 }
0x19ff   :  { %2712 = vtanh.f32 %v1472_v46  ;;  %v2494_v52 = vmul.f32 -1.442695, %v1472_v46 }
0x1a00   :  { %v1528_v36 = vpop.f32.mrf.mxu2 }
0x1a01   :  { %v1532_v28 = vadd.f32 %v3194_v8, %v1528_v36 }
0x1a02   :  { %v1450_v48 = vpop.f32.mrf.mxu0 }
0x1a03   :  { %2714 = vtanh.f32 %v1532_v28  ;;  %v2496_v49 = vmul.f32 -1.442695, %v1532_v28 }
0x1a04   :  { %2716 = vpow2.f32 %v2494_v52 }
0x1a05   :  { %v2713_v50 = vpop.eup %2712  ;;  %2718 = vpow2.f32 %v2496_v49 }
0x1a06   :  { %1499 = vrot.lane.b32.xlu1 %v2713_v50, %s2820_s25 }
0x1a08   :  { %v1530_v31 = vpop.f32.mrf.mxu2 }
0x1a09   :  { %v2715_v51 = vpop.eup %2714 }
0x1a0a   :  { %1555 = vrot.lane.b32.xlu0 %v2715_v51, %s2820_s25  ;;  %v2717_v39 = vpop.eup %2716 }
0x1a0b   :  { %v1476_v26 = vadd.f32 1.0, %v2717_v39  ;;  %v2719_v53 = vpop.eup %2718 }
0x1a0c   :  { %v1536_v54 = vadd.f32 1.0, %v2719_v53 }
0x1a0d   :  { %2720 = vrcp.f32 %v1476_v26  ;;  %v1488_v57 = vand.u32 2147483648, %v1476_v26  ;;  %vm1482_vm12 = vweird.f32 %v1476_v26  ;;  %v1486_v34 = vand.u32 2147483647, %v1476_v26 }
0x1a0e   :  { %2722 = vrcp.f32 %v1536_v54  ;;  %v1548_v62 = vand.u32 2147483648, %v1536_v54  ;;  %vm1542_vm0 = vweird.f32 %v1536_v54  ;;  %v1546_v63 = vand.u32 2147483647, %v1536_v54 }
0x1a0f   :  { %v1489_v61 = vor.u32 1.1754944e-38, %v1488_v57  ;;  %vm1487_vm15 = vcmp.eq.f32.partialorder %v1486_v34, 8.507059e+37 }
0x1a10   :  { %v1549_v6 = vor.u32 1.1754944e-38, %v1548_v62  ;;  %vm1547_vm3 = vcmp.eq.f32.partialorder %v1546_v63, 8.507059e+37 }
0x1a12   :  { %1494 = vrot.lane.b32.xlu0 %v1365_v14, %s2821_s3 }
0x1a13   :  { %v2721_v33 = vpop.eup %2720 }
0x1a14   :  { %v1478_v25 = vmul.f32 %v2721_v33, %v1476_v26  ;;  %v2723_v3 = vpop.eup %2722  ;;  %vm1483_vm11 = vweird.f32 %v2721_v33 }
0x1a15   :  { %v1538_v55 = vmul.f32 %v2723_v3, %v1536_v54  ;;  %vm1484_vm13 = vmor %vm1482_vm12, %vm1483_vm11  ;;  %vm1543_vm14 = vweird.f32 %v2723_v3 }
0x1a16   :  { %v1479_v38 = vsub.f32 1.0, %v1478_v25  ;;  %vm1544_vm2 = vmor %vm1542_vm0, %vm1543_vm14 }
0x1a17   :  { %v1539_v35 = vsub.f32 1.0, %v1538_v55 }
0x1a18   :  { %v1480_v22 = vmul.f32 %v2721_v33, %v1479_v38 }
0x1a19   :  { %v1540_v32 = vmul.f32 %v2723_v3, %v1539_v35 }
0x1a1a   :  { %v1481_v56 = vadd.f32 %v2721_v33, %v1480_v22 }
0x1a1b   :  { %v1541_v60 = vadd.f32 %v2723_v3, %v1540_v32 }
0x1a1c   :  { %v1485_v58 = vsel %vm1484_vm13, %v2721_v33, %v1481_v56 }
0x1a1d   :  { %v1490_v2 = vsel %vm1487_vm15, %v1489_v61, %v1485_v58  ;;  %v1545_v5 = vsel %vm1544_vm2, %v2723_v3, %v1541_v60 }
0x1a1e   :  { %v1550_v9 = vsel %vm1547_vm3, %v1549_v6, %v1545_v5 }
0x1a1f   :  { %v1553_v11 = vmul.f32 %v1550_v9, %v3227_v23 }
0x1a78   :  { %v1500_v0 = vpop.permute.xlu1 %1499 }
0x1a79   :  { %v1502_v4 = vmul.f32 %v1500_v0, %v1490_v2 }
0x1a7b   :  { %1504 = vrot.lane.b32.xlu1 %v1502_v4, %s2821_s3 }
0x1a7c   :  { %v1556_v7 = vpop.permute.xlu0 %1555 }
0x1a7d   :  { %v1558_v10 = vmul.f32 %v1556_v7, %v1550_v9 }
0x1a7f   :  { %1560 = vrot.lane.b32.xlu2 %v1558_v10, %s2821_s3 }
0x1a84   :  { %v1495_v15 = vpop.permute.xlu0 %1494 }
0x1a85   :  { %v1497_v16 = vmul.f32 %v1495_v15, %v1490_v2 }
0x1ad9   :  { %v1561_v12 = vpop.permute.xlu2 %1560 }
0x1ada   :  { %v3251_v13 = vadd.f32 %v1561_v12, %v1553_v11 }
0x1adc   :  { %2724 = vtanh.f32 %v3251_v13 }
0x1ae2   :  { %v2725_v14 = vpop.eup %2724 }
0x1ae3   :  { %1566 = vrot.lane.b32.xlu2 %v2725_v14, %s2824_s23 }
0x1aed   :  { %v1505_v20 = vpop.permute.xlu1 %1504 }
0x1aee   :  { %v3255_v21 = vadd.f32 %v1505_v20, %v1497_v16 }
0x1af0   :  { %2726 = vtanh.f32 %v3255_v21 }
0x1af6   :  { %v2727_v17 = vpop.eup %2726 }
0x1af7   :  { %1510 = vrot.lane.b32.xlu0 %v2727_v17, %s2824_s23 }
0x1b3d   :  { %v1567_v37 = vpop.permute.xlu2 %1566 }
0x1b3e   :  { %v1569_v23 = vmul.f32 %v1567_v37, %v1550_v9 }
0x1b40   :  { %v1570_v29 = vpack.c.bf16 %v1569_v23, %v1569_v23 }
0x1b42   :  { %1572 = vrot.lane.b32.xlu1 %v1570_v29, %s2823_s2 }
0x1b69   :  { %v1511_v40 = vpop.permute.xlu0 %1510 }
0x1b6a   :  { %v3260_v42 = vmul.f32 %v1511_v40, %v1490_v2 }
0x1b6c   :  { %v1590_v24 = vpack.c.bf16 %v3260_v42, %v3260_v42 }
0x1b6e   :  { %1592 = vrot.lane.b32.xlu2 %v1590_v24, %s2823_s2 }
0x1bb4   :  { %v1573_v43 = vpop.permute.xlu1 %1572 }
0x1bb5   :  { %2497 = vmatmul.msk.bf16.vlgmr.msrb.gmra.mxu3 %vm209_vm6, %v1573_v43  ;;  %2500 = vmatmul.msk.bf16.vlgmr.msra.gmra.mxu1 %vm209_vm6, %v1573_v43 }
0x1bb6   :  { %1928 = vmatpush.bf16.msrb.mxu3 %v3172_v59  ;;  %2006 = vmatpush.bf16.msra.mxu1 %v3182_v1 }
0x1bc8   :  { %v1593_v19 = vpop.permute.xlu2 %1592 }
0x1bc9   :  { %2498 = vmatmul.msk.bf16.vlgmr.msra.gmra.mxu0 %vm209_vm6, %v1593_v19 }
0x1bca   :  { %1986 = vmatpush.bf16.msra.mxu0 %v3203_v44 }
0x1c32   :  { %v1662_v30 = vpop.f32.mrf.mxu1 }
0x1c33   :  { %v1666_v41 = vadd.f32 %v3194_v8, %v1662_v30 }
0x1c35   :  { %2728 = vtanh.f32 %v1666_v41  ;;  %v2501_v52 = vmul.f32 -1.442695, %v1666_v41 }
0x1c38   :  { %v1586_v27 = vpop.f32.mrf.mxu3 }
0x1c39   :  { %v1587_v28 = vadd.f32 %v3219_v47, %v1586_v27 }
0x1c3a   :  { %v1664_v45 = vpop.f32.mrf.mxu1 }
0x1c3b   :  { %v2729_v46 = vpop.eup %2728 }
0x1c3c   :  { %1689 = vrot.lane.b32.xlu0 %v2729_v46, %s2820_s25 }
0x1c40   :  { %v1588_v36 = vpop.f32.mrf.mxu3 }
0x1c46   :  { %v1606_v48 = vpop.f32.mrf.mxu0 }
0x1c47   :  { %v1610_v50 = vadd.f32 %v1606_v48, %v1587_v28 }
0x1c49   :  { %2730 = vtanh.f32 %v1610_v50  ;;  %v2499_v26 = vmul.f32 -1.442695, %v1610_v50 }
0x1c4a   :  { %2732 = vpow2.f32 %v2501_v52 }
0x1c4e   :  { %v1608_v31 = vpop.f32.mrf.mxu0 }
0x1c4f   :  { %v2731_v51 = vpop.eup %2730 }
0x1c50   :  { %1633 = vrot.lane.b32.xlu1 %v2731_v51, %s2820_s25  ;;  %v2733_v49 = vpop.eup %2732 }
0x1c51   :  { %v1670_v39 = vadd.f32 1.0, %v2733_v49 }
0x1c53   :  { %2734 = vrcp.f32 %v1670_v39  ;;  %v1682_v22 = vand.u32 2147483648, %v1670_v39  ;;  %vm1676_vm5 = vweird.f32 %v1670_v39  ;;  %v1680_v35 = vand.u32 2147483647, %v1670_v39 }
0x1c54   :  { %2736 = vpow2.f32 %v2499_v26 }
0x1c55   :  { %v1683_v57 = vor.u32 1.1754944e-38, %v1682_v22  ;;  %vm1681_vm8 = vcmp.eq.f32.partialorder %v1680_v35, 8.507059e+37 }
0x1c59   :  { %v2735_v53 = vpop.eup %2734 }
0x1c5a   :  { %v1672_v54 = vmul.f32 %v2735_v53, %v1670_v39  ;;  %v2737_v33 = vpop.eup %2736  ;;  %vm1677_vm4 = vweird.f32 %v2735_v53 }
0x1c5b   :  { %v1614_v3 = vadd.f32 1.0, %v2737_v33  ;;  %vm1678_vm7 = vmor %vm1676_vm5, %vm1677_vm4 }
0x1c5c   :  { %v1673_v25 = vsub.f32 1.0, %v1672_v54 }
0x1c5d   :  { %2738 = vrcp.f32 %v1614_v3  ;;  %v1626_v2 = vand.u32 2147483648, %v1614_v3  ;;  %vm1620_vm10 = vweird.f32 %v1614_v3  ;;  %v1624_v4 = vand.u32 2147483647, %v1614_v3 }
0x1c5e   :  { %v1674_v38 = vmul.f32 %v2735_v53, %v1673_v25 }
0x1c5f   :  { %v1627_v6 = vor.u32 1.1754944e-38, %v1626_v2  ;;  %vm1625_vm12 = vcmp.eq.f32.partialorder %v1624_v4, 8.507059e+37 }
0x1c60   :  { %v1675_v55 = vadd.f32 %v2735_v53, %v1674_v38 }
0x1c62   :  { %v1679_v56 = vsel %vm1678_vm7, %v2735_v53, %v1675_v55 }
0x1c63   :  { %v2739_v32 = vpop.eup %2738  ;;  %v1684_v34 = vsel %vm1681_vm8, %v1683_v57, %v1679_v56 }
0x1c64   :  { %v1616_v61 = vmul.f32 %v2739_v32, %v1614_v3  ;;  %vm1621_vm9 = vweird.f32 %v2739_v32  ;;  %v1687_v11 = vmul.f32 %v1684_v34, %v3251_v13 }
0x1c65   :  { %vm1622_vm11 = vmor %vm1620_vm10, %vm1621_vm9 }
0x1c66   :  { %v1617_v62 = vsub.f32 1.0, %v1616_v61 }
0x1c68   :  { %v1618_v63 = vmul.f32 %v2739_v32, %v1617_v62 }
0x1c6a   :  { %v1619_v0 = vadd.f32 %v2739_v32, %v1618_v63 }
0x1c6c   :  { %v1623_v5 = vsel %vm1622_vm11, %v2739_v32, %v1619_v0 }
0x1c6d   :  { %v1628_v9 = vsel %vm1625_vm12, %v1627_v6, %v1623_v5 }
0x1c6e   :  { %v1631_v16 = vmul.f32 %v1628_v9, %v3255_v21 }
0x1cae   :  { %v1690_v58 = vpop.permute.xlu0 %1689 }
0x1caf   :  { %v1692_v60 = vmul.f32 %v1690_v58, %v1684_v34 }
0x1cb1   :  { %1694 = vrot.lane.b32.xlu2 %v1692_v60, %s2821_s3 }
0x1cc2   :  { %v1634_v7 = vpop.permute.xlu1 %1633 }
0x1cc3   :  { %v1636_v10 = vmul.f32 %v1634_v7, %v1628_v9 }
0x1cc5   :  { %1638 = vrot.lane.b32.xlu0 %v1636_v10, %s2821_s3 }
0x1d0b   :  { %v1695_v12 = vpop.permute.xlu2 %1694 }
0x1d0c   :  { %v3278_v14 = vadd.f32 %v1695_v12, %v1687_v11 }
0x1d0e   :  { %2740 = vtanh.f32 %v3278_v14 }
0x1d14   :  { %v2741_v15 = vpop.eup %2740 }
0x1d15   :  { %1700 = vrot.lane.b32.xlu1 %v2741_v15, %s2824_s23 }
0x1d37   :  { %v1639_v20 = vpop.permute.xlu0 %1638 }
0x1d38   :  { %v3283_v17 = vadd.f32 %v1639_v20, %v1631_v16 }
0x1d3a   :  { %2742 = vtanh.f32 %v3283_v17 }
0x1d40   :  { %v2743_v37 = vpop.eup %2742 }
0x1d41   :  { %1644 = vrot.lane.b32.xlu2 %v2743_v37, %s2824_s23 }
0x1d87   :  { %v1701_v23 = vpop.permute.xlu1 %1700 }
0x1d88   :  { %v1703_v13 = vmul.f32 %v1701_v23, %v1684_v34 }
0x1d8a   :  { %v1704_v29 = vpack.c.bf16 %v1703_v13, %v1703_v13 }
0x1d8c   :  { %1706 = vrot.lane.b32.xlu0 %v1704_v29, %s2823_s2 }
0x1d9b   :  { %v1645_v40 = vpop.permute.xlu2 %1644 }
0x1d9c   :  { %v3288_v24 = vmul.f32 %v1645_v40, %v1628_v9 }
0x1d9e   :  { %v1724_v43 = vpack.c.bf16 %v3288_v24, %v3288_v24 }
0x1da0   :  { %1726 = vrot.lane.b32.xlu1 %v1724_v43, %s2823_s2 }
0x1dfe   :  { %v1707_v21 = vpop.permute.xlu0 %1706 }
0x1dff   :  { %2502 = vmatmul.msk.bf16.vlgmr.msra.gmra.mxu2 %vm209_vm6, %v1707_v21  ;;  %2505 = vmatmul.msk.bf16.vlgmr.msrb.gmra.mxu0 %vm209_vm6, %v1707_v21 }
0x1e00   :  { %2062 = vmatpush.bf16.msra.mxu2 %v3172_v59  ;;  %2140 = vmatpush.bf16.msrb.mxu0 %v3182_v1 }
0x1e12   :  { %v1727_v19 = vpop.permute.xlu1 %1726 }
0x1e13   :  { %2503 = vmatmul.msk.bf16.vlgmr.msra.gmra.mxu3 %vm209_vm6, %v1727_v19 }
0x1e14   :  { %2120 = vmatpush.bf16.msra.mxu3 %v3203_v44 }
0x1e7c   :  { %v1796_v30 = vpop.f32.mrf.mxu0 }
0x1e7d   :  { %v1800_v41 = vadd.f32 %v3194_v8, %v1796_v30 }
0x1e7f   :  { %2744 = vtanh.f32 %v1800_v41  ;;  %v2506_v52 = vmul.f32 -1.442695, %v1800_v41 }
0x1e82   :  { %v1720_v27 = vpop.f32.mrf.mxu2 }
0x1e83   :  { %v1721_v28 = vadd.f32 %v3219_v47, %v1720_v27 }
0x1e84   :  { %v1798_v45 = vpop.f32.mrf.mxu0 }
0x1e85   :  { %v2745_v46 = vpop.eup %2744 }
0x1e86   :  { %1823 = vrot.lane.b32.xlu2 %v2745_v46, %s2820_s25 }
0x1e8a   :  { %v1722_v36 = vpop.f32.mrf.mxu2 }
0x1e96   :  { %v1740_v48 = vpop.f32.mrf.mxu3 }
0x1e97   :  { %v1744_v50 = vadd.f32 %v1740_v48, %v1721_v28 }
0x1e99   :  { %2746 = vtanh.f32 %v1744_v50  ;;  %v2504_v57 = vmul.f32 -1.442695, %v1744_v50 }
0x1e9a   :  { %2748 = vpow2.f32 %v2506_v52 }
0x1e9e   :  { %v1742_v31 = vpop.f32.mrf.mxu3 }
0x1e9f   :  { %v2747_v51 = vpop.eup %2746 }
0x1ea0   :  { %1767 = vrot.lane.b32.xlu0 %v2747_v51, %s2820_s25  ;;  %v2749_v49 = vpop.eup %2748 }
0x1ea1   :  { %v1804_v39 = vadd.f32 1.0, %v2749_v49 }
0x1ea3   :  { %2750 = vrcp.f32 %v1804_v39  ;;  %v1816_v3 = vand.u32 2147483648, %v1804_v39  ;;  %vm1810_vm14 = vweird.f32 %v1804_v39  ;;  %v1814_v38 = vand.u32 2147483647, %v1804_v39 }
0x1ea4   :  { %2752 = vpow2.f32 %v2504_v57 }
0x1ea5   :  { %v1817_v22 = vor.u32 1.1754944e-38, %v1816_v3  ;;  %vm1815_vm0 = vcmp.eq.f32.partialorder %v1814_v38, 8.507059e+37 }
0x1ea9   :  { %v2751_v26 = vpop.eup %2750 }
0x1eaa   :  { %v1806_v53 = vmul.f32 %v2751_v26, %v1804_v39  ;;  %vm1811_vm13 = vweird.f32 %v2751_v26  ;;  %v2753_v34 = vpop.eup %2752 }
0x1eab   :  { %vm1812_vm15 = vmor %vm1810_vm14, %vm1811_vm13  ;;  %v1748_v58 = vadd.f32 1.0, %v2753_v34 }
0x1eac   :  { %v1807_v54 = vsub.f32 1.0, %v1806_v53 }
0x1ead   :  { %2754 = vrcp.f32 %v1748_v58  ;;  %v1760_v2 = vand.u32 2147483648, %v1748_v58  ;;  %vm1754_vm3 = vweird.f32 %v1748_v58  ;;  %v1758_v4 = vand.u32 2147483647, %v1748_v58 }
0x1eae   :  { %v1808_v33 = vmul.f32 %v2751_v26, %v1807_v54 }
0x1eaf   :  { %v1761_v6 = vor.u32 1.1754944e-38, %v1760_v2  ;;  %vm1759_vm5 = vcmp.eq.f32.partialorder %v1758_v4, 8.507059e+37 }
0x1eb0   :  { %v1809_v25 = vadd.f32 %v2751_v26, %v1808_v33 }
0x1eb2   :  { %v1813_v55 = vsel %vm1812_vm15, %v2751_v26, %v1809_v25 }
0x1eb3   :  { %v1818_v56 = vsel %vm1815_vm0, %v1817_v22, %v1813_v55  ;;  %v2755_v60 = vpop.eup %2754 }
0x1eb4   :  { %v1750_v61 = vmul.f32 %v2755_v60, %v1748_v58  ;;  %vm1755_vm2 = vweird.f32 %v2755_v60  ;;  %v1821_v11 = vmul.f32 %v1818_v56, %v3278_v14 }
0x1eb5   :  { %vm1756_vm4 = vmor %vm1754_vm3, %vm1755_vm2 }
0x1eb6   :  { %v1751_v62 = vsub.f32 1.0, %v1750_v61 }
0x1eb8   :  { %v1752_v63 = vmul.f32 %v2755_v60, %v1751_v62 }
0x1eba   :  { %v1753_v0 = vadd.f32 %v2755_v60, %v1752_v63 }
0x1ebc   :  { %v1757_v5 = vsel %vm1756_vm4, %v2755_v60, %v1753_v0 }
0x1ebd   :  { %v1762_v9 = vsel %vm1759_vm5, %v1761_v6, %v1757_v5 }
0x1ebe   :  { %v1765_v20 = vmul.f32 %v1762_v9, %v3283_v17 }
0x1ee0   :  { %v1824_v35 = vpop.permute.xlu2 %1823 }
0x1ee1   :  { %v1826_v32 = vmul.f32 %v1824_v35, %v1818_v56 }
0x1ee3   :  { %1828 = vrot.lane.b32.xlu1 %v1826_v32, %s2821_s3 }
0x1f12   :  { %v1768_v7 = vpop.permute.xlu0 %1767 }
0x1f13   :  { %v1770_v10 = vmul.f32 %v1768_v7, %v1762_v9 }
0x1f15   :  { %1772 = vrot.lane.b32.xlu2 %v1770_v10, %s2821_s3 }
0x1f55   :  { %v1829_v12 = vpop.permute.xlu1 %1828 }
0x1f56   :  { %v3306_v15 = vadd.f32 %v1829_v12, %v1821_v11 }
0x1f58   :  { %2756 = vtanh.f32 %v3306_v15 }
0x1f5e   :  { %v2757_v16 = vpop.eup %2756 }
0x1f5f   :  { %1834 = vrot.lane.b32.xlu0 %v2757_v16, %s2824_s23 }
0x1f6f   :  { %v1773_v37 = vpop.permute.xlu2 %1772 }
0x1f70   :  { %v3311_v23 = vadd.f32 %v1773_v37, %v1765_v20 }
0x1f72   :  { %2758 = vtanh.f32 %v3311_v23 }
0x1f78   :  { %v2759_v13 = vpop.eup %2758 }
0x1f79   :  { %1778 = vrot.lane.b32.xlu1 %v2759_v13, %s2824_s23 }
0x1fd1   :  { %v1835_v29 = vpop.permute.xlu0 %1834 }
0x1fd2   :  { %v1837_v14 = vmul.f32 %v1835_v29, %v1818_v56 }
0x1fd4   :  { %v1838_v40 = vpack.c.bf16 %v1837_v14, %v1837_v14 }
0x1fd6   :  { %1840 = vrot.lane.b32.xlu2 %v1838_v40, %s2823_s2 }
0x1feb   :  { %v1779_v43 = vpop.permute.xlu1 %1778 }
0x1fec   :  { %v3316_v21 = vmul.f32 %v1779_v43, %v1762_v9 }
0x1fee   :  { %v1858_v19 = vpack.c.bf16 %v3316_v21, %v3316_v21 }
0x1ff0   :  { %1860 = vrot.lane.b32.xlu0 %v1858_v19, %s2823_s2 }
0x2030   :  { %v1841_v17 = vpop.permute.xlu2 %1840 }
0x2031   :  { %2507 = vmatmul.msk.bf16.vlgmr.msrb.gmra.mxu1 %vm209_vm6, %v1841_v17  ;;  %2510 = vmatmul.msk.bf16.vlgmr.msrb.gmra.mxu3 %vm209_vm6, %v1841_v17 }
0x2032   :  { %2196 = vmatpush.bf16.msrb.mxu1 %v3172_v59  ;;  %2274 = vmatpush.bf16.msrb.mxu3 %v3182_v1 }
0x2062   :  { %v1861_v30 = vpop.permute.xlu0 %1860 }
0x2063   :  { %2508 = vmatmul.msk.bf16.vlgmr.msrb.gmra.mxu2 %vm209_vm6, %v1861_v30 }
0x2064   :  { %2254 = vmatpush.bf16.msrb.mxu2 %v3203_v44 }
0x20ae   :  { %v1854_v41 = vpop.f32.mrf.mxu1 }
0x20af   :  { %v1855_v48 = vadd.f32 %v3219_v47, %v1854_v41 }
0x20b4   :  { %v1930_v27 = vpop.f32.mrf.mxu3 }
0x20b5   :  { %v1934_v45 = vadd.f32 %v3194_v8, %v1930_v27 }
0x20b6   :  { %v1856_v46 = vpop.f32.mrf.mxu1 }
0x20b7   :  { %2760 = vtanh.f32 %v1934_v45  ;;  %v2511_v44 = vmul.f32 -1.442695, %v1934_v45 }
0x20bc   :  { %v1932_v36 = vpop.f32.mrf.mxu3 }
0x20bd   :  { %v2761_v28 = vpop.eup %2760 }
0x20be   :  { %1957 = vrot.lane.b32.xlu1 %v2761_v28, %s2820_s25 }
0x20e6   :  { %v1874_v59 = vpop.f32.mrf.mxu2 }
0x20e7   :  { %v1878_v50 = vadd.f32 %v1874_v59, %v1855_v48 }
0x20e9   :  { %2762 = vtanh.f32 %v1878_v50  ;;  %v2509_v39 = vmul.f32 -1.442695, %v1878_v50 }
0x20ea   :  { %2764 = vpow2.f32 %v2511_v44 }
0x20ee   :  { %v1876_v1 = vpop.f32.mrf.mxu2 }
0x20ef   :  { %v2763_v31 = vpop.eup %2762 }
0x20f0   :  { %1901 = vrot.lane.b32.xlu2 %v2763_v31, %s2820_s25  ;;  %v2765_v51 = vpop.eup %2764 }
0x20f1   :  { %v1938_v52 = vadd.f32 1.0, %v2765_v51 }
0x20f3   :  { %2766 = vrcp.f32 %v1938_v52  ;;  %v1950_v38 = vand.u32 2147483648, %v1938_v52  ;;  %vm1944_vm8 = vweird.f32 %v1938_v52  ;;  %v1948_v55 = vand.u32 2147483647, %v1938_v52 }
0x20f4   :  { %2768 = vpow2.f32 %v2509_v39 }
0x20f5   :  { %v1951_v35 = vor.u32 1.1754944e-38, %v1950_v38  ;;  %vm1949_vm10 = vcmp.eq.f32.partialorder %v1948_v55, 8.507059e+37 }
0x20f9   :  { %v2767_v49 = vpop.eup %2766 }
0x20fa   :  { %v1940_v26 = vmul.f32 %v2767_v49, %v1938_v52  ;;  %v2769_v33 = vpop.eup %2768  ;;  %vm1945_vm7 = vweird.f32 %v2767_v49 }
0x20fb   :  { %v1882_v3 = vadd.f32 1.0, %v2769_v33  ;;  %vm1946_vm9 = vmor %vm1944_vm8, %vm1945_vm7 }
0x20fc   :  { %v1941_v53 = vsub.f32 1.0, %v1940_v26 }
0x20fd   :  { %2770 = vrcp.f32 %v1882_v3  ;;  %v1894_v63 = vand.u32 2147483648, %v1882_v3  ;;  %vm1888_vm12 = vweird.f32 %v1882_v3  ;;  %v1892_v0 = vand.u32 2147483647, %v1882_v3 }
0x20fe   :  { %v1942_v54 = vmul.f32 %v2767_v49, %v1941_v53 }
0x20ff   :  { %v1895_v4 = vor.u32 1.1754944e-38, %v1894_v63  ;;  %vm1893_vm14 = vcmp.eq.f32.partialorder %v1892_v0, 8.507059e+37 }
0x2100   :  { %v1943_v25 = vadd.f32 %v2767_v49, %v1942_v54 }
0x2102   :  { %v1947_v22 = vsel %vm1946_vm9, %v2767_v49, %v1943_v25 }
0x2103   :  { %v1952_v56 = vsel %vm1949_vm10, %v1951_v35, %v1947_v22  ;;  %v2771_v34 = vpop.eup %2770 }
0x2104   :  { %v1884_v58 = vmul.f32 %v2771_v34, %v1882_v3  ;;  %vm1889_vm11 = vweird.f32 %v2771_v34  ;;  %v1955_v9 = vmul.f32 %v1952_v56, %v3306_v15 }
0x2105   :  { %vm1890_vm13 = vmor %vm1888_vm12, %vm1889_vm11 }
0x2106   :  { %v1885_v60 = vsub.f32 1.0, %v1884_v58 }
0x2108   :  { %v1886_v61 = vmul.f32 %v2771_v34, %v1885_v60 }
0x210a   :  { %v1887_v62 = vadd.f32 %v2771_v34, %v1886_v61 }
0x210c   :  { %v1891_v2 = vsel %vm1890_vm13, %v2771_v34, %v1887_v62 }
0x210d   :  { %v1896_v6 = vsel %vm1893_vm14, %v1895_v4, %v1891_v2 }
0x210e   :  { %v1899_v16 = vmul.f32 %v1896_v6, %v3311_v23 }
0x2130   :  { %v1958_v32 = vpop.permute.xlu1 %1957 }
0x2131   :  { %v1960_v57 = vmul.f32 %v1958_v32, %v1952_v56 }
0x2133   :  { %1962 = vrot.lane.b32.xlu0 %v1960_v57, %s2821_s3 }
0x214a   :  { %v1902_v5 = vpop.permute.xlu2 %1901 }
0x214b   :  { %v1904_v7 = vmul.f32 %v1902_v5, %v1896_v6 }
0x214d   :  { %1906 = vrot.lane.b32.xlu1 %v1904_v7, %s2821_s3 }
0x21a5   :  { %v1963_v10 = vpop.permute.xlu0 %1962 }
0x21a6   :  { %v3334_v11 = vadd.f32 %v1963_v10, %v1955_v9 }
0x21a8   :  { %2772 = vtanh.f32 %v3334_v11 }
0x21ae   :  { %v2773_v12 = vpop.eup %2772 }
0x21af   :  { %1968 = vrot.lane.b32.xlu2 %v2773_v12, %s2824_s23 }
0x21bf   :  { %v1907_v20 = vpop.permute.xlu1 %1906 }
0x21c0   :  { %v3339_v37 = vadd.f32 %v1907_v20, %v1899_v16 }
0x21c2   :  { %2774 = vtanh.f32 %v3339_v37 }
0x21c8   :  { %v2775_v13 = vpop.eup %2774 }
0x21c9   :  { %1912 = vrot.lane.b32.xlu0 %v2775_v13, %s2824_s23 }
0x2209   :  { %v1969_v29 = vpop.permute.xlu2 %1968 }
0x220a   :  { %v1971_v15 = vmul.f32 %v1969_v29, %v1952_v56 }
0x220c   :  { %v1972_v14 = vpack.c.bf16 %v1971_v15, %v1971_v15 }
0x220e   :  { %1974 = vrot.lane.b32.xlu1 %v1972_v14, %s2823_s2 }
0x223b   :  { %v1913_v40 = vpop.permute.xlu0 %1912 }
0x223c   :  { %v3344_v43 = vmul.f32 %v1913_v40, %v1896_v6 }
0x223e   :  { %v1992_v19 = vpack.c.bf16 %v3344_v43, %v3344_v43 }
0x2240   :  { %1994 = vrot.lane.b32.xlu2 %v1992_v19, %s2823_s2 }
0x2280   :  { %v1975_v23 = vpop.permute.xlu1 %1974 }
0x2281   :  { %2512 = vmatmul.msk.bf16.vlgmr.msra.gmra.mxu0 %vm209_vm6, %v1975_v23  ;;  %2515 = vmatmul.msk.bf16.vlgmr.msra.gmra.mxu2 %vm209_vm6, %v1975_v23 }
0x229a   :  { %v1995_v17 = vpop.permute.xlu2 %1994 }
0x229b   :  { %2513 = vmatmul.msk.bf16.vlgmr.msra.gmra.mxu1 %vm209_vm6, %v1995_v17  ;;  %v2818_v17 = vld [vmem:[%s3483_s9] ss:$0 sm:$0xff] }
0x22fe   :  { %v1988_v30 = vpop.f32.mrf.mxu0 }
0x22ff   :  { %v1989_v28 = vadd.f32 %v3219_v47, %v1988_v30 }
0x2304   :  { %v2064_v41 = vpop.f32.mrf.mxu2 }
0x2305   :  { %v2068_v27 = vadd.f32 %v3194_v8, %v2064_v41 }
0x2306   :  { %v1990_v45 = vpop.f32.mrf.mxu0 }
0x2307   :  { %2776 = vtanh.f32 %v2068_v27  ;;  %v2516_v31 = vmul.f32 -1.442695, %v2068_v27 }
0x230c   :  { %v2066_v46 = vpop.f32.mrf.mxu2 }
0x230d   :  { %v2777_v36 = vpop.eup %2776 }
0x230e   :  { %2091 = vrot.lane.b32.xlu0 %v2777_v36, %s2820_s25  ;;  %v3384_v36 = vld [vmem:[%s3486_s12] ss:$0 sm:$0xff] }
0x2318   :  { %v2008_v48 = vpop.f32.mrf.mxu1 }
0x2319   :  { %v2012_v59 = vadd.f32 %v2008_v48, %v1989_v28 }
0x231b   :  { %2778 = vtanh.f32 %v2012_v59  ;;  %v2514_v8 = vmul.f32 -1.442695, %v2012_v59 }
0x231c   :  { %2780 = vpow2.f32 %v2516_v31 }
0x2320   :  { %v2010_v50 = vpop.f32.mrf.mxu1 }
0x2321   :  { %v2779_v1 = vpop.eup %2778 }
0x2322   :  { %2035 = vrot.lane.b32.xlu1 %v2779_v1, %s2820_s25  ;;  %v2781_v44 = vpop.eup %2780 }
0x2323   :  { %v2072_v51 = vadd.f32 1.0, %v2781_v44 }
0x2325   :  { %2782 = vrcp.f32 %v2072_v51  ;;  %v2084_v33 = vand.u32 2147483648, %v2072_v51  ;;  %vm2078_vm0 = vweird.f32 %v2072_v51  ;;  %v2082_v25 = vand.u32 2147483647, %v2072_v51 }
0x2326   :  { %2784 = vpow2.f32 %v2514_v8 }
0x2327   :  { %v2085_v55 = vor.u32 1.1754944e-38, %v2084_v33  ;;  %vm2083_vm3 = vcmp.eq.f32.partialorder %v2082_v25, 8.507059e+37 }
0x232b   :  { %v2783_v52 = vpop.eup %2782 }
0x232c   :  { %v2074_v49 = vmul.f32 %v2783_v52, %v2072_v51  ;;  %v2785_v39 = vpop.eup %2784  ;;  %vm2079_vm15 = vweird.f32 %v2783_v52 }
0x232d   :  { %v2016_v53 = vadd.f32 1.0, %v2785_v39  ;;  %vm2080_vm2 = vmor %vm2078_vm0, %vm2079_vm15 }
0x232e   :  { %v2075_v26 = vsub.f32 1.0, %v2074_v49 }
0x232f   :  { %2786 = vrcp.f32 %v2016_v53  ;;  %v2028_v60 = vand.u32 2147483648, %v2016_v53  ;;  %vm2022_vm5 = vweird.f32 %v2016_v53  ;;  %v2026_v61 = vand.u32 2147483647, %v2016_v53 }
0x2330   :  { %v2076_v47 = vmul.f32 %v2783_v52, %v2075_v26 }
0x2331   :  { %v2029_v63 = vor.u32 1.1754944e-38, %v2028_v60  ;;  %vm2027_vm8 = vcmp.eq.f32.partialorder %v2026_v61, 8.507059e+37 }
0x2332   :  { %v2077_v54 = vadd.f32 %v2783_v52, %v2076_v47 }
0x2334   :  { %v2081_v3 = vsel %vm2080_vm2, %v2783_v52, %v2077_v54 }
0x2335   :  { %v2787_v38 = vpop.eup %2786  ;;  %v2086_v35 = vsel %vm2083_vm3, %v2085_v55, %v2081_v3 }
0x2336   :  { %v2018_v32 = vmul.f32 %v2787_v38, %v2016_v53  ;;  %vm2023_vm4 = vweird.f32 %v2787_v38  ;;  %v2089_v5 = vmul.f32 %v2086_v35, %v3334_v11 }
0x2337   :  { %vm2024_vm7 = vmor %vm2022_vm5, %vm2023_vm4 }
0x2338   :  { %v2019_v57 = vsub.f32 1.0, %v2018_v32 }
0x233a   :  { %v2020_v34 = vmul.f32 %v2787_v38, %v2019_v57 }
0x233c   :  { %v2021_v58 = vadd.f32 %v2787_v38, %v2020_v34 }
0x233e   :  { %v2025_v62 = vsel %vm2024_vm7, %v2787_v38, %v2021_v58 }
0x233f   :  { %v2030_v2 = vsel %vm2027_vm8, %v2029_v63, %v2025_v62 }
0x2340   :  { %v2033_v10 = vmul.f32 %v2030_v2, %v3339_v37 }
0x2380   :  { %v2092_v22 = vpop.permute.xlu0 %2091 }
0x2381   :  { %v2094_v56 = vmul.f32 %v2092_v22, %v2086_v35 }
0x2383   :  { %2096 = vrot.lane.b32.xlu2 %v2094_v56, %s2821_s3 }
0x2394   :  { %v2036_v0 = vpop.permute.xlu1 %2035 }
0x2395   :  { %v2038_v4 = vmul.f32 %v2036_v0, %v2030_v2 }
0x2397   :  { %2040 = vrot.lane.b32.xlu0 %v2038_v4, %s2821_s3 }
0x23dd   :  { %v2097_v6 = vpop.permute.xlu2 %2096 }
0x23de   :  { %v3359_v7 = vadd.f32 %v2097_v6, %v2089_v5 }
0x23e0   :  { %2788 = vtanh.f32 %v3359_v7 }
0x23e6   :  { %v2789_v9 = vpop.eup %2788 }
0x23e7   :  { %2102 = vrot.lane.b32.xlu1 %v2789_v9, %s2824_s23 }
0x2409   :  { %v2041_v12 = vpop.permute.xlu0 %2040 }
0x240a   :  { %v3364_v16 = vadd.f32 %v2041_v12, %v2033_v10 }
0x240c   :  { %2790 = vtanh.f32 %v3364_v16 }
0x2412   :  { %v2791_v20 = vpop.eup %2790 }
0x2413   :  { %2046 = vrot.lane.b32.xlu2 %v2791_v20, %s2824_s23 }
0x2459   :  { %v2103_v13 = vpop.permute.xlu1 %2102 }
0x245a   :  { %v2105_v11 = vmul.f32 %v2103_v13, %v2086_v35 }
0x245c   :  { %v2106_v29 = vpack.c.bf16 %v2105_v11, %v2105_v11 }
0x245e   :  { %2108 = vrot.lane.b32.xlu0 %v2106_v29, %s2823_s2 }
0x246d   :  { %v2047_v15 = vpop.permute.xlu2 %2046 }
0x246e   :  { %v3369_v14 = vmul.f32 %v2047_v15, %v2030_v2 }
0x2470   :  { %v2126_v40 = vpack.c.bf16 %v3369_v14, %v3369_v14 }
0x2472   :  { %2128 = vrot.lane.b32.xlu1 %v2126_v40, %s2823_s2 }
0x24d0   :  { %v2109_v37 = vpop.permute.xlu0 %2108 }
0x24d1   :  { %2517 = vmatmul.msk.bf16.vlgmr.msra.gmra.mxu3 %vm209_vm6, %v2109_v37  ;;  %2520 = vmatmul.msk.bf16.vlgmr.msrb.gmra.mxu1 %vm209_vm6, %v2109_v37 }
0x24e4   :  { %v2129_v19 = vpop.permute.xlu1 %2128 }
0x24e5   :  { %2518 = vmatmul.msk.bf16.vlgmr.msrb.gmra.mxu0 %vm209_vm6, %v2129_v19 }
0x254e   :  { %v2198_v23 = vpop.f32.mrf.mxu1 }
0x254f   :  { %v2202_v30 = vadd.f32 %v2818_v17, %v2198_v23 }
0x2551   :  { %2792 = vtanh.f32 %v2202_v30  ;;  %v2521_v31 = vmul.f32 -1.442695, %v2202_v30 }
0x2554   :  { %v2122_v41 = vpop.f32.mrf.mxu3 }
0x2555   :  { %v2123_v28 = vadd.f32 %v3384_v36, %v2122_v41 }
0x2556   :  { %v2200_v27 = vpop.f32.mrf.mxu1 }
0x2557   :  { %v2793_v45 = vpop.eup %2792 }
0x2558   :  { %2225 = vrot.lane.b32.xlu2 %v2793_v45, %s2820_s25 }
0x255c   :  { %v2124_v46 = vpop.f32.mrf.mxu3 }
0x2562   :  { %v2142_v48 = vpop.f32.mrf.mxu0 }
0x2563   :  { %v2146_v59 = vadd.f32 %v2142_v48, %v2123_v28 }
0x2565   :  { %2794 = vtanh.f32 %v2146_v59  ;;  %v2519_v25 = vmul.f32 -1.442695, %v2146_v59 }
0x2566   :  { %2796 = vpow2.f32 %v2521_v31 }
0x256a   :  { %v2144_v50 = vpop.f32.mrf.mxu0 }
0x256b   :  { %v2795_v1 = vpop.eup %2794 }
0x256c   :  { %2169 = vrot.lane.b32.xlu0 %v2795_v1, %s2820_s25  ;;  %v2797_v44 = vpop.eup %2796 }
0x256d   :  { %v2206_v51 = vadd.f32 1.0, %v2797_v44 }
0x256f   :  { %2798 = vrcp.f32 %v2206_v51  ;;  %v2218_v53 = vand.u32 2147483648, %v2206_v51  ;;  %vm2212_vm10 = vweird.f32 %v2206_v51  ;;  %v2216_v47 = vand.u32 2147483647, %v2206_v51 }
0x2570   :  { %2800 = vpow2.f32 %v2519_v25 }
0x2571   :  { %v2219_v33 = vor.u32 1.1754944e-38, %v2218_v53  ;;  %vm2217_vm12 = vcmp.eq.f32.partialorder %v2216_v47, 8.507059e+37 }
0x2575   :  { %v2799_v8 = vpop.eup %2798 }
0x2576   :  { %v2208_v52 = vmul.f32 %v2799_v8, %v2206_v51  ;;  %vm2213_vm9 = vweird.f32 %v2799_v8  ;;  %v2801_v22 = vpop.eup %2800 }
0x2577   :  { %vm2214_vm11 = vmor %vm2212_vm10, %vm2213_vm9  ;;  %v2150_v35 = vadd.f32 1.0, %v2801_v22 }
0x2578   :  { %v2209_v49 = vsub.f32 1.0, %v2208_v52 }
0x2579   :  { %2802 = vrcp.f32 %v2150_v35  ;;  %v2162_v60 = vand.u32 2147483648, %v2150_v35  ;;  %vm2156_vm14 = vweird.f32 %v2150_v35  ;;  %v2160_v61 = vand.u32 2147483647, %v2150_v35 }
0x257a   :  { %v2210_v39 = vmul.f32 %v2799_v8, %v2209_v49 }
0x257b   :  { %v2163_v63 = vor.u32 1.1754944e-38, %v2162_v60  ;;  %vm2161_vm0 = vcmp.eq.f32.partialorder %v2160_v61, 8.507059e+37 }
0x257c   :  { %v2211_v26 = vadd.f32 %v2799_v8, %v2210_v39 }
0x257e   :  { %v2215_v54 = vsel %vm2214_vm11, %v2799_v8, %v2211_v26 }
0x257f   :  { %v2220_v3 = vsel %vm2217_vm12, %v2219_v33, %v2215_v54  ;;  %v2803_v56 = vpop.eup %2802 }
0x2580   :  { %v2152_v32 = vmul.f32 %v2803_v56, %v2150_v35  ;;  %vm2157_vm13 = vweird.f32 %v2803_v56  ;;  %v2223_v5 = vmul.f32 %v2220_v3, %v3359_v7 }
0x2581   :  { %vm2158_vm15 = vmor %vm2156_vm14, %vm2157_vm13 }
0x2582   :  { %v2153_v57 = vsub.f32 1.0, %v2152_v32 }
0x2584   :  { %v2154_v34 = vmul.f32 %v2803_v56, %v2153_v57 }
0x2586   :  { %v2155_v58 = vadd.f32 %v2803_v56, %v2154_v34 }
0x2588   :  { %v2159_v62 = vsel %vm2158_vm15, %v2803_v56, %v2155_v58  ;;  %v2559_v58 = vld [vmem:[%s3488_s18] ss:$0 sm:$0xff] }
0x2589   :  { %v2164_v2 = vsel %vm2161_vm0, %v2163_v63, %v2159_v62 }
0x258a   :  { %v2167_v12 = vmul.f32 %v2164_v2, %v3364_v16 }
0x25b2   :  { %v2226_v38 = vpop.permute.xlu2 %2225 }
0x25b3   :  { %v2228_v55 = vmul.f32 %v2226_v38, %v2220_v3 }
0x25b5   :  { %2230 = vrot.lane.b32.xlu1 %v2228_v55, %s2821_s3 }
0x25de   :  { %v2170_v0 = vpop.permute.xlu0 %2169 }
0x25df   :  { %v2172_v4 = vmul.f32 %v2170_v0, %v2164_v2 }
0x25e1   :  { %2174 = vrot.lane.b32.xlu2 %v2172_v4, %s2821_s3 }
0x2627   :  { %v2231_v6 = vpop.permute.xlu1 %2230 }
0x2628   :  { %v2233_v9 = vadd.f32 %v2231_v6, %v2223_v5 }
0x262a   :  { %2804 = vtanh.f32 %v2233_v9 }
0x2630   :  { %v2805_v10 = vpop.eup %2804 }
0x2631   :  { %2236 = vrot.lane.b32.xlu0 %v2805_v10, %s2824_s23 }
0x263b   :  { %v2175_v20 = vpop.permute.xlu2 %2174 }
0x263c   :  { %v3393_v13 = vadd.f32 %v2175_v20, %v2167_v12 }
0x263e   :  { %2806 = vtanh.f32 %v3393_v13 }
0x2644   :  { %v2807_v11 = vpop.eup %2806 }
0x2645   :  { %2180 = vrot.lane.b32.xlu1 %v2807_v11, %s2824_s23 }
0x26a3   :  { %v2237_v29 = vpop.permute.xlu0 %2236 }
0x26a4   :  { %v2239_v15 = vmul.f32 %v2237_v29, %v2220_v3 }
0x26a6   :  { %v2240_v40 = vpack.c.bf16 %v2239_v15, %v2239_v15 }
0x26a8   :  { %2242 = vrot.lane.b32.xlu2 %v2240_v40, %s2823_s2 }
0x26b7   :  { %v2181_v7 = vpop.permute.xlu1 %2180 }
0x26b8   :  { %v2183_v37 = vmul.f32 %v2181_v7, %v2164_v2 }
0x26ba   :  { %v2260_v19 = vpack.c.bf16 %v2183_v37, %v2183_v37 }
0x26bc   :  { %2262 = vrot.lane.b32.xlu0 %v2260_v19, %s2823_s2 }
0x26c4   :  { %1373 = vrot.lane.b32.xlu0 %v3231_v18, %s2823_s2 }
0x26cc   :  { %1649 = vrot.lane.b32.xlu0 %v3288_v24, %s2823_s2 }
0x26d4   :  { %2051 = vrot.lane.b32.xlu0 %v3369_v14, %s2823_s2 }
0x2702   :  { %v2243_v16 = vpop.permute.xlu2 %2242 }
0x2703   :  { %2522 = vmatmul.msk.bf16.vlgmr.msrb.gmra.mxu2 %vm209_vm6, %v2243_v16 }
0x272e   :  { %v2263_v23 = vpop.permute.xlu0 %2262 }
0x272f   :  { %2523 = vmatmul.msk.bf16.vlgmr.msrb.gmra.mxu3 %vm209_vm6, %v2263_v23 }
0x2736   :  { %v1374_v17 = vpop.permute.xlu0 %1373 }
0x2737   :  { %1376 = vst.msk [vmem:[#allocation2] sm:$0xff] %vm209_vm6, %v1374_v17 }
0x273e   :  { %v1650_v30 = vpop.permute.xlu0 %1649  ;;  %v2323_v33 = vld [vmem:[#allocation2] sm:$0xff] }
0x273f   :  { %1652 = vst.msk [vmem:[#allocation2 + $0x10] sm:$0xff] %vm209_vm6, %v1650_v30 }
0x2746   :  { %v2052_v41 = vpop.permute.xlu0 %2051  ;;  %v2325_v22 = vld [vmem:[#allocation2 + $0x10] sm:$0xff] }
0x2747   :  { %2054 = vst.msk [vmem:[#allocation2 + $0x28] sm:$0xff] %vm209_vm6, %v2052_v41 }
0x274e   :  { %v2328_v12 = vld [vmem:[#allocation2 + $0x28] sm:$0xff] }
0x2786   :  { %v2256_v18 = vpop.f32.mrf.mxu2 }
0x2787   :  { %v2257_v27 = vadd.f32 %v3384_v36, %v2256_v18  ;;  %v2540_v36 = vld [vmem:[%s3487_s17] sm:$0xff] }
0x2788   :  { %2363 = vmatpush.bf16.msra.mxu0 %v2540_v36 }
0x278e   :  { %v2258_v24 = vpop.f32.mrf.mxu2 }
0x27b2   :  { %v2276_v14 = vpop.f32.mrf.mxu3 }
0x27b3   :  { %v2280_v45 = vadd.f32 %v2276_v14, %v2257_v27 }
0x27b5   :  { %2808 = vtanh.f32 %v2280_v45  ;;  %v2524_v48 = vmul.f32 -1.442695, %v2280_v45 }
0x27b7   :  { %2810 = vpow2.f32 %v2524_v48 }
0x27ba   :  { %v2278_v46 = vpop.f32.mrf.mxu3 }
0x27bb   :  { %v2809_v28 = vpop.eup %2808 }
0x27bc   :  { %2303 = vrot.lane.b32.xlu1 %v2809_v28, %s2820_s25 }
0x27bd   :  { %v2811_v59 = vpop.eup %2810 }
0x27be   :  { %v2284_v50 = vadd.f32 1.0, %v2811_v59 }
0x27c0   :  { %2812 = vrcp.f32 %v2284_v50  ;;  %v2296_v8 = vand.u32 2147483648, %v2284_v50  ;;  %vm2290_vm3 = vweird.f32 %v2284_v50 }
0x27c2   :  { %v2297_v49 = vor.u32 1.1754944e-38, %v2296_v8 }
0x27c4   :  { %1515 = vrot.lane.b32.xlu1 %v3260_v42, %s2823_s2 }
0x27c6   :  { %v2813_v1 = vpop.eup %2812 }
0x27c7   :  { %v2286_v31 = vmul.f32 %v2813_v1, %v2284_v50  ;;  %vm2291_vm2 = vweird.f32 %v2813_v1 }
0x27c8   :  { %vm2292_vm4 = vmor %vm2290_vm3, %vm2291_vm2 }
0x27c9   :  { %v2287_v44 = vsub.f32 1.0, %v2286_v31 }
0x27cb   :  { %v2288_v51 = vmul.f32 %v2813_v1, %v2287_v44 }
0x27cc   :  { %1783 = vrot.lane.b32.xlu1 %v3316_v21, %s2823_s2  ;;  %v2294_v21 = vand.u32 2147483647, %v2284_v50 }
0x27cd   :  { %v2289_v42 = vadd.f32 %v2813_v1, %v2288_v51 }
0x27ce   :  { %vm2295_vm5 = vcmp.eq.f32.partialorder %v2294_v21, 8.507059e+37 }
0x27cf   :  { %v2293_v52 = vsel %vm2292_vm4, %v2813_v1, %v2289_v42 }
0x27d0   :  { %v2298_v26 = vsel %vm2295_vm5, %v2297_v49, %v2293_v52 }
0x27d1   :  { %v2301_v56 = vmul.f32 %v2298_v26, %v3393_v13 }
0x27d4   :  { %2185 = vrot.lane.b32.xlu1 %v2183_v37, %s2823_s2 }
0x282e   :  { %v2304_v39 = vpop.permute.xlu1 %2303 }
0x282f   :  { %v2306_v53 = vmul.f32 %v2304_v39, %v2298_v26 }
0x2831   :  { %2308 = vrot.lane.b32.xlu2 %v2306_v53, %s2821_s3 }
0x2836   :  { %v1516_v47 = vpop.permute.xlu1 %1515 }
0x2837   :  { %1518 = vst.msk [vmem:[#allocation2 + $0x8] sm:$0xff] %vm209_vm6, %v1516_v47 }
0x283e   :  { %v1784_v54 = vpop.permute.xlu1 %1783  ;;  %v2324_v25 = vld [vmem:[#allocation2 + $0x8] sm:$0xff] }
0x283f   :  { %1786 = vst.msk [vmem:[#allocation2 + $0x18] sm:$0xff] %vm209_vm6, %v1784_v54  ;;  %v2331_v3 = vpack.c.bf16 %v2324_v25, %v2323_v33 }
0x2841   :  { %2529 = vmatmul.msk.bf16.vlgmr.msra.gmra.mxu0 %vm209_vm6, %v2331_v3 }
0x2846   :  { %v2186_v38 = vpop.permute.xlu1 %2185  ;;  %v2326_v55 = vld [vmem:[#allocation2 + $0x18] sm:$0xff] }
0x2847   :  { %2188 = vst.msk [vmem:[#allocation2 + $0x30] sm:$0xff] %vm209_vm6, %v2186_v38  ;;  %v2332_v35 = vpack.c.bf16 %v2326_v55, %v2325_v22 }
0x284e   :  { %v2329_v11 = vld [vmem:[#allocation2 + $0x30] sm:$0xff] }
0x2851   :  { %2530 = vmatmul.msk.bf16.gmra.mxu0 %vm209_vm6, %v2332_v35 }
0x288b   :  { %v2309_v32 = vpop.permute.xlu2 %2308 }
0x288c   :  { %v2311_v57 = vadd.f32 %v2309_v32, %v2301_v56 }
0x288e   :  { %2814 = vtanh.f32 %v2311_v57 }
0x2894   :  { %v2815_v34 = vpop.eup %2814 }
0x2895   :  { %2314 = vrot.lane.b32.xlu2 %v2815_v34, %s2824_s23 }
0x289d   :  { %1917 = vrot.lane.b32.xlu2 %v3344_v43, %s2823_s2 }
0x28be   :  { %v2365_v60 = vpop.f32.mrf.mxu0 }
0x28bf   :  { %v2366_v61 = vadd.f32 %v2559_v58, %v2365_v60 }
0x28c1   :  { %2385 = vst.msk [vmem:[%s3489_s19] sm:$0xff] %vm119_vm1, %v2366_v61 }
0x28c6   :  { %v2367_v62 = vpop.f32.mrf.mxu0 }
0x28c7   :  { %v2368_v63 = vadd.f32 %v2559_v58, %v2367_v62 }
0x28c9   :  { %2386 = vst.msk [vmem:[%s3489_s19 + $0x8] sm:$0xff] %vm119_vm1, %v2368_v63 }
0x28ce   :  { %v2370_v0 = vpop.f32.mrf.mxu0 }
0x28cf   :  { %v2371_v43 = vadd.f32 %v2559_v58, %v2370_v0 }
0x28d1   :  { %2387 = vst.msk [vmem:[%s3489_s19 + $0x10] sm:$0xff] %vm119_vm1, %v2371_v43 }
0x28d6   :  { %v2372_v2 = vpop.f32.mrf.mxu0 }
0x28d7   :  { %v2373_v4 = vadd.f32 %v2559_v58, %v2372_v2 }
0x28d9   :  { %2388 = vst.msk [vmem:[%s3489_s19 + $0x18] sm:$0xff] %vm119_vm1, %v2373_v4 }
0x28ef   :  { %v2315_v5 = vpop.permute.xlu2 %2314 }
0x28f0   :  { %v2317_v6 = vmul.f32 %v2315_v5, %v2298_v26 }
0x28f2   :  { %2319 = vrot.lane.b32.xlu2 %v2317_v6, %s2823_s2 }
0x28f7   :  { %v1918_v9 = vpop.permute.xlu2 %1917 }
0x28f8   :  { %1920 = vst.msk [vmem:[#allocation2 + $0x20] sm:$0xff] %vm209_vm6, %v1918_v9 }
0x28ff   :  { %v2327_v10 = vld [vmem:[#allocation2 + $0x20] sm:$0xff] }
0x2900   :  { %v2333_v20 = vpack.c.bf16 %v2328_v12, %v2327_v10 }
0x2902   :  { %2531 = vmatmul.msk.bf16.gmra.mxu0 %vm209_vm6, %v2333_v20 }
0x294c   :  { %v2320_v13 = vpop.permute.xlu2 %2319 }
0x294d   :  { %2322 = vst.msk [vmem:[#allocation2 + $0x38] sm:$0xff] %vm209_vm6, %v2320_v13 }
0x2954   :  { %v2330_v29 = vld [vmem:[#allocation2 + $0x38] sm:$0xff] }
0x2955   :  { %v2334_v15 = vpack.c.bf16 %v2330_v29, %v2329_v11 }
0x2957   :  { %2532 = vmatmul.msk.bf16.gmra.mxu0 %vm209_vm6, %v2334_v15 }
0x297f   :  { %v2375_v40 = vpop.f32.mrf.mxu0 }
0x2980   :  { %v2376_v7 = vadd.f32 %v2559_v58, %v2375_v40 }
0x2982   :  { %2389 = vst.msk [vmem:[%s3489_s19 + $0x20] sm:$0xff] %vm119_vm1, %v2376_v7 }
0x2987   :  { %v2377_v37 = vpop.f32.mrf.mxu0 }
0x2988   :  { %v2378_v19 = vadd.f32 %v2559_v58, %v2377_v37 }
0x298a   :  { %2390 = vst.msk [vmem:[%s3489_s19 + $0x28] sm:$0xff] %vm119_vm1, %v2378_v19 }
0x29d4   :  { %v2380_v16 = vpop.f32.mrf.mxu0 }
0x29d5   :  { %v2381_v23 = vadd.f32 %v2559_v58, %v2380_v16 }
0x29d7   :  { %2391 = vst.msk [vmem:[%s3489_s19 + $0x30] sm:$0xff] %vm119_vm1, %v2381_v23 }
0x29dc   :  { %v2382_v17 = vpop.f32.mrf.mxu0 }
0x29dd   :  { %v2383_v30 = vadd.f32 %v2559_v58, %v2382_v17 }
0x29df   :  { %2392 = vst.msk [vmem:[%s3489_s19 + $0x38] sm:$0xff] %vm119_vm1, %v2383_v30 }

</bundles_post_ra>
